<compile_context>
chip_gen: v7x
topology: tpu7x:2x2x1
jax: 0.10.0
libtpu: 0.0.40
codegen_flags: <defaults>
</compile_context>

<pallas_src>
import numpy as np
import jax
import jax.numpy as jnp
from jax.experimental import pallas as pl
from jax.experimental.pallas import tpu as pltpu


# --------------------------- batch-tile picker -------------------------------
def _pick_batch_tile(B, C, HW, itemsize):
    """Pick Bt (a divisor of B) so that:
      * the (Bt, C, HW) x-block stays <= ~4 MiB (double-buffered in+out plus
        f32 temporaries fits v7x's default 32 MiB scoped VMEM),
      * Bt <= 8 so the (Bt, HW) spatial maps fill one sublane group without
        blowing the 64-entry vreg file in the unrolled conv loop,
      * >= 2 grid steps remain when B >= 2 (two v7x TensorCores), >= 4 when
        B allows (keeps the BlockSpec double-buffer pipeline busy)."""
    max_block_bytes = 4 * 1024 * 1024
    per_image = max(1, C * HW * itemsize)
    by_mem = max(1, max_block_bytes // per_image)
    if B >= 4:
        by_steps = max(1, B // 4)
    elif B >= 2:
        by_steps = max(1, B // 2)
    else:
        by_steps = 1
    cap = max(1, min(8, B, by_mem, by_steps))
    for bt in range(cap, 0, -1):
        if B % bt == 0:
            return bt
    return 1


# ----------------------------- SE block ---------------------------------------
def _make_se_kernel(Bt):
    def kernel(x_ref, w1_ref, w2_ref, o_ref, pool_scr):
        # x_ref/o_ref: (Bt, C, HW); w1_ref: (Cr, C); w2_ref: (C, Cr)
        # pool_scr: (C, Bt) f32 scratch holding per-image channel means.
        for b in range(Bt):
            xb = x_ref[b].astype(jnp.float32)                       # (C, HW)
            pool_scr[:, pl.ds(b, 1)] = jnp.mean(xb, axis=1, keepdims=True)
        pooled = pool_scr[...]                                      # (C, Bt)
        h = jnp.maximum(
            jnp.dot(w1_ref[...], pooled, preferred_element_type=jnp.float32),
            0.0)                                                    # (Cr, Bt)
        scale = jax.nn.sigmoid(
            jnp.dot(w2_ref[...], h, preferred_element_type=jnp.float32))  # (C, Bt)
        for b in range(Bt):
            xb = x_ref[b].astype(jnp.float32)
            o_ref[b] = (xb * scale[:, b:b + 1]).astype(o_ref.dtype)

    return kernel


def se_block(x, w1, w2):
    B, C, H, W = x.shape
    HW = H * W
    Cr = w1.shape[0]
    Bt = _pick_batch_tile(B, C, HW, x.dtype.itemsize)
    xf = x.reshape(B, C, HW)
    w1f = w1.astype(jnp.float32)
    w2f = w2.astype(jnp.float32)
    out = pl.pallas_call(
        _make_se_kernel(Bt),
        out_shape=jax.ShapeDtypeStruct((B, C, HW), x.dtype),
        grid=(B // Bt,),
        in_specs=[
            pl.BlockSpec((Bt, C, HW), lambda b: (b, 0, 0)),
            pl.BlockSpec((Cr, C), lambda b: (0, 0)),
            pl.BlockSpec((C, Cr), lambda b: (0, 0)),
        ],
        out_specs=pl.BlockSpec((Bt, C, HW), lambda b: (b, 0, 0)),
        scratch_shapes=[pltpu.VMEM((C, Bt), jnp.float32)],
        compiler_params=pltpu.CompilerParams(dimension_semantics=("parallel",)),
    )(xf, w1f, w2f)
    return out.reshape(B, C, H, W)


# ------------------------------- CBAM -----------------------------------------
def _spatial_weight_vectors(conv_w, H, W):
    """Fold the 7x7 conv weights and the 'same'-padding border masks into
    per-tap lane vectors.

    Returns (2*K*K, HW) f32: row c*K*K + kh*K + kw (c: 0=mean map, 1=max map)
    holds w[c, kh, kw] * valid(p, kh, kw), PRE-ROLLED by dh*W so that after the
    kernel's kh-stage lane roll by -(kh-pad)*W the mask lands exactly on the
    output positions.  These masks zero every lane whose lane roll wrapped
    across an image row or the HW boundary — the kernel contains no explicit
    border masks, so this folding is what makes the rolled conv correct."""
    K = conv_w.shape[-1]
    pad = (K - 1) // 2
    HW = H * W
    pos = np.arange(HW)
    hh, ww = pos // W, pos % W
    masks = np.zeros((K, K, HW), np.float32)
    for kh in range(K):
        dh = kh - pad
        for kw in range(K):
            dw = kw - pad
            valid = ((hh + dh >= 0) & (hh + dh < H) &
                     (ww + dw >= 0) & (ww + dw < W)).astype(np.float32)
            masks[kh, kw] = np.roll(valid, dh * W)
    w = conv_w[0].astype(jnp.float32).reshape(2, K, K, 1)           # (2, K, K, 1)
    wvec = (w * jnp.asarray(masks)[None]).reshape(2 * K * K, HW)
    return wvec


def _make_cbam_kernel(Bt, HW, W, K):
    pad = (K - 1) // 2
    KK = K * K

    def kernel(x_ref, w1_ref, w2_ref, wvec_ref, o_ref,
               pool_scr, mean_scr, max_scr):
        # x_ref/o_ref: (Bt, C, HW); w1_ref: (Cr, C); w2_ref: (C, Cr)
        # wvec_ref: (2*K*K, HW) masked per-tap conv weights (see above).
        # pool_scr: (C, 2*Bt); mean_scr/max_scr: (Bt, HW) f32 scratch.

        # ---- channel attention: pooled stats packed into one (C, 2*Bt) RHS ----
        for b in range(Bt):
            xb = x_ref[b].astype(jnp.float32)                       # (C, HW)
            pool_scr[:, pl.ds(b, 1)] = jnp.mean(xb, axis=1, keepdims=True)
            pool_scr[:, pl.ds(Bt + b, 1)] = jnp.max(xb, axis=1, keepdims=True)
        pooled = pool_scr[...]                                      # (C, 2*Bt)
        h = jnp.maximum(
            jnp.dot(w1_ref[...], pooled, preferred_element_type=jnp.float32),
            0.0)                                                    # (Cr, 2*Bt)
        s = jnp.dot(w2_ref[...], h, preferred_element_type=jnp.float32)  # (C, 2*Bt)
        ch = jax.nn.sigmoid(s[:, :Bt] + s[:, Bt:])                  # (C, Bt)

        # ---- channel-attended pooled spatial maps (Bt sublanes filled) ----
        for b in range(Bt):
            xb = x_ref[b].astype(jnp.float32)
            yb = xb * ch[:, b:b + 1]                                # (C, HW)
            mean_scr[pl.ds(b, 1), :] = jnp.mean(yb, axis=0, keepdims=True)
            max_scr[pl.ds(b, 1), :] = jnp.max(yb, axis=0, keepdims=True)
        m_mean = mean_scr[...]                                      # (Bt, HW)
        m_max = max_scr[...]                                        # (Bt, HW)

        # ---- 7x7 'same' cross-correlation on the flattened lane-dense HW axis ----
        def lane_roll(a, shift):
            shift %= HW
            return a if shift == 0 else pltpu.roll(a, shift, axis=1)

        # K column rolls per map (XLU), weights+masks come pre-folded in wvec.
        r_mean = [lane_roll(m_mean, pad - kw) for kw in range(K)]
        r_max = [lane_roll(m_max, pad - kw) for kw in range(K)]
        acc = jnp.zeros((Bt, HW), jnp.float32)
        for kh in range(K):
            comb = jnp.zeros((Bt, HW), jnp.float32)
            for kw in range(K):
                wm = wvec_ref[pl.ds(kh * K + kw, 1), :]             # (1, HW) mean tap
                wx = wvec_ref[pl.ds(KK + kh * K + kw, 1), :]        # (1, HW) max tap
                comb = comb + r_mean[kw] * wm + r_max[kw] * wx
            acc = acc + lane_roll(comb, (pad - kh) * W)             # one row roll per kh
        sp = jax.nn.sigmoid(acc)                                    # (Bt, HW)

        # ---- apply both attentions; one wide lane-dense store per image ----
        for b in range(Bt):
            xb = x_ref[b].astype(jnp.float32)
            o_ref[b] = (xb * ch[:, b:b + 1] * sp[b:b + 1, :]).astype(o_ref.dtype)

    return kernel


def cbam_attention(x, w1, w2, conv_w):
    B, C, H, W = x.shape
    HW = H * W
    Cr = w1.shape[0]
    K = conv_w.shape[-1]
    assert conv_w.shape[0] == 1 and conv_w.shape[1] == 2, "Conv2d(2, 1, K) expected"
    Bt = _pick_batch_tile(B, C, HW, x.dtype.itemsize)
    xf = x.reshape(B, C, HW)
    w1f = w1.astype(jnp.float32)
    w2f = w2.astype(jnp.float32)
    wvec = _spatial_weight_vectors(conv_w, H, W)                    # (2*K*K, HW) f32
    out = pl.pallas_call(
        _make_cbam_kernel(Bt, HW, W, K),
        out_shape=jax.ShapeDtypeStruct((B, C, HW), x.dtype),
        grid=(B // Bt,),
        in_specs=[
            pl.BlockSpec((Bt, C, HW), lambda b: (b, 0, 0)),
            pl.BlockSpec((Cr, C), lambda b: (0, 0)),
            pl.BlockSpec((C, Cr), lambda b: (0, 0)),
            pl.BlockSpec((2 * K * K, HW), lambda b: (0, 0)),
        ],
        out_specs=pl.BlockSpec((Bt, C, HW), lambda b: (b, 0, 0)),
        scratch_shapes=[
            pltpu.VMEM((C, 2 * Bt), jnp.float32),
            pltpu.VMEM((Bt, HW), jnp.float32),
            pltpu.VMEM((Bt, HW), jnp.float32),
        ],
        compiler_params=pltpu.CompilerParams(dimension_semantics=("parallel",)),
    )(xf, w1f, w2f, wvec)
    return out.reshape(B, C, H, W)


# ------------------------------ Attention -------------------------------------
def attention_forward(x, attention_type, params):
    if attention_type == "se":
        return se_block(x, params["w1"], params["w2"])
    elif attention_type == "cbam":
        return cbam_attention(x, params["w1"], params["w2"], params["conv_w"])
    else:
        raise ValueError(f"Unsupported attention type: {attention_type}")


# ----------------------------- pure-JAX refs -----------------------------------
def _ref_se(x, w1, w2):
    avg = x.mean(axis=(2, 3))
    y = jax.nn.sigmoid(jnp.maximum(avg @ w1.T, 0.0) @ w2.T)
    return x * y[:, :, None, None]


def _ref_cbam(x, w1, w2, conv_w):
    avg = x.mean(axis=(2, 3))
    mx = x.max(axis=(2, 3))

    def fc(v):
        return jnp.maximum(v @ w1.T, 0.0) @ w2.T

    scale = jax.nn.sigmoid(fc(avg) + fc(mx))[:, :, None, None]
    x1 = x * scale
    m = jnp.stack([x1.mean(axis=1), x1.max(axis=1)], axis=1)        # (B, 2, H, W)
    K = conv_w.shape[-1]
    p = (K - 1) // 2
    conv = jax.lax.conv_general_dilated(
        m, conv_w, window_strides=(1, 1), padding=((p, p), (p, p)),
        dimension_numbers=("NCHW", "OIHW", "NCHW"))
    return x1 * jax.nn.sigmoid(conv)


if __name__ == "__main__":
    B, C, H, W = 8, 32, 16, 16
    reduction = 16
    Cr = C // reduction
    K = 7

    key = jax.random.PRNGKey(0)
    kx, k1, k2, k3, k4, k5 = jax.random.split(key, 6)
    x = jax.random.normal(kx, (B, C, H, W), jnp.float32)

    cbam_params = dict(
        w1=jax.random.normal(k1, (Cr, C), jnp.float32) * (2.0 / C) ** 0.5,
        w2=jax.random.normal(k2, (C, Cr), jnp.float32) * (2.0 / Cr) ** 0.5,
        conv_w=jax.random.normal(k3, (1, 2, K, K), jnp.float32) * (1.0 / (2 * K * K)) ** 0.5,
    )
    se_params = dict(
        w1=jax.random.normal(k4, (Cr, C), jnp.float32) * (2.0 / C) ** 0.5,
        w2=jax.random.normal(k5, (C, Cr), jnp.float32) * (2.0 / Cr) ** 0.5,
    )

    out_cbam = attention_forward(x, "cbam", cbam_params)
    out_se = attention_forward(x, "se", se_params)
    jax.block_until_ready((out_cbam, out_se))

    ref_cbam = _ref_cbam(x, cbam_params["w1"], cbam_params["w2"], cbam_params["conv_w"])
    ref_se = _ref_se(x, se_params["w1"], se_params["w2"])
    np.testing.assert_allclose(np.asarray(out_cbam), np.asarray(ref_cbam), rtol=3e-5, atol=3e-5)
    np.testing.assert_allclose(np.asarray(out_se), np.asarray(ref_se), rtol=3e-5, atol=3e-5)

    print("KERNEL_OK")
</pallas_src>

<mosaic_0001>
module attributes {stable_mosaic.version = 11 : i64} {
  func.func @kernel(%arg0: i32, %arg1: memref<2x32x256xf32, #tpu.memory_space<vmem>>, %arg2: memref<2x32xf32, #tpu.memory_space<vmem>>, %arg3: memref<32x2xf32, #tpu.memory_space<vmem>>, %arg4: memref<98x256xf32, #tpu.memory_space<vmem>>, %arg5: memref<2x32x256xf32, #tpu.memory_space<vmem>>, %arg6: memref<32x4xf32, #tpu.memory_space<vmem>>, %arg7: memref<2x256xf32, #tpu.memory_space<vmem>>, %arg8: memref<2x256xf32, #tpu.memory_space<vmem>>) attributes {dimension_semantics = [#tpu.dimension_semantics<parallel>], iteration_bounds = array<i64: 4>, scalar_prefetch = 0 : i64, scratch_operands = 3 : i64, tpu.core_type = #tpu.core_type<tc>, window_params = [{transform_indices = @transform_0, window_bounds = array<i64: 2, 32, 256>}, {pipeline_mode = #tpu.pipeline_mode<synchronous>, transform_indices = @transform_1, window_bounds = array<i64: 2, 32>}, {pipeline_mode = #tpu.pipeline_mode<synchronous>, transform_indices = @transform_2, window_bounds = array<i64: 32, 2>}, {pipeline_mode = #tpu.pipeline_mode<synchronous>, transform_indices = @transform_3, window_bounds = array<i64: 98, 256>}, {transform_indices = @transform_4, window_bounds = array<i64: 2, 32, 256>}]} {
    %c0 = arith.constant 0 : index
    %c0_0 = arith.constant 0 : index
    %c0_1 = arith.constant 0 : index
    %0 = vector.load %arg1[%c0, %c0_0, %c0_1] : memref<2x32x256xf32, #tpu.memory_space<vmem>>, vector<1x32x256xf32>
    %1 = vector.shape_cast %0 : vector<1x32x256xf32> to vector<32x256xf32>
    %cst = arith.constant dense<0.000000e+00> : vector<32xf32>
    %2 = vector.multi_reduction <add>, %1, %cst [1] : vector<32x256xf32> to vector<32xf32>
    %3 = vector.shape_cast %2 : vector<32xf32> to vector<32x1xf32>
    %cst_2 = arith.constant 2.560000e+02 : f32
    %4 = vector.broadcast %cst_2 : f32 to vector<32x1xf32>
    %5 = arith.divf %3, %4 : vector<32x1xf32>
    %c0_3 = arith.constant 0 : index
    %c0_4 = arith.constant 0 : index
    %6 = vector.load %arg6[%c0_3, %c0_4] : memref<32x4xf32, #tpu.memory_space<vmem>>, vector<32x1xf32>
    tpu.vector_store %arg6[%c0_3, %c0_4], %5 {strides = array<i32>} : memref<32x4xf32, #tpu.memory_space<vmem>>, vector<32x1xf32>,
    %cst_5 = arith.constant dense<0xFF800000> : vector<32xf32>
    %7 = vector.multi_reduction <maximumf>, %1, %cst_5 [1] : vector<32x256xf32> to vector<32xf32>
    %8 = vector.shape_cast %7 : vector<32xf32> to vector<32x1xf32>
    %c0_6 = arith.constant 0 : index
    %c2 = arith.constant 2 : index
    %9 = vector.load %arg6[%c0_6, %c2] : memref<32x4xf32, #tpu.memory_space<vmem>>, vector<32x1xf32>
    tpu.vector_store %arg6[%c0_6, %c2], %8 {strides = array<i32>} : memref<32x4xf32, #tpu.memory_space<vmem>>, vector<32x1xf32>,
    %c1 = arith.constant 1 : index
    %c0_7 = arith.constant 0 : index
    %c0_8 = arith.constant 0 : index
    %10 = vector.load %arg1[%c1, %c0_7, %c0_8] : memref<2x32x256xf32, #tpu.memory_space<vmem>>, vector<1x32x256xf32>
    %11 = vector.shape_cast %10 : vector<1x32x256xf32> to vector<32x256xf32>
    %cst_9 = arith.constant dense<0.000000e+00> : vector<32xf32>
    %12 = vector.multi_reduction <add>, %11, %cst_9 [1] : vector<32x256xf32> to vector<32xf32>
    %13 = vector.shape_cast %12 : vector<32xf32> to vector<32x1xf32>
    %cst_10 = arith.constant 2.560000e+02 : f32
    %14 = vector.broadcast %cst_10 : f32 to vector<32x1xf32>
    %15 = arith.divf %13, %14 : vector<32x1xf32>
    %c0_11 = arith.constant 0 : index
    %c1_12 = arith.constant 1 : index
    %16 = vector.load %arg6[%c0_11, %c1_12] : memref<32x4xf32, #tpu.memory_space<vmem>>, vector<32x1xf32>
    tpu.vector_store %arg6[%c0_11, %c1_12], %15 {strides = array<i32>} : memref<32x4xf32, #tpu.memory_space<vmem>>, vector<32x1xf32>,
    %cst_13 = arith.constant dense<0xFF800000> : vector<32xf32>
    %17 = vector.multi_reduction <maximumf>, %11, %cst_13 [1] : vector<32x256xf32> to vector<32xf32>
    %18 = vector.shape_cast %17 : vector<32xf32> to vector<32x1xf32>
    %c0_14 = arith.constant 0 : index
    %c3 = arith.constant 3 : index
    %19 = vector.load %arg6[%c0_14, %c3] : memref<32x4xf32, #tpu.memory_space<vmem>>, vector<32x1xf32>
    tpu.vector_store %arg6[%c0_14, %c3], %18 {strides = array<i32>} : memref<32x4xf32, #tpu.memory_space<vmem>>, vector<32x1xf32>,
    %c0_15 = arith.constant 0 : index
    %c0_16 = arith.constant 0 : index
    %20 = vector.load %arg6[%c0_15, %c0_16] : memref<32x4xf32, #tpu.memory_space<vmem>>, vector<32x4xf32>
    %c0_17 = arith.constant 0 : index
    %c0_18 = arith.constant 0 : index
    %21 = vector.load %arg2[%c0_17, %c0_18] : memref<2x32xf32, #tpu.memory_space<vmem>>, vector<2x32xf32>
    %cst_19 = arith.constant dense<0.000000e+00> : vector<2x4xf32>
    %22 = tpu.matmul %21, %20, %cst_19 {dimension_numbers = #tpu.dot_dimension_numbers<[1], [0], [0], [1], [0, 0, 1, 1], [], []>} : vector<2x32xf32>, vector<32x4xf32>, vector<2x4xf32> -> vector<2x4xf32>
    %cst_20 = arith.constant 0.000000e+00 : f32
    %23 = vector.broadcast %cst_20 : f32 to vector<2x4xf32>
    %24 = arith.maximumf %22, %23 : vector<2x4xf32>
    %c0_21 = arith.constant 0 : index
    %c0_22 = arith.constant 0 : index
    %25 = vector.load %arg3[%c0_21, %c0_22] : memref<32x2xf32, #tpu.memory_space<vmem>>, vector<32x2xf32>
    %cst_23 = arith.constant dense<0.000000e+00> : vector<32x4xf32>
    %26 = tpu.matmul %25, %24, %cst_23 {dimension_numbers = #tpu.dot_dimension_numbers<[1], [0], [0], [1], [0, 0, 1, 1], [], []>} : vector<32x2xf32>, vector<2x4xf32>, vector<32x4xf32> -> vector<32x4xf32>
    %27 = vector.extract_strided_slice %26 {offsets = [0, 0], sizes = [32, 2], strides = [1, 1]} : vector<32x4xf32> to vector<32x2xf32>
    %28 = vector.extract_strided_slice %26 {offsets = [0, 2], sizes = [32, 2], strides = [1, 1]} : vector<32x4xf32> to vector<32x2xf32>
    %29 = arith.addf %27, %28 : vector<32x2xf32>
    %30 = arith.negf %29 : vector<32x2xf32>
    %31 = math.exp %30 : vector<32x2xf32>
    %cst_24 = arith.constant 1.000000e+00 : f32
    %32 = vector.broadcast %cst_24 : f32 to vector<32x2xf32>
    %33 = arith.addf %32, %31 : vector<32x2xf32>
    %34 = arith.divf %32, %33 : vector<32x2xf32>
    %c0_25 = arith.constant 0 : index
    %c0_26 = arith.constant 0 : index
    %c0_27 = arith.constant 0 : index
    %35 = vector.load %arg1[%c0_25, %c0_26, %c0_27] : memref<2x32x256xf32, #tpu.memory_space<vmem>>, vector<1x32x256xf32>
    %36 = vector.shape_cast %35 : vector<1x32x256xf32> to vector<32x256xf32>
    %37 = vector.extract_strided_slice %34 {offsets = [0, 0], sizes = [32, 1], strides = [1, 1]} : vector<32x2xf32> to vector<32x1xf32>
    %38 = vector.broadcast %37 : vector<32x1xf32> to vector<32x256xf32>
    %39 = arith.mulf %36, %38 : vector<32x256xf32>
    %cst_28 = arith.constant dense<0.000000e+00> : vector<256xf32>
    %40 = vector.multi_reduction <add>, %39, %cst_28 [0] : vector<32x256xf32> to vector<256xf32>
    %41 = vector.shape_cast %40 : vector<256xf32> to vector<1x256xf32>
    %cst_29 = arith.constant 3.200000e+01 : f32
    %42 = vector.broadcast %cst_29 : f32 to vector<1x256xf32>
    %43 = arith.divf %41, %42 : vector<1x256xf32>
    %c0_30 = arith.constant 0 : index
    %c0_31 = arith.constant 0 : index
    %44 = vector.load %arg7[%c0_30, %c0_31] : memref<2x256xf32, #tpu.memory_space<vmem>>, vector<1x256xf32>
    tpu.vector_store %arg7[%c0_30, %c0_31], %43 {strides = array<i32>} : memref<2x256xf32, #tpu.memory_space<vmem>>, vector<1x256xf32>,
    %cst_32 = arith.constant dense<0xFF800000> : vector<256xf32>
    %45 = vector.multi_reduction <maximumf>, %39, %cst_32 [0] : vector<32x256xf32> to vector<256xf32>
    %46 = vector.shape_cast %45 : vector<256xf32> to vector<1x256xf32>
    %c0_33 = arith.constant 0 : index
    %c0_34 = arith.constant 0 : index
    %47 = vector.load %arg8[%c0_33, %c0_34] : memref<2x256xf32, #tpu.memory_space<vmem>>, vector<1x256xf32>
    tpu.vector_store %arg8[%c0_33, %c0_34], %46 {strides = array<i32>} : memref<2x256xf32, #tpu.memory_space<vmem>>, vector<1x256xf32>,
    %c1_35 = arith.constant 1 : index
    %c0_36 = arith.constant 0 : index
    %c0_37 = arith.constant 0 : index
    %48 = vector.load %arg1[%c1_35, %c0_36, %c0_37] : memref<2x32x256xf32, #tpu.memory_space<vmem>>, vector<1x32x256xf32>
    %49 = vector.shape_cast %48 : vector<1x32x256xf32> to vector<32x256xf32>
    %50 = vector.extract_strided_slice %34 {offsets = [0, 1], sizes = [32, 1], strides = [1, 1]} : vector<32x2xf32> to vector<32x1xf32>
    %51 = vector.broadcast %50 : vector<32x1xf32> to vector<32x256xf32>
    %52 = arith.mulf %49, %51 : vector<32x256xf32>
    %cst_38 = arith.constant dense<0.000000e+00> : vector<256xf32>
    %53 = vector.multi_reduction <add>, %52, %cst_38 [0] : vector<32x256xf32> to vector<256xf32>
    %54 = vector.shape_cast %53 : vector<256xf32> to vector<1x256xf32>
    %cst_39 = arith.constant 3.200000e+01 : f32
    %55 = vector.broadcast %cst_39 : f32 to vector<1x256xf32>
    %56 = arith.divf %54, %55 : vector<1x256xf32>
    %c1_40 = arith.constant 1 : index
    %c0_41 = arith.constant 0 : index
    %57 = vector.load %arg7[%c1_40, %c0_41] : memref<2x256xf32, #tpu.memory_space<vmem>>, vector<1x256xf32>
    tpu.vector_store %arg7[%c1_40, %c0_41], %56 {strides = array<i32>} : memref<2x256xf32, #tpu.memory_space<vmem>>, vector<1x256xf32>,
    %cst_42 = arith.constant dense<0xFF800000> : vector<256xf32>
    %58 = vector.multi_reduction <maximumf>, %52, %cst_42 [0] : vector<32x256xf32> to vector<256xf32>
    %59 = vector.shape_cast %58 : vector<256xf32> to vector<1x256xf32>
    %c1_43 = arith.constant 1 : index
    %c0_44 = arith.constant 0 : index
    %60 = vector.load %arg8[%c1_43, %c0_44] : memref<2x256xf32, #tpu.memory_space<vmem>>, vector<1x256xf32>
    tpu.vector_store %arg8[%c1_43, %c0_44], %59 {strides = array<i32>} : memref<2x256xf32, #tpu.memory_space<vmem>>, vector<1x256xf32>,
    %c0_45 = arith.constant 0 : index
    %c0_46 = arith.constant 0 : index
    %61 = vector.load %arg7[%c0_45, %c0_46] : memref<2x256xf32, #tpu.memory_space<vmem>>, vector<2x256xf32>
    %c0_47 = arith.constant 0 : index
    %c0_48 = arith.constant 0 : index
    %62 = vector.load %arg8[%c0_47, %c0_48] : memref<2x256xf32, #tpu.memory_space<vmem>>, vector<2x256xf32>
    %c3_i32 = arith.constant 3 : i32
    %63 = tpu.dynamic_rotate %61 by %c3_i32 dim 1 : vector<2x256xf32>, i32 -> vector<2x256xf32>
    %c2_i32 = arith.constant 2 : i32
    %64 = tpu.dynamic_rotate %61 by %c2_i32 dim 1 : vector<2x256xf32>, i32 -> vector<2x256xf32>
    %c1_i32 = arith.constant 1 : i32
    %65 = tpu.dynamic_rotate %61 by %c1_i32 dim 1 : vector<2x256xf32>, i32 -> vector<2x256xf32>
    %c255_i32 = arith.constant 255 : i32
    %66 = tpu.dynamic_rotate %61 by %c255_i32 dim 1 : vector<2x256xf32>, i32 -> vector<2x256xf32>
    %c254_i32 = arith.constant 254 : i32
    %67 = tpu.dynamic_rotate %61 by %c254_i32 dim 1 : vector<2x256xf32>, i32 -> vector<2x256xf32>
    %c253_i32 = arith.constant 253 : i32
    %68 = tpu.dynamic_rotate %61 by %c253_i32 dim 1 : vector<2x256xf32>, i32 -> vector<2x256xf32>
    %c3_i32_49 = arith.constant 3 : i32
    %69 = tpu.dynamic_rotate %62 by %c3_i32_49 dim 1 : vector<2x256xf32>, i32 -> vector<2x256xf32>
    %c2_i32_50 = arith.constant 2 : i32
    %70 = tpu.dynamic_rotate %62 by %c2_i32_50 dim 1 : vector<2x256xf32>, i32 -> vector<2x256xf32>
    %c1_i32_51 = arith.constant 1 : i32
    %71 = tpu.dynamic_rotate %62 by %c1_i32_51 dim 1 : vector<2x256xf32>, i32 -> vector<2x256xf32>
    %c255_i32_52 = arith.constant 255 : i32
    %72 = tpu.dynamic_rotate %62 by %c255_i32_52 dim 1 : vector<2x256xf32>, i32 -> vector<2x256xf32>
    %c254_i32_53 = arith.constant 254 : i32
    %73 = tpu.dynamic_rotate %62 by %c254_i32_53 dim 1 : vector<2x256xf32>, i32 -> vector<2x256xf32>
    %c253_i32_54 = arith.constant 253 : i32
    %74 = tpu.dynamic_rotate %62 by %c253_i32_54 dim 1 : vector<2x256xf32>, i32 -> vector<2x256xf32>
    %cst_55 = arith.constant 0.000000e+00 : f32
    %75 = vector.broadcast %cst_55 : f32 to vector<2x256xf32>
    %cst_56 = arith.constant 0.000000e+00 : f32
    %76 = vector.broadcast %cst_56 : f32 to vector<2x256xf32>
    %c0_57 = arith.constant 0 : index
    %c0_58 = arith.constant 0 : index
    %77 = vector.load %arg4[%c0_57, %c0_58] : memref<98x256xf32, #tpu.memory_space<vmem>>, vector<1x256xf32>
    %c49 = arith.constant 49 : index
    %c0_59 = arith.constant 0 : index
    %78 = vector.load %arg4[%c49, %c0_59] : memref<98x256xf32, #tpu.memory_space<vmem>>, vector<1x256xf32>
    %79 = vector.broadcast %77 : vector<1x256xf32> to vector<2x256xf32>
    %80 = arith.mulf %63, %79 : vector<2x256xf32>
    %81 = arith.addf %76, %80 : vector<2x256xf32>
    %82 = vector.broadcast %78 : vector<1x256xf32> to vector<2x256xf32>
    %83 = arith.mulf %69, %82 : vector<2x256xf32>
    %84 = arith.addf %81, %83 : vector<2x256xf32>
    %c1_60 = arith.constant 1 : index
    %c0_61 = arith.constant 0 : index
    %85 = vector.load %arg4[%c1_60, %c0_61] : memref<98x256xf32, #tpu.memory_space<vmem>>, vector<1x256xf32>
    %c50 = arith.constant 50 : index
    %c0_62 = arith.constant 0 : index
    %86 = vector.load %arg4[%c50, %c0_62] : memref<98x256xf32, #tpu.memory_space<vmem>>, vector<1x256xf32>
    %87 = vector.broadcast %85 : vector<1x256xf32> to vector<2x256xf32>
    %88 = arith.mulf %64, %87 : vector<2x256xf32>
    %89 = arith.addf %84, %88 : vector<2x256xf32>
    %90 = vector.broadcast %86 : vector<1x256xf32> to vector<2x256xf32>
    %91 = arith.mulf %70, %90 : vector<2x256xf32>
    %92 = arith.addf %89, %91 : vector<2x256xf32>
    %c2_63 = arith.constant 2 : index
    %c0_64 = arith.constant 0 : index
    %93 = vector.load %arg4[%c2_63, %c0_64] : memref<98x256xf32, #tpu.memory_space<vmem>>, vector<1x256xf32>
    %c51 = arith.constant 51 : index
    %c0_65 = arith.constant 0 : index
    %94 = vector.load %arg4[%c51, %c0_65] : memref<98x256xf32, #tpu.memory_space<vmem>>, vector<1x256xf32>
    %95 = vector.broadcast %93 : vector<1x256xf32> to vector<2x256xf32>
    %96 = arith.mulf %65, %95 : vector<2x256xf32>
    %97 = arith.addf %92, %96 : vector<2x256xf32>
    %98 = vector.broadcast %94 : vector<1x256xf32> to vector<2x256xf32>
    %99 = arith.mulf %71, %98 : vector<2x256xf32>
    %100 = arith.addf %97, %99 : vector<2x256xf32>
    %c3_66 = arith.constant 3 : index
    %c0_67 = arith.constant 0 : index
    %101 = vector.load %arg4[%c3_66, %c0_67] : memref<98x256xf32, #tpu.memory_space<vmem>>, vector<1x256xf32>
    %c52 = arith.constant 52 : index
    %c0_68 = arith.constant 0 : index
    %102 = vector.load %arg4[%c52, %c0_68] : memref<98x256xf32, #tpu.memory_space<vmem>>, vector<1x256xf32>
    %103 = vector.broadcast %101 : vector<1x256xf32> to vector<2x256xf32>
    %104 = arith.mulf %61, %103 : vector<2x256xf32>
    %105 = arith.addf %100, %104 : vector<2x256xf32>
    %106 = vector.broadcast %102 : vector<1x256xf32> to vector<2x256xf32>
    %107 = arith.mulf %62, %106 : vector<2x256xf32>
    %108 = arith.addf %105, %107 : vector<2x256xf32>
    %c4 = arith.constant 4 : index
    %c0_69 = arith.constant 0 : index
    %109 = vector.load %arg4[%c4, %c0_69] : memref<98x256xf32, #tpu.memory_space<vmem>>, vector<1x256xf32>
    %c53 = arith.constant 53 : index
    %c0_70 = arith.constant 0 : index
    %110 = vector.load %arg4[%c53, %c0_70] : memref<98x256xf32, #tpu.memory_space<vmem>>, vector<1x256xf32>
    %111 = vector.broadcast %109 : vector<1x256xf32> to vector<2x256xf32>
    %112 = arith.mulf %66, %111 : vector<2x256xf32>
    %113 = arith.addf %108, %112 : vector<2x256xf32>
    %114 = vector.broadcast %110 : vector<1x256xf32> to vector<2x256xf32>
    %115 = arith.mulf %72, %114 : vector<2x256xf32>
    %116 = arith.addf %113, %115 : vector<2x256xf32>
    %c5 = arith.constant 5 : index
    %c0_71 = arith.constant 0 : index
    %117 = vector.load %arg4[%c5, %c0_71] : memref<98x256xf32, #tpu.memory_space<vmem>>, vector<1x256xf32>
    %c54 = arith.constant 54 : index
    %c0_72 = arith.constant 0 : index
    %118 = vector.load %arg4[%c54, %c0_72] : memref<98x256xf32, #tpu.memory_space<vmem>>, vector<1x256xf32>
    %119 = vector.broadcast %117 : vector<1x256xf32> to vector<2x256xf32>
    %120 = arith.mulf %67, %119 : vector<2x256xf32>
    %121 = arith.addf %116, %120 : vector<2x256xf32>
    %122 = vector.broadcast %118 : vector<1x256xf32> to vector<2x256xf32>
    %123 = arith.mulf %73, %122 : vector<2x256xf32>
    %124 = arith.addf %121, %123 : vector<2x256xf32>
    %c6 = arith.constant 6 : index
    %c0_73 = arith.constant 0 : index
    %125 = vector.load %arg4[%c6, %c0_73] : memref<98x256xf32, #tpu.memory_space<vmem>>, vector<1x256xf32>
    %c55 = arith.constant 55 : index
    %c0_74 = arith.constant 0 : index
    %126 = vector.load %arg4[%c55, %c0_74] : memref<98x256xf32, #tpu.memory_space<vmem>>, vector<1x256xf32>
    %127 = vector.broadcast %125 : vector<1x256xf32> to vector<2x256xf32>
    %128 = arith.mulf %68, %127 : vector<2x256xf32>
    %129 = arith.addf %124, %128 : vector<2x256xf32>
    %130 = vector.broadcast %126 : vector<1x256xf32> to vector<2x256xf32>
    %131 = arith.mulf %74, %130 : vector<2x256xf32>
    %132 = arith.addf %129, %131 : vector<2x256xf32>
    %c48_i32 = arith.constant 48 : i32
    %133 = tpu.dynamic_rotate %132 by %c48_i32 dim 1 : vector<2x256xf32>, i32 -> vector<2x256xf32>
    %134 = arith.addf %75, %133 : vector<2x256xf32>
    %cst_75 = arith.constant 0.000000e+00 : f32
    %135 = vector.broadcast %cst_75 : f32 to vector<2x256xf32>
    %c7 = arith.constant 7 : index
    %c0_76 = arith.constant 0 : index
    %136 = vector.load %arg4[%c7, %c0_76] : memref<98x256xf32, #tpu.memory_space<vmem>>, vector<1x256xf32>
    %c56 = arith.constant 56 : index
    %c0_77 = arith.constant 0 : index
    %137 = vector.load %arg4[%c56, %c0_77] : memref<98x256xf32, #tpu.memory_space<vmem>>, vector<1x256xf32>
    %138 = vector.broadcast %136 : vector<1x256xf32> to vector<2x256xf32>
    %139 = arith.mulf %63, %138 : vector<2x256xf32>
    %140 = arith.addf %135, %139 : vector<2x256xf32>
    %141 = vector.broadcast %137 : vector<1x256xf32> to vector<2x256xf32>
    %142 = arith.mulf %69, %141 : vector<2x256xf32>
    %143 = arith.addf %140, %142 : vector<2x256xf32>
    %c8 = arith.constant 8 : index
    %c0_78 = arith.constant 0 : index
    %144 = vector.load %arg4[%c8, %c0_78] : memref<98x256xf32, #tpu.memory_space<vmem>>, vector<1x256xf32>
    %c57 = arith.constant 57 : index
    %c0_79 = arith.constant 0 : index
    %145 = vector.load %arg4[%c57, %c0_79] : memref<98x256xf32, #tpu.memory_space<vmem>>, vector<1x256xf32>
    %146 = vector.broadcast %144 : vector<1x256xf32> to vector<2x256xf32>
    %147 = arith.mulf %64, %146 : vector<2x256xf32>
    %148 = arith.addf %143, %147 : vector<2x256xf32>
    %149 = vector.broadcast %145 : vector<1x256xf32> to vector<2x256xf32>
    %150 = arith.mulf %70, %149 : vector<2x256xf32>
    %151 = arith.addf %148, %150 : vector<2x256xf32>
    %c9 = arith.constant 9 : index
    %c0_80 = arith.constant 0 : index
    %152 = vector.load %arg4[%c9, %c0_80] : memref<98x256xf32, #tpu.memory_space<vmem>>, vector<1x256xf32>
    %c58 = arith.constant 58 : index
    %c0_81 = arith.constant 0 : index
    %153 = vector.load %arg4[%c58, %c0_81] : memref<98x256xf32, #tpu.memory_space<vmem>>, vector<1x256xf32>
    %154 = vector.broadcast %152 : vector<1x256xf32> to vector<2x256xf32>
    %155 = arith.mulf %65, %154 : vector<2x256xf32>
    %156 = arith.addf %151, %155 : vector<2x256xf32>
    %157 = vector.broadcast %153 : vector<1x256xf32> to vector<2x256xf32>
    %158 = arith.mulf %71, %157 : vector<2x256xf32>
    %159 = arith.addf %156, %158 : vector<2x256xf32>
    %c10 = arith.constant 10 : index
    %c0_82 = arith.constant 0 : index
    %160 = vector.load %arg4[%c10, %c0_82] : memref<98x256xf32, #tpu.memory_space<vmem>>, vector<1x256xf32>
    %c59 = arith.constant 59 : index
    %c0_83 = arith.constant 0 : index
    %161 = vector.load %arg4[%c59, %c0_83] : memref<98x256xf32, #tpu.memory_space<vmem>>, vector<1x256xf32>
    %162 = vector.broadcast %160 : vector<1x256xf32> to vector<2x256xf32>
    %163 = arith.mulf %61, %162 : vector<2x256xf32>
    %164 = arith.addf %159, %163 : vector<2x256xf32>
    %165 = vector.broadcast %161 : vector<1x256xf32> to vector<2x256xf32>
    %166 = arith.mulf %62, %165 : vector<2x256xf32>
    %167 = arith.addf %164, %166 : vector<2x256xf32>
    %c11 = arith.constant 11 : index
    %c0_84 = arith.constant 0 : index
    %168 = vector.load %arg4[%c11, %c0_84] : memref<98x256xf32, #tpu.memory_space<vmem>>, vector<1x256xf32>
    %c60 = arith.constant 60 : index
    %c0_85 = arith.constant 0 : index
    %169 = vector.load %arg4[%c60, %c0_85] : memref<98x256xf32, #tpu.memory_space<vmem>>, vector<1x256xf32>
    %170 = vector.broadcast %168 : vector<1x256xf32> to vector<2x256xf32>
    %171 = arith.mulf %66, %170 : vector<2x256xf32>
    %172 = arith.addf %167, %171 : vector<2x256xf32>
    %173 = vector.broadcast %169 : vector<1x256xf32> to vector<2x256xf32>
    %174 = arith.mulf %72, %173 : vector<2x256xf32>
    %175 = arith.addf %172, %174 : vector<2x256xf32>
    %c12 = arith.constant 12 : index
    %c0_86 = arith.constant 0 : index
    %176 = vector.load %arg4[%c12, %c0_86] : memref<98x256xf32, #tpu.memory_space<vmem>>, vector<1x256xf32>
    %c61 = arith.constant 61 : index
    %c0_87 = arith.constant 0 : index
    %177 = vector.load %arg4[%c61, %c0_87] : memref<98x256xf32, #tpu.memory_space<vmem>>, vector<1x256xf32>
    %178 = vector.broadcast %176 : vector<1x256xf32> to vector<2x256xf32>
    %179 = arith.mulf %67, %178 : vector<2x256xf32>
    %180 = arith.addf %175, %179 : vector<2x256xf32>
    %181 = vector.broadcast %177 : vector<1x256xf32> to vector<2x256xf32>
    %182 = arith.mulf %73, %181 : vector<2x256xf32>
    %183 = arith.addf %180, %182 : vector<2x256xf32>
    %c13 = arith.constant 13 : index
    %c0_88 = arith.constant 0 : index
    %184 = vector.load %arg4[%c13, %c0_88] : memref<98x256xf32, #tpu.memory_space<vmem>>, vector<1x256xf32>
    %c62 = arith.constant 62 : index
    %c0_89 = arith.constant 0 : index
    %185 = vector.load %arg4[%c62, %c0_89] : memref<98x256xf32, #tpu.memory_space<vmem>>, vector<1x256xf32>
    %186 = vector.broadcast %184 : vector<1x256xf32> to vector<2x256xf32>
    %187 = arith.mulf %68, %186 : vector<2x256xf32>
    %188 = arith.addf %183, %187 : vector<2x256xf32>
    %189 = vector.broadcast %185 : vector<1x256xf32> to vector<2x256xf32>
    %190 = arith.mulf %74, %189 : vector<2x256xf32>
    %191 = arith.addf %188, %190 : vector<2x256xf32>
    %c32_i32 = arith.constant 32 : i32
    %192 = tpu.dynamic_rotate %191 by %c32_i32 dim 1 : vector<2x256xf32>, i32 -> vector<2x256xf32>
    %193 = arith.addf %134, %192 : vector<2x256xf32>
    %cst_90 = arith.constant 0.000000e+00 : f32
    %194 = vector.broadcast %cst_90 : f32 to vector<2x256xf32>
    %c14 = arith.constant 14 : index
    %c0_91 = arith.constant 0 : index
    %195 = vector.load %arg4[%c14, %c0_91] : memref<98x256xf32, #tpu.memory_space<vmem>>, vector<1x256xf32>
    %c63 = arith.constant 63 : index
    %c0_92 = arith.constant 0 : index
    %196 = vector.load %arg4[%c63, %c0_92] : memref<98x256xf32, #tpu.memory_space<vmem>>, vector<1x256xf32>
    %197 = vector.broadcast %195 : vector<1x256xf32> to vector<2x256xf32>
    %198 = arith.mulf %63, %197 : vector<2x256xf32>
    %199 = arith.addf %194, %198 : vector<2x256xf32>
    %200 = vector.broadcast %196 : vector<1x256xf32> to vector<2x256xf32>
    %201 = arith.mulf %69, %200 : vector<2x256xf32>
    %202 = arith.addf %199, %201 : vector<2x256xf32>
    %c15 = arith.constant 15 : index
    %c0_93 = arith.constant 0 : index
    %203 = vector.load %arg4[%c15, %c0_93] : memref<98x256xf32, #tpu.memory_space<vmem>>, vector<1x256xf32>
    %c64 = arith.constant 64 : index
    %c0_94 = arith.constant 0 : index
    %204 = vector.load %arg4[%c64, %c0_94] : memref<98x256xf32, #tpu.memory_space<vmem>>, vector<1x256xf32>
    %205 = vector.broadcast %203 : vector<1x256xf32> to vector<2x256xf32>
    %206 = arith.mulf %64, %205 : vector<2x256xf32>
    %207 = arith.addf %202, %206 : vector<2x256xf32>
    %208 = vector.broadcast %204 : vector<1x256xf32> to vector<2x256xf32>
    %209 = arith.mulf %70, %208 : vector<2x256xf32>
    %210 = arith.addf %207, %209 : vector<2x256xf32>
    %c16 = arith.constant 16 : index
    %c0_95 = arith.constant 0 : index
    %211 = vector.load %arg4[%c16, %c0_95] : memref<98x256xf32, #tpu.memory_space<vmem>>, vector<1x256xf32>
    %c65 = arith.constant 65 : index
    %c0_96 = arith.constant 0 : index
    %212 = vector.load %arg4[%c65, %c0_96] : memref<98x256xf32, #tpu.memory_space<vmem>>, vector<1x256xf32>
    %213 = vector.broadcast %211 : vector<1x256xf32> to vector<2x256xf32>
    %214 = arith.mulf %65, %213 : vector<2x256xf32>
    %215 = arith.addf %210, %214 : vector<2x256xf32>
    %216 = vector.broadcast %212 : vector<1x256xf32> to vector<2x256xf32>
    %217 = arith.mulf %71, %216 : vector<2x256xf32>
    %218 = arith.addf %215, %217 : vector<2x256xf32>
    %c17 = arith.constant 17 : index
    %c0_97 = arith.constant 0 : index
    %219 = vector.load %arg4[%c17, %c0_97] : memref<98x256xf32, #tpu.memory_space<vmem>>, vector<1x256xf32>
    %c66 = arith.constant 66 : index
    %c0_98 = arith.constant 0 : index
    %220 = vector.load %arg4[%c66, %c0_98] : memref<98x256xf32, #tpu.memory_space<vmem>>, vector<1x256xf32>
    %221 = vector.broadcast %219 : vector<1x256xf32> to vector<2x256xf32>
    %222 = arith.mulf %61, %221 : vector<2x256xf32>
    %223 = arith.addf %218, %222 : vector<2x256xf32>
    %224 = vector.broadcast %220 : vector<1x256xf32> to vector<2x256xf32>
    %225 = arith.mulf %62, %224 : vector<2x256xf32>
    %226 = arith.addf %223, %225 : vector<2x256xf32>
    %c18 = arith.constant 18 : index
    %c0_99 = arith.constant 0 : index
    %227 = vector.load %arg4[%c18, %c0_99] : memref<98x256xf32, #tpu.memory_space<vmem>>, vector<1x256xf32>
    %c67 = arith.constant 67 : index
    %c0_100 = arith.constant 0 : index
    %228 = vector.load %arg4[%c67, %c0_100] : memref<98x256xf32, #tpu.memory_space<vmem>>, vector<1x256xf32>
    %229 = vector.broadcast %227 : vector<1x256xf32> to vector<2x256xf32>
    %230 = arith.mulf %66, %229 : vector<2x256xf32>
    %231 = arith.addf %226, %230 : vector<2x256xf32>
    %232 = vector.broadcast %228 : vector<1x256xf32> to vector<2x256xf32>
    %233 = arith.mulf %72, %232 : vector<2x256xf32>
    %234 = arith.addf %231, %233 : vector<2x256xf32>
    %c19 = arith.constant 19 : index
    %c0_101 = arith.constant 0 : index
    %235 = vector.load %arg4[%c19, %c0_101] : memref<98x256xf32, #tpu.memory_space<vmem>>, vector<1x256xf32>
    %c68 = arith.constant 68 : index
    %c0_102 = arith.constant 0 : index
    %236 = vector.load %arg4[%c68, %c0_102] : memref<98x256xf32, #tpu.memory_space<vmem>>, vector<1x256xf32>
    %237 = vector.broadcast %235 : vector<1x256xf32> to vector<2x256xf32>
    %238 = arith.mulf %67, %237 : vector<2x256xf32>
    %239 = arith.addf %234, %238 : vector<2x256xf32>
    %240 = vector.broadcast %236 : vector<1x256xf32> to vector<2x256xf32>
    %241 = arith.mulf %73, %240 : vector<2x256xf32>
    %242 = arith.addf %239, %241 : vector<2x256xf32>
    %c20 = arith.constant 20 : index
    %c0_103 = arith.constant 0 : index
    %243 = vector.load %arg4[%c20, %c0_103] : memref<98x256xf32, #tpu.memory_space<vmem>>, vector<1x256xf32>
    %c69 = arith.constant 69 : index
    %c0_104 = arith.constant 0 : index
    %244 = vector.load %arg4[%c69, %c0_104] : memref<98x256xf32, #tpu.memory_space<vmem>>, vector<1x256xf32>
    %245 = vector.broadcast %243 : vector<1x256xf32> to vector<2x256xf32>
    %246 = arith.mulf %68, %245 : vector<2x256xf32>
    %247 = arith.addf %242, %246 : vector<2x256xf32>
    %248 = vector.broadcast %244 : vector<1x256xf32> to vector<2x256xf32>
    %249 = arith.mulf %74, %248 : vector<2x256xf32>
    %250 = arith.addf %247, %249 : vector<2x256xf32>
    %c16_i32 = arith.constant 16 : i32
    %251 = tpu.dynamic_rotate %250 by %c16_i32 dim 1 : vector<2x256xf32>, i32 -> vector<2x256xf32>
    %252 = arith.addf %193, %251 : vector<2x256xf32>
    %cst_105 = arith.constant 0.000000e+00 : f32
    %253 = vector.broadcast %cst_105 : f32 to vector<2x256xf32>
    %c21 = arith.constant 21 : index
    %c0_106 = arith.constant 0 : index
    %254 = vector.load %arg4[%c21, %c0_106] : memref<98x256xf32, #tpu.memory_space<vmem>>, vector<1x256xf32>
    %c70 = arith.constant 70 : index
    %c0_107 = arith.constant 0 : index
    %255 = vector.load %arg4[%c70, %c0_107] : memref<98x256xf32, #tpu.memory_space<vmem>>, vector<1x256xf32>
    %256 = vector.broadcast %254 : vector<1x256xf32> to vector<2x256xf32>
    %257 = arith.mulf %63, %256 : vector<2x256xf32>
    %258 = arith.addf %253, %257 : vector<2x256xf32>
    %259 = vector.broadcast %255 : vector<1x256xf32> to vector<2x256xf32>
    %260 = arith.mulf %69, %259 : vector<2x256xf32>
    %261 = arith.addf %258, %260 : vector<2x256xf32>
    %c22 = arith.constant 22 : index
    %c0_108 = arith.constant 0 : index
    %262 = vector.load %arg4[%c22, %c0_108] : memref<98x256xf32, #tpu.memory_space<vmem>>, vector<1x256xf32>
    %c71 = arith.constant 71 : index
    %c0_109 = arith.constant 0 : index
    %263 = vector.load %arg4[%c71, %c0_109] : memref<98x256xf32, #tpu.memory_space<vmem>>, vector<1x256xf32>
    %264 = vector.broadcast %262 : vector<1x256xf32> to vector<2x256xf32>
    %265 = arith.mulf %64, %264 : vector<2x256xf32>
    %266 = arith.addf %261, %265 : vector<2x256xf32>
    %267 = vector.broadcast %263 : vector<1x256xf32> to vector<2x256xf32>
    %268 = arith.mulf %70, %267 : vector<2x256xf32>
    %269 = arith.addf %266, %268 : vector<2x256xf32>
    %c23 = arith.constant 23 : index
    %c0_110 = arith.constant 0 : index
    %270 = vector.load %arg4[%c23, %c0_110] : memref<98x256xf32, #tpu.memory_space<vmem>>, vector<1x256xf32>
    %c72 = arith.constant 72 : index
    %c0_111 = arith.constant 0 : index
    %271 = vector.load %arg4[%c72, %c0_111] : memref<98x256xf32, #tpu.memory_space<vmem>>, vector<1x256xf32>
    %272 = vector.broadcast %270 : vector<1x256xf32> to vector<2x256xf32>
    %273 = arith.mulf %65, %272 : vector<2x256xf32>
    %274 = arith.addf %269, %273 : vector<2x256xf32>
    %275 = vector.broadcast %271 : vector<1x256xf32> to vector<2x256xf32>
    %276 = arith.mulf %71, %275 : vector<2x256xf32>
    %277 = arith.addf %274, %276 : vector<2x256xf32>
    %c24 = arith.constant 24 : index
    %c0_112 = arith.constant 0 : index
    %278 = vector.load %arg4[%c24, %c0_112] : memref<98x256xf32, #tpu.memory_space<vmem>>, vector<1x256xf32>
    %c73 = arith.constant 73 : index
    %c0_113 = arith.constant 0 : index
    %279 = vector.load %arg4[%c73, %c0_113] : memref<98x256xf32, #tpu.memory_space<vmem>>, vector<1x256xf32>
    %280 = vector.broadcast %278 : vector<1x256xf32> to vector<2x256xf32>
    %281 = arith.mulf %61, %280 : vector<2x256xf32>
    %282 = arith.addf %277, %281 : vector<2x256xf32>
    %283 = vector.broadcast %279 : vector<1x256xf32> to vector<2x256xf32>
    %284 = arith.mulf %62, %283 : vector<2x256xf32>
    %285 = arith.addf %282, %284 : vector<2x256xf32>
    %c25 = arith.constant 25 : index
    %c0_114 = arith.constant 0 : index
    %286 = vector.load %arg4[%c25, %c0_114] : memref<98x256xf32, #tpu.memory_space<vmem>>, vector<1x256xf32>
    %c74 = arith.constant 74 : index
    %c0_115 = arith.constant 0 : index
    %287 = vector.load %arg4[%c74, %c0_115] : memref<98x256xf32, #tpu.memory_space<vmem>>, vector<1x256xf32>
    %288 = vector.broadcast %286 : vector<1x256xf32> to vector<2x256xf32>
    %289 = arith.mulf %66, %288 : vector<2x256xf32>
    %290 = arith.addf %285, %289 : vector<2x256xf32>
    %291 = vector.broadcast %287 : vector<1x256xf32> to vector<2x256xf32>
    %292 = arith.mulf %72, %291 : vector<2x256xf32>
    %293 = arith.addf %290, %292 : vector<2x256xf32>
    %c26 = arith.constant 26 : index
    %c0_116 = arith.constant 0 : index
    %294 = vector.load %arg4[%c26, %c0_116] : memref<98x256xf32, #tpu.memory_space<vmem>>, vector<1x256xf32>
    %c75 = arith.constant 75 : index
    %c0_117 = arith.constant 0 : index
    %295 = vector.load %arg4[%c75, %c0_117] : memref<98x256xf32, #tpu.memory_space<vmem>>, vector<1x256xf32>
    %296 = vector.broadcast %294 : vector<1x256xf32> to vector<2x256xf32>
    %297 = arith.mulf %67, %296 : vector<2x256xf32>
    %298 = arith.addf %293, %297 : vector<2x256xf32>
    %299 = vector.broadcast %295 : vector<1x256xf32> to vector<2x256xf32>
    %300 = arith.mulf %73, %299 : vector<2x256xf32>
    %301 = arith.addf %298, %300 : vector<2x256xf32>
    %c27 = arith.constant 27 : index
    %c0_118 = arith.constant 0 : index
    %302 = vector.load %arg4[%c27, %c0_118] : memref<98x256xf32, #tpu.memory_space<vmem>>, vector<1x256xf32>
    %c76 = arith.constant 76 : index
    %c0_119 = arith.constant 0 : index
    %303 = vector.load %arg4[%c76, %c0_119] : memref<98x256xf32, #tpu.memory_space<vmem>>, vector<1x256xf32>
    %304 = vector.broadcast %302 : vector<1x256xf32> to vector<2x256xf32>
    %305 = arith.mulf %68, %304 : vector<2x256xf32>
    %306 = arith.addf %301, %305 : vector<2x256xf32>
    %307 = vector.broadcast %303 : vector<1x256xf32> to vector<2x256xf32>
    %308 = arith.mulf %74, %307 : vector<2x256xf32>
    %309 = arith.addf %306, %308 : vector<2x256xf32>
    %310 = arith.addf %252, %309 : vector<2x256xf32>
    %cst_120 = arith.constant 0.000000e+00 : f32
    %311 = vector.broadcast %cst_120 : f32 to vector<2x256xf32>
    %c28 = arith.constant 28 : index
    %c0_121 = arith.constant 0 : index
    %312 = vector.load %arg4[%c28, %c0_121] : memref<98x256xf32, #tpu.memory_space<vmem>>, vector<1x256xf32>
    %c77 = arith.constant 77 : index
    %c0_122 = arith.constant 0 : index
    %313 = vector.load %arg4[%c77, %c0_122] : memref<98x256xf32, #tpu.memory_space<vmem>>, vector<1x256xf32>
    %314 = vector.broadcast %312 : vector<1x256xf32> to vector<2x256xf32>
    %315 = arith.mulf %63, %314 : vector<2x256xf32>
    %316 = arith.addf %311, %315 : vector<2x256xf32>
    %317 = vector.broadcast %313 : vector<1x256xf32> to vector<2x256xf32>
    %318 = arith.mulf %69, %317 : vector<2x256xf32>
    %319 = arith.addf %316, %318 : vector<2x256xf32>
    %c29 = arith.constant 29 : index
    %c0_123 = arith.constant 0 : index
    %320 = vector.load %arg4[%c29, %c0_123] : memref<98x256xf32, #tpu.memory_space<vmem>>, vector<1x256xf32>
    %c78 = arith.constant 78 : index
    %c0_124 = arith.constant 0 : index
    %321 = vector.load %arg4[%c78, %c0_124] : memref<98x256xf32, #tpu.memory_space<vmem>>, vector<1x256xf32>
    %322 = vector.broadcast %320 : vector<1x256xf32> to vector<2x256xf32>
    %323 = arith.mulf %64, %322 : vector<2x256xf32>
    %324 = arith.addf %319, %323 : vector<2x256xf32>
    %325 = vector.broadcast %321 : vector<1x256xf32> to vector<2x256xf32>
    %326 = arith.mulf %70, %325 : vector<2x256xf32>
    %327 = arith.addf %324, %326 : vector<2x256xf32>
    %c30 = arith.constant 30 : index
    %c0_125 = arith.constant 0 : index
    %328 = vector.load %arg4[%c30, %c0_125] : memref<98x256xf32, #tpu.memory_space<vmem>>, vector<1x256xf32>
    %c79 = arith.constant 79 : index
    %c0_126 = arith.constant 0 : index
    %329 = vector.load %arg4[%c79, %c0_126] : memref<98x256xf32, #tpu.memory_space<vmem>>, vector<1x256xf32>
    %330 = vector.broadcast %328 : vector<1x256xf32> to vector<2x256xf32>
    %331 = arith.mulf %65, %330 : vector<2x256xf32>
    %332 = arith.addf %327, %331 : vector<2x256xf32>
    %333 = vector.broadcast %329 : vector<1x256xf32> to vector<2x256xf32>
    %334 = arith.mulf %71, %333 : vector<2x256xf32>
    %335 = arith.addf %332, %334 : vector<2x256xf32>
    %c31 = arith.constant 31 : index
    %c0_127 = arith.constant 0 : index
    %336 = vector.load %arg4[%c31, %c0_127] : memref<98x256xf32, #tpu.memory_space<vmem>>, vector<1x256xf32>
    %c80 = arith.constant 80 : index
    %c0_128 = arith.constant 0 : index
    %337 = vector.load %arg4[%c80, %c0_128] : memref<98x256xf32, #tpu.memory_space<vmem>>, vector<1x256xf32>
    %338 = vector.broadcast %336 : vector<1x256xf32> to vector<2x256xf32>
    %339 = arith.mulf %61, %338 : vector<2x256xf32>
    %340 = arith.addf %335, %339 : vector<2x256xf32>
    %341 = vector.broadcast %337 : vector<1x256xf32> to vector<2x256xf32>
    %342 = arith.mulf %62, %341 : vector<2x256xf32>
    %343 = arith.addf %340, %342 : vector<2x256xf32>
    %c32 = arith.constant 32 : index
    %c0_129 = arith.constant 0 : index
    %344 = vector.load %arg4[%c32, %c0_129] : memref<98x256xf32, #tpu.memory_space<vmem>>, vector<1x256xf32>
    %c81 = arith.constant 81 : index
    %c0_130 = arith.constant 0 : index
    %345 = vector.load %arg4[%c81, %c0_130] : memref<98x256xf32, #tpu.memory_space<vmem>>, vector<1x256xf32>
    %346 = vector.broadcast %344 : vector<1x256xf32> to vector<2x256xf32>
    %347 = arith.mulf %66, %346 : vector<2x256xf32>
    %348 = arith.addf %343, %347 : vector<2x256xf32>
    %349 = vector.broadcast %345 : vector<1x256xf32> to vector<2x256xf32>
    %350 = arith.mulf %72, %349 : vector<2x256xf32>
    %351 = arith.addf %348, %350 : vector<2x256xf32>
    %c33 = arith.constant 33 : index
    %c0_131 = arith.constant 0 : index
    %352 = vector.load %arg4[%c33, %c0_131] : memref<98x256xf32, #tpu.memory_space<vmem>>, vector<1x256xf32>
    %c82 = arith.constant 82 : index
    %c0_132 = arith.constant 0 : index
    %353 = vector.load %arg4[%c82, %c0_132] : memref<98x256xf32, #tpu.memory_space<vmem>>, vector<1x256xf32>
    %354 = vector.broadcast %352 : vector<1x256xf32> to vector<2x256xf32>
    %355 = arith.mulf %67, %354 : vector<2x256xf32>
    %356 = arith.addf %351, %355 : vector<2x256xf32>
    %357 = vector.broadcast %353 : vector<1x256xf32> to vector<2x256xf32>
    %358 = arith.mulf %73, %357 : vector<2x256xf32>
    %359 = arith.addf %356, %358 : vector<2x256xf32>
    %c34 = arith.constant 34 : index
    %c0_133 = arith.constant 0 : index
    %360 = vector.load %arg4[%c34, %c0_133] : memref<98x256xf32, #tpu.memory_space<vmem>>, vector<1x256xf32>
    %c83 = arith.constant 83 : index
    %c0_134 = arith.constant 0 : index
    %361 = vector.load %arg4[%c83, %c0_134] : memref<98x256xf32, #tpu.memory_space<vmem>>, vector<1x256xf32>
    %362 = vector.broadcast %360 : vector<1x256xf32> to vector<2x256xf32>
    %363 = arith.mulf %68, %362 : vector<2x256xf32>
    %364 = arith.addf %359, %363 : vector<2x256xf32>
    %365 = vector.broadcast %361 : vector<1x256xf32> to vector<2x256xf32>
    %366 = arith.mulf %74, %365 : vector<2x256xf32>
    %367 = arith.addf %364, %366 : vector<2x256xf32>
    %c240_i32 = arith.constant 240 : i32
    %368 = tpu.dynamic_rotate %367 by %c240_i32 dim 1 : vector<2x256xf32>, i32 -> vector<2x256xf32>
    %369 = arith.addf %310, %368 : vector<2x256xf32>
    %cst_135 = arith.constant 0.000000e+00 : f32
    %370 = vector.broadcast %cst_135 : f32 to vector<2x256xf32>
    %c35 = arith.constant 35 : index
    %c0_136 = arith.constant 0 : index
    %371 = vector.load %arg4[%c35, %c0_136] : memref<98x256xf32, #tpu.memory_space<vmem>>, vector<1x256xf32>
    %c84 = arith.constant 84 : index
    %c0_137 = arith.constant 0 : index
    %372 = vector.load %arg4[%c84, %c0_137] : memref<98x256xf32, #tpu.memory_space<vmem>>, vector<1x256xf32>
    %373 = vector.broadcast %371 : vector<1x256xf32> to vector<2x256xf32>
    %374 = arith.mulf %63, %373 : vector<2x256xf32>
    %375 = arith.addf %370, %374 : vector<2x256xf32>
    %376 = vector.broadcast %372 : vector<1x256xf32> to vector<2x256xf32>
    %377 = arith.mulf %69, %376 : vector<2x256xf32>
    %378 = arith.addf %375, %377 : vector<2x256xf32>
    %c36 = arith.constant 36 : index
    %c0_138 = arith.constant 0 : index
    %379 = vector.load %arg4[%c36, %c0_138] : memref<98x256xf32, #tpu.memory_space<vmem>>, vector<1x256xf32>
    %c85 = arith.constant 85 : index
    %c0_139 = arith.constant 0 : index
    %380 = vector.load %arg4[%c85, %c0_139] : memref<98x256xf32, #tpu.memory_space<vmem>>, vector<1x256xf32>
    %381 = vector.broadcast %379 : vector<1x256xf32> to vector<2x256xf32>
    %382 = arith.mulf %64, %381 : vector<2x256xf32>
    %383 = arith.addf %378, %382 : vector<2x256xf32>
    %384 = vector.broadcast %380 : vector<1x256xf32> to vector<2x256xf32>
    %385 = arith.mulf %70, %384 : vector<2x256xf32>
    %386 = arith.addf %383, %385 : vector<2x256xf32>
    %c37 = arith.constant 37 : index
    %c0_140 = arith.constant 0 : index
    %387 = vector.load %arg4[%c37, %c0_140] : memref<98x256xf32, #tpu.memory_space<vmem>>, vector<1x256xf32>
    %c86 = arith.constant 86 : index
    %c0_141 = arith.constant 0 : index
    %388 = vector.load %arg4[%c86, %c0_141] : memref<98x256xf32, #tpu.memory_space<vmem>>, vector<1x256xf32>
    %389 = vector.broadcast %387 : vector<1x256xf32> to vector<2x256xf32>
    %390 = arith.mulf %65, %389 : vector<2x256xf32>
    %391 = arith.addf %386, %390 : vector<2x256xf32>
    %392 = vector.broadcast %388 : vector<1x256xf32> to vector<2x256xf32>
    %393 = arith.mulf %71, %392 : vector<2x256xf32>
    %394 = arith.addf %391, %393 : vector<2x256xf32>
    %c38 = arith.constant 38 : index
    %c0_142 = arith.constant 0 : index
    %395 = vector.load %arg4[%c38, %c0_142] : memref<98x256xf32, #tpu.memory_space<vmem>>, vector<1x256xf32>
    %c87 = arith.constant 87 : index
    %c0_143 = arith.constant 0 : index
    %396 = vector.load %arg4[%c87, %c0_143] : memref<98x256xf32, #tpu.memory_space<vmem>>, vector<1x256xf32>
    %397 = vector.broadcast %395 : vector<1x256xf32> to vector<2x256xf32>
    %398 = arith.mulf %61, %397 : vector<2x256xf32>
    %399 = arith.addf %394, %398 : vector<2x256xf32>
    %400 = vector.broadcast %396 : vector<1x256xf32> to vector<2x256xf32>
    %401 = arith.mulf %62, %400 : vector<2x256xf32>
    %402 = arith.addf %399, %401 : vector<2x256xf32>
    %c39 = arith.constant 39 : index
    %c0_144 = arith.constant 0 : index
    %403 = vector.load %arg4[%c39, %c0_144] : memref<98x256xf32, #tpu.memory_space<vmem>>, vector<1x256xf32>
    %c88 = arith.constant 88 : index
    %c0_145 = arith.constant 0 : index
    %404 = vector.load %arg4[%c88, %c0_145] : memref<98x256xf32, #tpu.memory_space<vmem>>, vector<1x256xf32>
    %405 = vector.broadcast %403 : vector<1x256xf32> to vector<2x256xf32>
    %406 = arith.mulf %66, %405 : vector<2x256xf32>
    %407 = arith.addf %402, %406 : vector<2x256xf32>
    %408 = vector.broadcast %404 : vector<1x256xf32> to vector<2x256xf32>
    %409 = arith.mulf %72, %408 : vector<2x256xf32>
    %410 = arith.addf %407, %409 : vector<2x256xf32>
    %c40 = arith.constant 40 : index
    %c0_146 = arith.constant 0 : index
    %411 = vector.load %arg4[%c40, %c0_146] : memref<98x256xf32, #tpu.memory_space<vmem>>, vector<1x256xf32>
    %c89 = arith.constant 89 : index
    %c0_147 = arith.constant 0 : index
    %412 = vector.load %arg4[%c89, %c0_147] : memref<98x256xf32, #tpu.memory_space<vmem>>, vector<1x256xf32>
    %413 = vector.broadcast %411 : vector<1x256xf32> to vector<2x256xf32>
    %414 = arith.mulf %67, %413 : vector<2x256xf32>
    %415 = arith.addf %410, %414 : vector<2x256xf32>
    %416 = vector.broadcast %412 : vector<1x256xf32> to vector<2x256xf32>
    %417 = arith.mulf %73, %416 : vector<2x256xf32>
    %418 = arith.addf %415, %417 : vector<2x256xf32>
    %c41 = arith.constant 41 : index
    %c0_148 = arith.constant 0 : index
    %419 = vector.load %arg4[%c41, %c0_148] : memref<98x256xf32, #tpu.memory_space<vmem>>, vector<1x256xf32>
    %c90 = arith.constant 90 : index
    %c0_149 = arith.constant 0 : index
    %420 = vector.load %arg4[%c90, %c0_149] : memref<98x256xf32, #tpu.memory_space<vmem>>, vector<1x256xf32>
    %421 = vector.broadcast %419 : vector<1x256xf32> to vector<2x256xf32>
    %422 = arith.mulf %68, %421 : vector<2x256xf32>
    %423 = arith.addf %418, %422 : vector<2x256xf32>
    %424 = vector.broadcast %420 : vector<1x256xf32> to vector<2x256xf32>
    %425 = arith.mulf %74, %424 : vector<2x256xf32>
    %426 = arith.addf %423, %425 : vector<2x256xf32>
    %c224_i32 = arith.constant 224 : i32
    %427 = tpu.dynamic_rotate %426 by %c224_i32 dim 1 : vector<2x256xf32>, i32 -> vector<2x256xf32>
    %428 = arith.addf %369, %427 : vector<2x256xf32>
    %cst_150 = arith.constant 0.000000e+00 : f32
    %429 = vector.broadcast %cst_150 : f32 to vector<2x256xf32>
    %c42 = arith.constant 42 : index
    %c0_151 = arith.constant 0 : index
    %430 = vector.load %arg4[%c42, %c0_151] : memref<98x256xf32, #tpu.memory_space<vmem>>, vector<1x256xf32>
    %c91 = arith.constant 91 : index
    %c0_152 = arith.constant 0 : index
    %431 = vector.load %arg4[%c91, %c0_152] : memref<98x256xf32, #tpu.memory_space<vmem>>, vector<1x256xf32>
    %432 = vector.broadcast %430 : vector<1x256xf32> to vector<2x256xf32>
    %433 = arith.mulf %63, %432 : vector<2x256xf32>
    %434 = arith.addf %429, %433 : vector<2x256xf32>
    %435 = vector.broadcast %431 : vector<1x256xf32> to vector<2x256xf32>
    %436 = arith.mulf %69, %435 : vector<2x256xf32>
    %437 = arith.addf %434, %436 : vector<2x256xf32>
    %c43 = arith.constant 43 : index
    %c0_153 = arith.constant 0 : index
    %438 = vector.load %arg4[%c43, %c0_153] : memref<98x256xf32, #tpu.memory_space<vmem>>, vector<1x256xf32>
    %c92 = arith.constant 92 : index
    %c0_154 = arith.constant 0 : index
    %439 = vector.load %arg4[%c92, %c0_154] : memref<98x256xf32, #tpu.memory_space<vmem>>, vector<1x256xf32>
    %440 = vector.broadcast %438 : vector<1x256xf32> to vector<2x256xf32>
    %441 = arith.mulf %64, %440 : vector<2x256xf32>
    %442 = arith.addf %437, %441 : vector<2x256xf32>
    %443 = vector.broadcast %439 : vector<1x256xf32> to vector<2x256xf32>
    %444 = arith.mulf %70, %443 : vector<2x256xf32>
    %445 = arith.addf %442, %444 : vector<2x256xf32>
    %c44 = arith.constant 44 : index
    %c0_155 = arith.constant 0 : index
    %446 = vector.load %arg4[%c44, %c0_155] : memref<98x256xf32, #tpu.memory_space<vmem>>, vector<1x256xf32>
    %c93 = arith.constant 93 : index
    %c0_156 = arith.constant 0 : index
    %447 = vector.load %arg4[%c93, %c0_156] : memref<98x256xf32, #tpu.memory_space<vmem>>, vector<1x256xf32>
    %448 = vector.broadcast %446 : vector<1x256xf32> to vector<2x256xf32>
    %449 = arith.mulf %65, %448 : vector<2x256xf32>
    %450 = arith.addf %445, %449 : vector<2x256xf32>
    %451 = vector.broadcast %447 : vector<1x256xf32> to vector<2x256xf32>
    %452 = arith.mulf %71, %451 : vector<2x256xf32>
    %453 = arith.addf %450, %452 : vector<2x256xf32>
    %c45 = arith.constant 45 : index
    %c0_157 = arith.constant 0 : index
    %454 = vector.load %arg4[%c45, %c0_157] : memref<98x256xf32, #tpu.memory_space<vmem>>, vector<1x256xf32>
    %c94 = arith.constant 94 : index
    %c0_158 = arith.constant 0 : index
    %455 = vector.load %arg4[%c94, %c0_158] : memref<98x256xf32, #tpu.memory_space<vmem>>, vector<1x256xf32>
    %456 = vector.broadcast %454 : vector<1x256xf32> to vector<2x256xf32>
    %457 = arith.mulf %61, %456 : vector<2x256xf32>
    %458 = arith.addf %453, %457 : vector<2x256xf32>
    %459 = vector.broadcast %455 : vector<1x256xf32> to vector<2x256xf32>
    %460 = arith.mulf %62, %459 : vector<2x256xf32>
    %461 = arith.addf %458, %460 : vector<2x256xf32>
    %c46 = arith.constant 46 : index
    %c0_159 = arith.constant 0 : index
    %462 = vector.load %arg4[%c46, %c0_159] : memref<98x256xf32, #tpu.memory_space<vmem>>, vector<1x256xf32>
    %c95 = arith.constant 95 : index
    %c0_160 = arith.constant 0 : index
    %463 = vector.load %arg4[%c95, %c0_160] : memref<98x256xf32, #tpu.memory_space<vmem>>, vector<1x256xf32>
    %464 = vector.broadcast %462 : vector<1x256xf32> to vector<2x256xf32>
    %465 = arith.mulf %66, %464 : vector<2x256xf32>
    %466 = arith.addf %461, %465 : vector<2x256xf32>
    %467 = vector.broadcast %463 : vector<1x256xf32> to vector<2x256xf32>
    %468 = arith.mulf %72, %467 : vector<2x256xf32>
    %469 = arith.addf %466, %468 : vector<2x256xf32>
    %c47 = arith.constant 47 : index
    %c0_161 = arith.constant 0 : index
    %470 = vector.load %arg4[%c47, %c0_161] : memref<98x256xf32, #tpu.memory_space<vmem>>, vector<1x256xf32>
    %c96 = arith.constant 96 : index
    %c0_162 = arith.constant 0 : index
    %471 = vector.load %arg4[%c96, %c0_162] : memref<98x256xf32, #tpu.memory_space<vmem>>, vector<1x256xf32>
    %472 = vector.broadcast %470 : vector<1x256xf32> to vector<2x256xf32>
    %473 = arith.mulf %67, %472 : vector<2x256xf32>
    %474 = arith.addf %469, %473 : vector<2x256xf32>
    %475 = vector.broadcast %471 : vector<1x256xf32> to vector<2x256xf32>
    %476 = arith.mulf %73, %475 : vector<2x256xf32>
    %477 = arith.addf %474, %476 : vector<2x256xf32>
    %c48 = arith.constant 48 : index
    %c0_163 = arith.constant 0 : index
    %478 = vector.load %arg4[%c48, %c0_163] : memref<98x256xf32, #tpu.memory_space<vmem>>, vector<1x256xf32>
    %c97 = arith.constant 97 : index
    %c0_164 = arith.constant 0 : index
    %479 = vector.load %arg4[%c97, %c0_164] : memref<98x256xf32, #tpu.memory_space<vmem>>, vector<1x256xf32>
    %480 = vector.broadcast %478 : vector<1x256xf32> to vector<2x256xf32>
    %481 = arith.mulf %68, %480 : vector<2x256xf32>
    %482 = arith.addf %477, %481 : vector<2x256xf32>
    %483 = vector.broadcast %479 : vector<1x256xf32> to vector<2x256xf32>
    %484 = arith.mulf %74, %483 : vector<2x256xf32>
    %485 = arith.addf %482, %484 : vector<2x256xf32>
    %c208_i32 = arith.constant 208 : i32
    %486 = tpu.dynamic_rotate %485 by %c208_i32 dim 1 : vector<2x256xf32>, i32 -> vector<2x256xf32>
    %487 = arith.addf %428, %486 : vector<2x256xf32>
    %488 = arith.negf %487 : vector<2x256xf32>
    %489 = math.exp %488 : vector<2x256xf32>
    %cst_165 = arith.constant 1.000000e+00 : f32
    %490 = vector.broadcast %cst_165 : f32 to vector<2x256xf32>
    %491 = arith.addf %490, %489 : vector<2x256xf32>
    %492 = arith.divf %490, %491 : vector<2x256xf32>
    %c0_166 = arith.constant 0 : index
    %c0_167 = arith.constant 0 : index
    %c0_168 = arith.constant 0 : index
    %493 = vector.load %arg1[%c0_166, %c0_167, %c0_168] : memref<2x32x256xf32, #tpu.memory_space<vmem>>, vector<1x32x256xf32>
    %494 = vector.shape_cast %493 : vector<1x32x256xf32> to vector<32x256xf32>
    %495 = vector.extract_strided_slice %34 {offsets = [0, 0], sizes = [32, 1], strides = [1, 1]} : vector<32x2xf32> to vector<32x1xf32>
    %496 = vector.broadcast %495 : vector<32x1xf32> to vector<32x256xf32>
    %497 = arith.mulf %494, %496 : vector<32x256xf32>
    %498 = vector.extract_strided_slice %492 {offsets = [0, 0], sizes = [1, 256], strides = [1, 1]} : vector<2x256xf32> to vector<1x256xf32>
    %499 = vector.broadcast %498 : vector<1x256xf32> to vector<32x256xf32>
    %500 = arith.mulf %497, %499 : vector<32x256xf32>
    %c0_169 = arith.constant 0 : index
    %c0_170 = arith.constant 0 : index
    %c0_171 = arith.constant 0 : index
    %501 = vector.load %arg5[%c0_169, %c0_170, %c0_171] : memref<2x32x256xf32, #tpu.memory_space<vmem>>, vector<1x32x256xf32>
    %502 = vector.shape_cast %501 : vector<1x32x256xf32> to vector<32x256xf32>
    %503 = vector.shape_cast %500 : vector<32x256xf32> to vector<1x32x256xf32>
    tpu.vector_store %arg5[%c0_169, %c0_170, %c0_171], %503 {strides = array<i32>} : memref<2x32x256xf32, #tpu.memory_space<vmem>>, vector<1x32x256xf32>,
    %c1_172 = arith.constant 1 : index
    %c0_173 = arith.constant 0 : index
    %c0_174 = arith.constant 0 : index
    %504 = vector.load %arg1[%c1_172, %c0_173, %c0_174] : memref<2x32x256xf32, #tpu.memory_space<vmem>>, vector<1x32x256xf32>
    %505 = vector.shape_cast %504 : vector<1x32x256xf32> to vector<32x256xf32>
    %506 = vector.extract_strided_slice %34 {offsets = [0, 1], sizes = [32, 1], strides = [1, 1]} : vector<32x2xf32> to vector<32x1xf32>
    %507 = vector.broadcast %506 : vector<32x1xf32> to vector<32x256xf32>
    %508 = arith.mulf %505, %507 : vector<32x256xf32>
    %509 = vector.extract_strided_slice %492 {offsets = [1, 0], sizes = [1, 256], strides = [1, 1]} : vector<2x256xf32> to vector<1x256xf32>
    %510 = vector.broadcast %509 : vector<1x256xf32> to vector<32x256xf32>
    %511 = arith.mulf %508, %510 : vector<32x256xf32>
    %c1_175 = arith.constant 1 : index
    %c0_176 = arith.constant 0 : index
    %c0_177 = arith.constant 0 : index
    %512 = vector.load %arg5[%c1_175, %c0_176, %c0_177] : memref<2x32x256xf32, #tpu.memory_space<vmem>>, vector<1x32x256xf32>
    %513 = vector.shape_cast %512 : vector<1x32x256xf32> to vector<32x256xf32>
    %514 = vector.shape_cast %511 : vector<32x256xf32> to vector<1x32x256xf32>
    tpu.vector_store %arg5[%c1_175, %c0_176, %c0_177], %514 {strides = array<i32>} : memref<2x32x256xf32, #tpu.memory_space<vmem>>, vector<1x32x256xf32>,
    return
  }
  func.func @transform_0(%arg0: i32) -> (i32, i32, i32) {
    %c0_i32 = arith.constant 0 : i32
    %c0_i32_0 = arith.constant 0 : i32
    %c0_i32_1 = arith.constant 0 : i32
    return %arg0, %c0_i32, %c0_i32_0 : i32, i32, i32
  }
  func.func @transform_1(%arg0: i32) -> (i32, i32) {
    %c0_i32 = arith.constant 0 : i32
    %c0_i32_0 = arith.constant 0 : i32
    %c0_i32_1 = arith.constant 0 : i32
    return %c0_i32, %c0_i32_0 : i32, i32
  }
  func.func @transform_2(%arg0: i32) -> (i32, i32) {
    %c0_i32 = arith.constant 0 : i32
    %c0_i32_0 = arith.constant 0 : i32
    %c0_i32_1 = arith.constant 0 : i32
    return %c0_i32, %c0_i32_0 : i32, i32
  }
  func.func @transform_3(%arg0: i32) -> (i32, i32) {
    %c0_i32 = arith.constant 0 : i32
    %c0_i32_0 = arith.constant 0 : i32
    %c0_i32_1 = arith.constant 0 : i32
    return %c0_i32, %c0_i32_0 : i32, i32
  }
  func.func @transform_4(%arg0: i32) -> (i32, i32, i32) {
    %c0_i32 = arith.constant 0 : i32
    %c0_i32_0 = arith.constant 0 : i32
    %c0_i32_1 = arith.constant 0 : i32
    return %arg0, %c0_i32, %c0_i32_0 : i32, i32, i32
  }
}

</mosaic_0001>

<bundles_post_ra>
// kernel: tpu_custom_call.1
= control target key start
LH: loop header
LB: loop body
LE: loop exit
PB: predicated region body
PF: predicated region fallthrough
CT: control target
= control target key end

     0   :  { %9 = vsyncpa [#allocation6], 0  ;;  %s5562_s0 = inlined_call_operand.hbm [shape: f32[8,32,256], index: 0, kind: input, shape index: {}]   ;;  %s5563_s1 = inlined_call_operand.vmem [shape: f32[2,32], index: 1, kind: input, shape index: {}]   ;;  %s5564_s2 = inlined_call_operand.vmem [shape: f32[32,2], index: 2, kind: input, shape index: {}]   ;;  %s5565_s3 = inlined_call_operand.hbm [shape: f32[98,256], index: 3, kind: input, shape index: {}]   ;;  %s5566_s4 = inlined_call_operand.hbm [shape: f32[8,32,256], index: 4, kind: output, shape index: {}]  }
   0x1   :  { %11 = vsyncpa [#allocation6 + $0x1], 0 }
   0x2   :  { %12 = vsyncpa [#allocation9], 0 }
   0x3   :  { %13 = vsyncpa [#allocation7], 0 }
   0x4   :  { %15 = vsyncpa [#allocation7 + $0x1], 0  ;;  %s3438_s15 = smov 0   ;;  %s3440_s16 = smov 0  }
   0x5   :  { %s3442_s17 = smov 0   ;;  %s3444_s18 = smov 0  }
   0x6 LB: > { %s3459_s19 = sadd.s32 4294967295, %s3386_s18   ;;  %s3039_s20 = sadd.s32 4294967294, %s3386_s18   ;;  %s3386_s18 = sphi %s3444_s18, %s6114_s18   ;;  %s3382_s17 = sphi %s3442_s17, %s6113_s17   ;;  %s3378_s16 = sphi %s3440_s16, %s6112_s16   ;;  %s3374_s15 = sphi %s3438_s15, %s6111_s15  }
   0x7   : > { %p41_p0 = scmp.ne.s32.totalorder %s3378_s16, %s3374_s15  ;;  %p5567_p1 = scmp.eq.s32.totalorder %s3459_s19, 0 }
   0x8   : > { %p134_p3 = scmp.eq.s32.totalorder %s3039_s20, 3  ;;  %p3040_p5 = scmp.ge.s32.totalorder %s3386_s18, 1 }
   0x9   : > { %p3468_p4 = por %p5567_p1, %p41_p0  ;;  %p141_p7 = scmp.lt.s32.totalorder %s3386_s18, 5 }
   0xa   : > { %p3473_p6 = por %p134_p3, %p41_p0  ;;  %s3388_s24 = smov [#allocation8]  }
   0xb   : > { %s5700_s21 = scalar_select %p3468_p4, 1, 0 }
   0xc   : > { %s5701_s22 = scalar_select %p3473_p6, 1, 0 }
   0xd   : > { %p3478_p8 = pnand %p3040_p5, %p141_p7  ;;  %s159_s25 = sshll.u32 %s3388_s24, 4  ;;  %s160_s25 = int_to_ptr.vmem [resolvable:$true] %s159_s25 }
   0xe   : > { %s3491_s27 = sadd.s32 1, %s3386_s18   ;;  %s28_s28 = sadd.s32 1, %s3382_s17 }
   0xf   : > { %s5702_s23 = scalar_select %p3478_p8, 1, 0 }
  0x10   : > { %p3148_p9 = pneg %p3478_p8  ;;  %s25_s29 = ssub.s32 %s3386_s18, %s3491_s27 }
  0x11   : > { %s3258_s6 = scalar_lea.hbm %s5565_s3, 3328 }
  0x12   : > { %p3486_p10 = pnand %p3148_p9, %p5567_p1  ;;  %p3259_p11 = scmp.ne.s32.totalorder %s5565_s3, %s3258_s6 }
  0x13   : > { %p3265_p3 = scmp.lt.u32.totalorder %s3258_s6, %s5565_s3 }
  0x14   : > { %p3260_p12 = pneg %p3486_p10 }
  0x16   : > { %p3261_p13 = pnand %p3260_p12, %p3259_p11 }
  0x18   : > { %p3262_p0 = pneg %p3261_p13 }
  0x1a   : > { %p3267_p5 = pnand %p3265_p3, %p3262_p0 }
  0x1c   : > { %3270 = shalt.err (!%p3267_p5)
}
  0x1d   : > { %s3271_s11 = scalar_lea.vmem %s160_s25, 3328  ;;  %p3279_p2 = scmp.lt.s32.totalorder %s160_s25, %s160_s25 }
  0x1e   : > { %p3272_p7 = scmp.ne.s32.totalorder %s160_s25, %s3271_s11  ;;  %p3280_p6 = scmp.lt.s32.totalorder %s3271_s11, %s3271_s11 }
  0x20   : > { %p3274_p9 = pnand %p3272_p7, %p3260_p12  ;;  %p3281_p4 = por %p3280_p6, %p3279_p2 }
  0x22   : > { %p3275_p1 = pneg %p3274_p9 }
  0x24   : > { %p3282_p8 = pnand %p3281_p4, %p3275_p1 }
  0x26   : > { %3285 = shalt.err (!%p3282_p8)
}
  0x27   : > { %s3389_s12 = smov 256   ;;  %s3390_s13 = smov 16  }
  0x28   : > { %3151 = dma.hbm_to_vmem [thread:$0]  (!%p3486_p10), %s5565_s3, 3328, %s160_s25, [#allocation9], %s3389_s12, %s3389_s12, %s3390_s13  }
  0x29   : > { %p26_p1 = scmp.eq.s32.totalorder %s25_s29, 0  ;;  %p35_p2 = scmp.ne.s32.totalorder %s3382_s17, %s3378_s16 }
  0x2a   : > { %p36_p4 = scmp.eq.s32.totalorder %s3386_s18, 0  ;;  %p3161_p6 = scmp.lt.s32.totalorder %s3386_s18, 4 }
  0x2b   : > { %s3520_s24 = scalar_select %p26_p1, %s3382_s17, %s28_s28  }
  0x2c   : > { %p37_p8 = por %p36_p4, %p35_p2  ;;  %p5704_p11 = scmp.eq.s32.totalorder %s3459_s19, 3 }
  0x2d   : > { %s173_s26 = sand.u32 1, %s3382_s17   ;;  %s3102_s5 = sshll.u32 %s3386_s18, 11 }
  0x2e   : > { %p3524_p12 = por %p5704_p11, %p35_p2  ;;  %s3043_s6 = sshll.u32 %s173_s26, 7 }
  0x2f   : > { %s3533_s9 = scalar_lea.hbm %s5562_s0, %s3102_s5  ;;  %s177_s25 = scalar_lea.vmem [#allocation5], %s3043_s6 }
  0x30   : > { %s185_s28 = sshll.u32 %s177_s25, 4  ;;  %p3535_p10 = pnand %p3161_p6, %p37_p8  ;;  %s3539_s28 = int_to_ptr.vmem [resolvable:$true] %s185_s28 }
  0x31   : > { %s3541_s10 = scalar_lea.sflag [#allocation6], %s173_s26  ;;  %s3286_s11 = scalar_lea.hbm %s3533_s9, 2048 }
  0x32   : > { %p3287_p13 = scmp.ne.s32.totalorder %s3533_s9, %s3286_s11  ;;  %p3288_p0 = pneg %p3535_p10 }
  0x33   : > { %s3291_s5 = scalar_lea.hbm %s5562_s0, 8192  ;;  %p3292_p7 = scmp.lt.u32.totalorder %s3533_s9, %s5562_s0 }
  0x34   : > { %p3289_p3 = pnand %p3288_p0, %p3287_p13  ;;  %p3293_p9 = scmp.lt.u32.totalorder %s3291_s5, %s3286_s11 }
  0x35   : > { %p3295_p2 = scmp.lt.u32.totalorder %s3286_s11, %s3533_s9 }
  0x36   : > { %p3290_p5 = pneg %p3289_p3  ;;  %p3294_p1 = por %p3293_p9, %p3292_p7 }
  0x38   : > { %p3296_p4 = por %p3295_p2, %p3294_p1 }
  0x3a   : > { %p3297_p6 = pnand %p3296_p4, %p3290_p5 }
  0x3c   : > { %3300 = shalt.err (!%p3297_p6)
}
  0x3d   : > { %s3301_s26 = scalar_lea.vmem %s3539_s28, 2048  ;;  %s3391_s8 = smov [#allocation5]  }
  0x3e   : > { %p3302_p8 = scmp.ne.s32.totalorder %s3539_s28, %s3301_s26  ;;  %s3306_s25 = sshll.u32 %s3391_s8, 4  ;;  %s3307_s25 = int_to_ptr.vmem [resolvable:$false] %s3306_s25 }
  0x3f   : > { %s3308_s14 = scalar_lea.vmem %s3307_s25, 4096  ;;  %p3309_p3 = scmp.lt.s32.totalorder %s3539_s28, %s3307_s25 }
  0x40   : > { %p3304_p11 = pnand %p3302_p8, %p3288_p0  ;;  %p3310_p7 = scmp.lt.s32.totalorder %s3308_s14, %s3301_s26 }
  0x42   : > { %p3305_p13 = pneg %p3304_p11  ;;  %p3311_p9 = por %p3310_p7, %p3309_p3 }
  0x44   : > { %p3312_p1 = pnand %p3311_p9, %p3305_p13 }
  0x46   : > { %3315 = shalt.err (!%p3312_p1)
}
  0x47   : > { %3155 = dma.hbm_to_vmem [thread:$0]  (!%p3535_p10), %s3533_s9, 2048, %s3539_s28, %s3541_s10, %s3389_s12, %s3389_s12, %s3390_s13  }
  0x48   : > { %p5707_p0 = scmp.ne.s32.totalorder %s5702_s23, 0 }
  0x4a   : > { %197 = sbr.rel (%p5707_p0) target bundleno = 1460 (0x5b4), region = 36 }
  0x51   : > { %s3575_s11 = sand.u32 1, %s3378_s16   ;;  %p5708_p5 = scmp.ne.s32.totalorder %s5700_s21, 0 }
  0x52   : > { %s3048_s20 = sshll.u32 %s3575_s11, 7  ;;  %s200_s5 = scalar_lea.sflag [#allocation6], %s3575_s11 }
  0x53   : > { %s3581_s29 = scalar_lea.vmem [#allocation5], %s3048_s20 }
  0x54   : > { %3361 = dma.done.wait (%p5708_p5), %s200_s5, 2048  }
  0x55   : > { %3363 = vsyncadd (%p5708_p5), %s200_s5, 4294965248  ;;  %p5709_p10 = scmp.eq.s32.totalorder %s3459_s19, 0 }
  0x57   : > { %3365 = dma.done.wait (%p5709_p10), [#allocation9], 3328   ;;  %p5710_p2 = pmov %p5709_p10 }
  0x58   : > { %v3592_v0 = vld [vmem:[%s3581_s29 + $0x40] sm:$0xff]  ;;  %v3595_v1 = vld [vmem:[%s3581_s29 + $0x48] sm:$0xff]  ;;  %v3606_v5 = vld [vmem:[%s3581_s29 + $0x50] sm:$0xff]  ;;  %v3392_v32 = vmov 0.0|0.0   ;;  %vm3393_vm0 = vmmov 0   ;;  %v3394_v33 = vmov 0.0  }
  0x59   : > { %3367 = vsyncadd (%p5710_p2), [#allocation9], 4294963968  ;;  %v3598_v2 = vld [vmem:[%s3581_s29] sm:$0xff]  ;;  %v290_v3 = vadd.f32 %v3595_v1, %v3592_v0  ;;  %v3603_v4 = vld [vmem:[%s3581_s29 + $0x8] sm:$0xff]  ;;  %v311_v21 = vmax.f32 %v3592_v0, %v3595_v1  ;;  %3134 = vmatprep.subr.bf16.mxu0 %v3392_v32  ;;  %3123 = vmatprep.mubr.msk.f32.mxu0 %vm3393_vm0, %v3394_v33  ;;  %vm259_vm1 = vcmask 7168   ;;  %vm276_vm2 = vcmask 23568  }
  0x5a   : > { %v3609_v6 = vld [vmem:[%s3581_s29 + $0x58] sm:$0xff]  ;;  %v242_v7 = vadd.f32 %v3603_v4, %v3598_v2  ;;  %v3614_v8 = vld [vmem:[%s3581_s29 + $0x10] sm:$0xff]  ;;  %v264_v13 = vmax.f32 %v3598_v2, %v3603_v4  ;;  %v3634_v16 = vld [vmem:[%s3581_s29 + $0x20] sm:$0xff]  ;;  %vm306_vm3 = vcmask 15368   ;;  %vm323_vm4 = vcmask 31768   ;;  %s3395_s8 = smov 126  }
  0x5b   : > { %v3617_v9 = vld [vmem:[%s3581_s29 + $0x18] sm:$0xff]  ;;  %291 = vadd.xlane.f32.xlu1 %v290_v3  ;;  %v293_v10 = vadd.f32 %v3609_v6, %v3606_v5  ;;  %v3628_v14 = vld [vmem:[%s3581_s29 + $0x30] sm:$0xff]  ;;  %v3637_v17 = vld [vmem:[%s3581_s29 + $0x28] sm:$0xff]  ;;  %v314_v20 = vmax.f32 %v3606_v5, %v3609_v6  ;;  %vm333_vm5 = vcmask 261120   ;;  %vm412_vm6 = vcmask 15360   ;;  %s3400_s25 = smov 3  }
  0x5c   : > { %243 = vadd.xlane.f32.xlu0 %v242_v7  ;;  %v245_v11 = vadd.f32 %v3617_v9, %v3614_v8  ;;  %v267_v12 = vmax.f32 %v3614_v8, %v3617_v9  ;;  %v3631_v15 = vld [vmem:[%s3581_s29 + $0x38] sm:$0xff]  ;;  %v248_v19 = vadd.f32 %v3637_v17, %v3634_v16  ;;  %v3648_v22 = vld [vmem:[%s3581_s29 + $0x70] sm:$0xff]  ;;  %v3654_v24 = vld [vmem:[%s3581_s29 + $0x60] sm:$0xff]  ;;  %v270_v29 = vmax.f32 %v3634_v16, %v3637_v17  ;;  %s3401_s14 = smov 2   ;;  %s3402_s5 = smov 1  }
  0x5d   : > { %v251_v18 = vadd.f32 %v3631_v15, %v3628_v14  ;;  %v3651_v23 = vld [vmem:[%s3581_s29 + $0x78] sm:$0xff]  ;;  %v3657_v25 = vld [vmem:[%s3581_s29 + $0x68] sm:$0xff]  ;;  %v273_v28 = vmax.f32 %v3628_v14, %v3631_v15  ;;  %vm425_vm7 = vcmask 1041408   ;;  %s3403_s21 = smov 127   ;;  %s3404_s23 = smov 125  }
  0x5e   : > { %v299_v26 = vadd.f32 %v3651_v23, %v3648_v22  ;;  %v296_v27 = vadd.f32 %v3657_v25, %v3654_v24  ;;  %v320_v30 = vmax.f32 %v3648_v22, %v3651_v23  ;;  %v317_v31 = vmax.f32 %v3654_v24, %v3657_v25  ;;  %v332_v3 = vld [vmem:[%s5563_s1] sm:$0x3]  ;;  %s3405_s12 = smov 48   ;;  %s3406_s13 = smov 32  }
  0x5f   : > { %294 = vadd.xlane.f32.xlu1 %v293_v10  ;;  %v408_v7 = vld [vmem:[%s5564_s2] sm:$0xff]  ;;  %s3407_s9 = smov 16   ;;  %s3408_s28 = smov 112  }
  0x60   : > { %246 = vadd.xlane.f32.xlu0 %v245_v11  ;;  %3128 = vmatprep.mubr.msk.f32.mxu1 %vm412_vm6, %v408_v7  ;;  %v3398_v7 = vmov 1966171168   ;;  %s3409_s10 = smov 96   ;;  %s3410_s6 = smov 80  }
  0x61   : > { %s3104_s7 = sshll.u32 %s3459_s19, 11  ;;  %s5486_s26 = scalar_lea.vmem [#allocation10], %s3048_s20 }
  0x63   : > { %268 = vmax.xlane.f32.xlu1 %v267_v12 }
  0x64   : > { %265 = vmax.xlane.f32.xlu0 %v264_v13  ;;  %v409_v13 = vld [vmem:[%s5564_s2 + $0x8] sm:$0xff] }
  0x67   : > { %252 = vadd.xlane.f32.xlu1 %v251_v18  ;;  %v410_v18 = vld [vmem:[%s5564_s2 + $0x10] sm:$0xff] }
  0x68   : > { %249 = vadd.xlane.f32.xlu0 %v248_v19  ;;  %v411_v19 = vld [vmem:[%s5564_s2 + $0x18] sm:$0xff] }
  0x6b   : > { %315 = vmax.xlane.f32.xlu1 %v314_v20 }
  0x6c   : > { %312 = vmax.xlane.f32.xlu0 %v311_v21 }
  0x6f   : > { %300 = vadd.xlane.f32.xlu1 %v299_v26 }
  0x70   : > { %297 = vadd.xlane.f32.xlu0 %v296_v27 }
  0x73   : > { %274 = vmax.xlane.f32.xlu1 %v273_v28  ;;  %v3396_v28 = vmov 1  }
  0x74   : > { %271 = vmax.xlane.f32.xlu0 %v270_v29  ;;  %v3397_v29 = vmov 0  }
  0x75   : > { %3220 = vset.pattern.permute.xlu0 %v3396_v28  ;;  %3219 = vset.pattern.permute.xlu1 %v3397_v29 }
  0x77   : > { %321 = vmax.xlane.f32.xlu1 %v320_v30 }
  0x78   : > { %318 = vmax.xlane.f32.xlu0 %v317_v31 }
  0xe8   : > { %v292_v34 = vpop.xlane.xlu1 %291 }
  0xe9   : > { %v244_v35 = vpop.xlane.xlu0 %243  ;;  %v302_v42 = vmul.f32 0.00390625, %v292_v34 }
  0xea   : > { %v255_v36 = vmul.f32 0.00390625, %v244_v35 }
  0xec   : > { %260 = vst.msk [vmem:[#allocation2] sm:$0xff] %vm259_vm1, %v255_v36  ;;  %v295_v37 = vpop.xlane.xlu1 %294 }
  0xed   : > { %v247_v38 = vpop.xlane.xlu0 %246  ;;  %v303_v40 = vmul.f32 0.00390625, %v295_v37 }
  0xee   : > { %v256_v39 = vmul.f32 0.00390625, %v247_v38 }
  0xf0   : > { %261 = vst.msk [vmem:[#allocation2 + $0x8] sm:$0xff] %vm259_vm1, %v256_v39  ;;  %v269_v41 = vpop.xlane.xlu1 %268 }
  0xf1   : > { %278 = vst.msk [vmem:[#allocation2 + $0x8] sm:$0xff] %vm276_vm2, %v269_v41  ;;  %v266_v43 = vpop.xlane.xlu0 %265 }
  0xf2   : > { %277 = vst.msk [vmem:[#allocation2] sm:$0xff] %vm276_vm2, %v266_v43 }
  0xf3   : > { %308 = vst.msk [vmem:[#allocation2 + $0x8] sm:$0xff] %vm306_vm3, %v303_v40  ;;  %307 = vst.msk [vmem:[#allocation2] sm:$0xff] %vm306_vm3, %v302_v42 }
  0xf4   : > { %v253_v44 = vpop.xlane.xlu1 %252 }
  0xf5   : > { %v258_v45 = vmul.f32 0.00390625, %v253_v44  ;;  %v250_v46 = vpop.xlane.xlu0 %249 }
  0xf6   : > { %v257_v47 = vmul.f32 0.00390625, %v250_v46 }
  0xf7   : > { %263 = vst.msk [vmem:[#allocation2 + $0x18] sm:$0xff] %vm259_vm1, %v258_v45 }
  0xf8   : > { %262 = vst.msk [vmem:[#allocation2 + $0x10] sm:$0xff] %vm259_vm1, %v257_v47  ;;  %v316_v48 = vpop.xlane.xlu1 %315 }
  0xf9   : > { %325 = vst.msk [vmem:[#allocation2 + $0x8] sm:$0xff] %vm323_vm4, %v316_v48  ;;  %v313_v49 = vpop.xlane.xlu0 %312 }
  0xfa   : > { %324 = vst.msk [vmem:[#allocation2] sm:$0xff] %vm323_vm4, %v313_v49 }
  0xfc   : > { %v301_v50 = vpop.xlane.xlu1 %300 }
  0xfd   : > { %v298_v51 = vpop.xlane.xlu0 %297  ;;  %v305_v52 = vmul.f32 0.00390625, %v301_v50 }
  0xfe   : > { %v304_v55 = vmul.f32 0.00390625, %v298_v51 }
 0x100   : > { %v275_v53 = vpop.xlane.xlu1 %274  ;;  %v329_v54 = vld [vmem:[#allocation2 + $0x8] sm:$0xff] }
 0x101   : > { %280 = vst.msk [vmem:[#allocation2 + $0x18] sm:$0xff] %vm276_vm2, %v275_v53  ;;  %v272_v56 = vpop.xlane.xlu0 %271  ;;  %v328_v57 = vld [vmem:[#allocation2] sm:$0xff] }
 0x102   : > { %310 = vst.msk [vmem:[#allocation2 + $0x18] sm:$0xff] %vm306_vm3, %v305_v52  ;;  %v3135_v58 = vpack.c.bf16 %v329_v54, %v328_v57 }
 0x103   : > { %279 = vst.msk [vmem:[#allocation2 + $0x10] sm:$0xff] %vm276_vm2, %v272_v56 }
 0x104   : > { %309 = vst.msk [vmem:[#allocation2 + $0x10] sm:$0xff] %vm306_vm3, %v304_v55  ;;  %3136 = vmatpush3.bf16.msra.mxu0 %v3135_v58  ;;  %v322_v59 = vpop.xlane.xlu1 %321 }
 0x105   : > { %327 = vst.msk [vmem:[#allocation2 + $0x18] sm:$0xff] %vm323_vm4, %v322_v59  ;;  %v319_v60 = vpop.xlane.xlu0 %318  ;;  %3137 = vmatprep.subr.bf16.mxu0 %v3392_v32 }
 0x106   : > { %326 = vst.msk [vmem:[#allocation2 + $0x10] sm:$0xff] %vm323_vm4, %v319_v60 }
 0x10c   : > { %v331_v61 = vld [vmem:[#allocation2 + $0x18] sm:$0xff] }
 0x10d   : > { %v330_v62 = vld [vmem:[#allocation2 + $0x10] sm:$0xff] }
 0x10e   : > { %v3138_v63 = vpack.c.bf16 %v331_v61, %v330_v62 }
 0x110   : > { %3139 = vmatpush3.bf16.msra.mxu0 %v3138_v63 }
 0x113   : > { %3124 = vmatmul.mubr.msk.f32.vlgmr.msra.gmra.mrb[0].mxu0 %vm333_vm5, %v332_v3 }
 0x1e6   : > { %v403_v10 = vpop.f32.mrb[0].mxu0 }
 0x1e7   : > { %v407_v11 = vmax.f32 %v403_v10, 0.0  ;;  %v3125_v12 = vpop.f32.mrb[1].mxu0  ;;  %v619_v10 = vunpack.c.l.s4 %v3398_v7 }
 0x1e9   : > { %3126 = vmatprep.subr.msk.mxu1 %vm425_vm7, %v407_v11 }
 0x1ea   : > { %3127 = vmatpush3.msk.msra.mxu1 %vm425_vm7, %v407_v11 }
 0x1eb   : > { %3129 = vmatmul.mubr.msk.f32.vlgmr.msra.gmra.mrb[0].mxu1 %vm412_vm6, %v409_v13 }
 0x1ec   : > { %3131 = vmatprep.mubr.msk.f32.mxu1 %vm412_vm6, %v410_v18 }
 0x1ef   : > { %3132 = vmatmul.mubr.msk.f32.gmra.mrb[2].mxu1 %vm412_vm6, %v411_v19 }
 0x2be   : > { %v3130_v20 = vpop.f32.mrb[0].mxu1 }
 0x2bf   : > { %520 = vrot.lane.b32.xlu1 %v3130_v20, %s3395_s8  ;;  %v495_v21 = vpop.f32.mrb[1].mxu1 }
 0x2c0   : > { %518 = vrot.lane.b32.xlu0 %v495_v21, %s3395_s8 }
 0x2c2   : > { %v3133_v26 = vpop.f32.mrb[2].mxu1 }
 0x2c3   : > { %v505_v27 = vpop.f32.mrb[3].mxu1 }
 0x2c4   : > { %522 = vrot.lane.b32.xlu1 %v505_v27, %s3395_s8 }
 0x2c8   : > { %524 = vrot.lane.b32.xlu1 %v3133_v26, %s3395_s8 }
 0x331   : > { %v521_v30 = vpop.permute.xlu1 %520 }
 0x332   : > { %v531_v31 = vadd.f32 %v3130_v20, %v521_v30  ;;  %v519_v32 = vpop.permute.xlu0 %518 }
 0x333   : > { %v530_v33 = vadd.f32 %v519_v32, %v495_v21 }
 0x334   : > { %v3066_v34 = vmul.f32 -1.442695, %v531_v31 }
 0x335   : > { %v3065_v35 = vmul.f32 -1.442695, %v530_v33 }
 0x336   : > { %3226 = vpow2.f32 %v3066_v34  ;;  %v523_v36 = vpop.permute.xlu1 %522 }
 0x337   : > { %3228 = vpow2.f32 %v3065_v35  ;;  %v532_v37 = vadd.f32 %v523_v36, %v505_v27 }
 0x339   : > { %v3067_v38 = vmul.f32 -1.442695, %v532_v37 }
 0x33a   : > { %v525_v39 = vpop.permute.xlu1 %524 }
 0x33b   : > { %v533_v40 = vadd.f32 %v3133_v26, %v525_v39  ;;  %3230 = vpow2.f32 %v3067_v38 }
 0x33d   : > { %v3068_v41 = vmul.f32 -1.442695, %v533_v40 }
 0x33f   : > { %3232 = vpow2.f32 %v3068_v41 }
 0x340   : > { %v3227_v42 = vpop.eup %3226 }
 0x341   : > { %v3229_v43 = vpop.eup %3228  ;;  %v547_v44 = vadd.f32 1.0, %v3227_v42 }
 0x342   : > { %v546_v45 = vadd.f32 1.0, %v3229_v43 }
 0x343   : > { %3234 = vrcp.f32 %v547_v44 }
 0x344   : > { %3236 = vrcp.f32 %v546_v45 }
 0x345   : > { %v3231_v46 = vpop.eup %3230 }
 0x346   : > { %v548_v48 = vadd.f32 1.0, %v3231_v46 }
 0x349   : > { %v3233_v47 = vpop.eup %3232 }
 0x34a   : > { %v549_v49 = vadd.f32 1.0, %v3233_v47 }
 0x34c   : > { %3238 = vrcp.f32 %v549_v49 }
 0x34d   : > { %v3235_v50 = vpop.eup %3234  ;;  %3240 = vrcp.f32 %v548_v48 }
 0x34e   : > { %688 = vperm.xlu0 %3220, %v3235_v50   ;;  %573 = vperm.xlu1 %3219, %v3235_v50   ;;  %v3237_v51 = vpop.eup %3236 }
 0x352   : > { %3221 = vset.pattern.permute.xlu0 %v3397_v29  ;;  %3222 = vset.pattern.permute.xlu1 %v3396_v28 }
 0x353   : > { %568 = vperm.xlu0 %3221, %v3237_v51   ;;  %684 = vperm.xlu1 %3222, %v3237_v51  }
 0x356   : > { %v3239_v52 = vpop.eup %3238 }
 0x357   : > { %v3241_v53 = vpop.eup %3240  ;;  %3223 = vset.pattern.permute.xlu1 %v3397_v29  ;;  %583 = vperm.xlu0 %3221, %v3239_v52  }
 0x358   : > { %578 = vperm.xlu1 %3223, %v3241_v53  }
 0x35b   : > { %3225 = vset.pattern.permute.xlu0 %v3396_v28 }
 0x35c   : > { %3224 = vset.pattern.permute.xlu1 %v3396_v28  ;;  %v620_v28 = vunpack.c.0.s8 %v619_v10 }
 0x35d   : > { %692 = vperm.xlu1 %3224, %v3241_v53  }
 0x361   : > { %696 = vperm.xlu1 %3224, %v3239_v52  }
 0x3cd   : > { %v689_v54 = vpop.permute.xlu0 %688  ;;  %v3706_v55 = vpop.permute.xlu1 %573 }
 0x3ce   : > { %5711 = vst [vmem:[#allocation14_spill] sm:$0xff] %v3706_v55  ;;  %v588_v60 = vmul.f32 %v3706_v55, %v3614_v8  ;;  %v589_v61 = vmul.f32 %v3706_v55, %v3617_v9  ;;  %v3737_v27 = vmul.f32 %v3606_v5, %v689_v54  ;;  %v4204_v55 = vld [vmem:[#allocation8 + $0x11] ss:$8 sm:$0x3] }
 0x3cf   : > { %5746 = vst [vmem:[#allocation39_spill] sm:$0xff] %v4204_v55 }
 0x3d0   : > { %5717 = vst [vmem:[#allocation20_spill] sm:$0xff] %v3737_v27 }
 0x3d2   : > { %v3708_v56 = vpop.permute.xlu0 %568  ;;  %v685_v57 = vpop.permute.xlu1 %684 }
 0x3d3   : > { %5712 = vst [vmem:[#allocation15_spill] sm:$0xff] %v3708_v56  ;;  %v586_v58 = vmul.f32 %v3708_v56, %v3598_v2  ;;  %v587_v59 = vmul.f32 %v3708_v56, %v3603_v4  ;;  %v621_v2 = vlaneseq  ;;  %v3731_v13 = vmul.f32 %v3592_v0, %v685_v57 }
 0x3d5   : > { %v594_v4 = vadd.f32 %v588_v60, %v586_v58  ;;  %v603_v12 = vadd.f32 %v589_v61, %v587_v59  ;;  %5715 = vst [vmem:[#allocation18_spill] sm:$0xff] %v3731_v13  ;;  %v707_v32 = vadd.f32 %v3737_v27, %v3731_v13  ;;  %vm3777_vm8 = vcmp.lt.s32.totalorder %v621_v2, 256 }
 0x3d6   : > { %v3718_v62 = vpop.permute.xlu0 %583 }
 0x3d7   : > { %5713 = vst [vmem:[#allocation16_spill] sm:$0xff] %v3718_v62  ;;  %v592_v63 = vmul.f32 %v3718_v62, %v3628_v14  ;;  %v593_v3 = vmul.f32 %v3718_v62, %v3631_v15  ;;  %v3724_v11 = vpop.permute.xlu1 %578  ;;  %v3734_v14 = vmul.f32 %v3595_v1, %v685_v57  ;;  %v4177_v62 = vld [vmem:[#allocation8 + $0x44] ss:$8 sm:$0x3] }
 0x3d8   : > { %5714 = vst [vmem:[#allocation17_spill] sm:$0xff] %v3724_v11  ;;  %v590_v8 = vmul.f32 %v3724_v11, %v3634_v16  ;;  %v591_v9 = vmul.f32 %v3724_v11, %v3637_v17  ;;  %v3740_v16 = vmul.f32 %v3609_v6, %v689_v54  ;;  %v3743_v17 = vshrl.u32 %v621_v2, 7  ;;  %v4183_v11 = vld [vmem:[#allocation8 + $0x53] ss:$8 sm:$0x3] }
 0x3d9   : > { %5716 = vst [vmem:[#allocation19_spill] sm:$0xff] %v3734_v14  ;;  %v639_v15 = vmax.f32 %v588_v60, %v592_v63  ;;  %v648_v18 = vmax.f32 %v589_v61, %v593_v3 }
 0x3da   : > { %v595_v19 = vadd.f32 %v594_v4, %v590_v8  ;;  %v604_v20 = vadd.f32 %v603_v12, %v591_v9  ;;  %v638_v21 = vmax.f32 %v586_v58, %v590_v8  ;;  %v647_v26 = vmax.f32 %v587_v59, %v591_v9  ;;  %5718 = vst [vmem:[#allocation21_spill] sm:$0xff] %v3740_v16 }
 0x3db   : > { %v716_v33 = vadd.f32 %v3740_v16, %v3734_v14  ;;  %v3756_v38 = vsub.s32 %v620_v28, %v3743_v17 }
 0x3dc   : > { %v596_v0 = vadd.f32 %v595_v19, %v592_v63  ;;  %v605_v29 = vadd.f32 %v604_v20, %v593_v3  ;;  %v640_v1 = vmax.f32 %v638_v21, %v639_v15  ;;  %v649_v30 = vmax.f32 %v647_v26, %v648_v18  ;;  %v693_v31 = vpop.permute.xlu1 %692 }
 0x3dd   : > { %v3750_v5 = vmul.f32 %v3654_v24, %v693_v31  ;;  %v3753_v6 = vmul.f32 %v3657_v25, %v693_v31 }
 0x3de   : > { %v597_v34 = vrot.slane %v596_v0, 4  ;;  %v606_v35 = vrot.slane %v605_v29, 4  ;;  %v641_v36 = vrot.slane %v640_v1, 4  ;;  %v650_v37 = vrot.slane %v649_v30, 4 }
 0x3df   : > { %5719 = vst [vmem:[#allocation22_spill] sm:$0xff] %v3750_v5  ;;  %5720 = vst [vmem:[#allocation23_spill] sm:$0xff] %v3753_v6  ;;  %v708_v39 = vadd.f32 %v707_v32, %v3750_v5  ;;  %v717_v40 = vadd.f32 %v716_v33, %v3753_v6  ;;  %v747_v25 = vmax.f32 %v3731_v13, %v3750_v5 }
 0x3e0   : > { %v598_v41 = vadd.f32 %v597_v34, %v596_v0  ;;  %v607_v42 = vadd.f32 %v606_v35, %v605_v29  ;;  %v642_v43 = vmax.f32 %v640_v1, %v641_v36  ;;  %v651_v44 = vmax.f32 %v649_v30, %v650_v37  ;;  %v697_v24 = vpop.permute.xlu1 %696 }
 0x3e1   : > { %v756_v45 = vmax.f32 %v3734_v14, %v3753_v6  ;;  %v3765_v46 = vmul.f32 %v3648_v22, %v697_v24  ;;  %v3768_v47 = vmul.f32 %v3651_v23, %v697_v24  ;;  %v4144_v14 = vld [vmem:[#allocation8 + $0x26] ss:$8 sm:$0x3] }
 0x3e2   : > { %v599_v48 = vrot.slane %v598_v41, 2  ;;  %v608_v49 = vrot.slane %v607_v42, 2  ;;  %v643_v50 = vrot.slane %v642_v43, 2  ;;  %v652_v51 = vrot.slane %v651_v44, 2 }
 0x3e3   : > { %5721 = vst [vmem:[#allocation24_spill] sm:$0xff] %v3765_v46  ;;  %5722 = vst [vmem:[#allocation25_spill] sm:$0xff] %v3768_v47  ;;  %v709_v52 = vadd.f32 %v708_v39, %v3765_v46  ;;  %v718_v53 = vadd.f32 %v717_v40, %v3768_v47  ;;  %v748_v54 = vmax.f32 %v3737_v27, %v3765_v46  ;;  %v4130_v27 = vld [vmem:[#allocation8 + $0x17] ss:$8 sm:$0x3] }
 0x3e4   : > { %v757_v57 = vmax.f32 %v3740_v16, %v3768_v47  ;;  %v600_v58 = vadd.f32 %v599_v48, %v598_v41  ;;  %v609_v22 = vadd.f32 %v608_v49, %v607_v42  ;;  %v644_v59 = vmax.f32 %v642_v43, %v643_v50  ;;  %v4061_v47 = vld [vmem:[#allocation8 + $0x34] ss:$8 sm:$0x3] }
 0x3e5   : > { %v653_v60 = vmax.f32 %v651_v44, %v652_v51  ;;  %v710_v23 = vrot.slane %v709_v52, 4  ;;  %v719_v61 = vrot.slane %v718_v53, 4  ;;  %v749_v63 = vmax.f32 %v747_v25, %v748_v54 }
 0x3e6   : > { %v758_v3 = vmax.f32 %v756_v45, %v757_v57  ;;  %v601_v7 = vrot.slane %v600_v58, 1  ;;  %v610_v10 = vrot.slane %v609_v22, 1  ;;  %v645_v4 = vrot.slane %v644_v59, 1 }
 0x3e7   : > { %v654_v12 = vrot.slane %v653_v60, 1  ;;  %v711_v8 = vadd.f32 %v710_v23, %v709_v52  ;;  %v720_v9 = vadd.f32 %v719_v61, %v718_v53  ;;  %v750_v15 = vrot.slane %v749_v63, 4 }
 0x3e8   : > { %v759_v18 = vrot.slane %v758_v3, 4  ;;  %v602_v19 = vadd.f32 %v601_v7, %v600_v58  ;;  %v611_v20 = vadd.f32 %v610_v10, %v609_v22  ;;  %v646_v21 = vmax.f32 %v644_v59, %v645_v4 }
 0x3e9   : > { %v655_v26 = vmax.f32 %v653_v60, %v654_v12  ;;  %v712_v28 = vrot.slane %v711_v8, 2  ;;  %v721_v0 = vrot.slane %v720_v9, 2  ;;  %v751_v29 = vmax.f32 %v749_v63, %v750_v15 }
 0x3ea   : > { %v760_v1 = vmax.f32 %v758_v3, %v759_v18  ;;  %v613_v30 = vmul.f32 0.03125, %v602_v19  ;;  %v614_v31 = vmul.f32 0.03125, %v611_v20  ;;  %v3399_v23 = vmov 1983009808  }
 0x3eb   : > { %v658_v32 = vcombine.low %v646_v21, %v655_v26  ;;  %v713_v33 = vadd.f32 %v712_v28, %v711_v8  ;;  %v722_v34 = vadd.f32 %v721_v0, %v720_v9  ;;  %v752_v35 = vrot.slane %v751_v29, 2  ;;  %v1834_v20 = vld [vmem:[#allocation8 + $0x30] ss:$8 sm:$0x3] }
 0x3ec   : > { %v761_v36 = vrot.slane %v760_v1, 2  ;;  %v617_v39 = vcombine.low %v613_v30, %v614_v31  ;;  %v789_v61 = vunpack.c.l.s4 %v3399_v23  ;;  %v3813_v18 = vsub.s32 0, %v3743_v17  ;;  %v1836_v21 = vld [vmem:[#allocation8 + $0x91] ss:$8 sm:$0x3] }
 0x3ed   : > { %v665_v40 = vrot.slane %v658_v32, %v3756_v38  ;;  %v714_v41 = vrot.slane %v713_v33, 1  ;;  %v723_v42 = vrot.slane %v722_v34, 1  ;;  %v753_v43 = vmax.f32 %v751_v29, %v752_v35  ;;  %v991_v26 = vld [vmem:[#allocation8 + $0x3] ss:$8 sm:$0x3] }
 0x3ee   : > { %v762_v44 = vmax.f32 %v760_v1, %v761_v36  ;;  %v624_v24 = vrot.slane %v617_v39, %v3756_v38  ;;  %v790_v7 = vunpack.c.0.s8 %v789_v61  ;;  %v3816_v19 = vsub.s32 1, %v3743_v17  ;;  %v993_v28 = vld [vmem:[#allocation8 + $0x64] ss:$8 sm:$0x3] }
 0x3ef   : > { %v672_v25 = vrot.slane %v665_v40, %v3756_v38  ;;  %v715_v45 = vadd.f32 %v714_v41, %v713_v33  ;;  %v724_v48 = vadd.f32 %v723_v42, %v722_v34  ;;  %v754_v49 = vrot.slane %v753_v43, 1  ;;  %v1272_v0 = vld [vmem:[#allocation8 + $0x12] ss:$8 sm:$0x3] }
 0x3f0   : > { %v763_v50 = vrot.slane %v762_v44, 1  ;;  %v631_v51 = vrot.slane %v624_v24, %v3756_v38  ;;  %v3798_v10 = vsub.s32 %v790_v7, %v3743_v17  ;;  %v1841_v29 = vrot.slane %v1834_v20, %v3813_v18  ;;  %v1274_v30 = vld [vmem:[#allocation8 + $0x73] ss:$8 sm:$0x3] }
 0x3f1   : > { %674 = vst.msk [vmem:[#allocation4] ss:$2 sm:$0x3] %vm3777_vm8, %v672_v25  ;;  %v725_v52 = vmul.f32 0.03125, %v715_v45  ;;  %v726_v53 = vmul.f32 0.03125, %v724_v48  ;;  %v755_v54 = vmax.f32 %v753_v43, %v754_v49  ;;  %v1845_v1 = vrot.slane %v1834_v20, %v3816_v19 }
 0x3f2   : > { %v764_v57 = vmax.f32 %v762_v44, %v763_v50  ;;  %637 = vst.msk [vmem:[#allocation3] ss:$2 sm:$0x3] %vm3777_vm8, %v631_v51  ;;  %v1553_v31 = vld [vmem:[#allocation8 + $0x21] ss:$8 sm:$0x3]  ;;  %v1873_v32 = vrot.slane %v1836_v21, %v3813_v18  ;;  %v1877_v33 = vrot.slane %v1836_v21, %v3816_v19  ;;  %v998_v34 = vrot.slane %v991_v26, %v3813_v18 }
 0x3f3   : > { %v729_v58 = vcombine.low %v725_v52, %v726_v53  ;;  %v1002_v17 = vrot.slane %v991_v26, %v3816_v19  ;;  %v1555_v35 = vld [vmem:[#allocation8 + $0x82] ss:$8 sm:$0x3]  ;;  %v2108_v36 = vld [vmem:[#allocation8 + $0x37] ss:$8 sm:$0x3]  ;;  %v1030_v37 = vrot.slane %v993_v28, %v3813_v18  ;;  %v1034_v39 = vrot.slane %v993_v28, %v3816_v19 }
 0x3f4   : > { %v767_v22 = vcombine.low %v755_v54, %v764_v57  ;;  %v1279_v40 = vrot.slane %v1272_v0, %v3813_v18  ;;  %v1283_v41 = vrot.slane %v1272_v0, %v3816_v19  ;;  %v2110_v42 = vld [vmem:[#allocation8 + $0xa0] ss:$8 sm:$0x3]  ;;  %v2389_v43 = vld [vmem:[#allocation8 + $0x46] ss:$8 sm:$0x3]  ;;  %v1311_v44 = vrot.slane %v1274_v30, %v3813_v18 }
 0x3f5   : > { %v736_v59 = vrot.slane %v729_v58, %v3756_v38  ;;  %v1315_v24 = vrot.slane %v1274_v30, %v3816_v19  ;;  %v1560_v25 = vrot.slane %v1553_v31, %v3813_v18  ;;  %v1564_v45 = vrot.slane %v1553_v31, %v3816_v19  ;;  %v2391_v48 = vld [vmem:[#allocation8 + $0xa7] ss:$8 sm:$0x3]  ;;  %v2670_v49 = vld [vmem:[#allocation8 + $0x55] ss:$8 sm:$0x3] }
 0x3f6   : > { %v774_v60 = vrot.slane %v767_v22, %v3756_v38  ;;  %v1592_v50 = vrot.slane %v1555_v35, %v3813_v18  ;;  %v1596_v51 = vrot.slane %v1555_v35, %v3816_v19  ;;  %v2115_v52 = vrot.slane %v2108_v36, %v3813_v18  ;;  %v2672_v54 = vld [vmem:[#allocation8 + $0xb6] ss:$8 sm:$0x3]  ;;  %v3881_v35 = vld [vmem:[#allocation8 + $0x70] ss:$8 sm:$0x3] }
 0x3f7   : > { %v743_v63 = vrot.slane %v736_v59, %v3756_v38  ;;  %v2119_v53 = vrot.slane %v2108_v36, %v3816_v19  ;;  %v2147_v57 = vrot.slane %v2110_v42, %v3813_v18  ;;  %v2151_v58 = vrot.slane %v2110_v42, %v3816_v19 }
 0x3f8   : > { %v781_v3 = vrot.slane %v774_v60, %v3756_v38  ;;  %v2396_v22 = vrot.slane %v2389_v43, %v3813_v18  ;;  %v2400_v59 = vrot.slane %v2389_v43, %v3816_v19  ;;  %v2428_v60 = vrot.slane %v2391_v48, %v3813_v18  ;;  %v4013_v43 = vld [vmem:[#allocation8 + $0xb5] ss:$8 sm:$0x3] }
 0x3f9   : > { %746 = vst.msk [vmem:[#allocation3 + $0x1] ss:$2 sm:$0x3] %vm3777_vm8, %v743_v63  ;;  %v2432_v23 = vrot.slane %v2391_v48, %v3816_v19  ;;  %v2677_v61 = vrot.slane %v2670_v49, %v3813_v18  ;;  %v2681_v63 = vrot.slane %v2670_v49, %v3816_v19  ;;  %v2709_v7 = vrot.slane %v2672_v54, %v3813_v18  ;;  %v3981_v49 = vld [vmem:[#allocation8 + $0x72] ss:$8 sm:$0x3] }
 0x3fa   : > { %784 = vst.msk [vmem:[#allocation4 + $0x1] ss:$2 sm:$0x3] %vm3777_vm8, %v781_v3  ;;  %v3844_v3 = vcombine.low %v1841_v29, %v1845_v1  ;;  %v3854_v20 = vcombine.low %v1279_v40, %v1283_v41  ;;  %v3856_v21 = vcombine.low %v1311_v44, %v1315_v24  ;;  %v3858_v26 = vcombine.low %v1560_v25, %v1564_v45  ;;  %v3891_v40 = vld [vmem:[#allocation8 + $0x77] ss:$8 sm:$0x3] }
 0x3fb   : > { %v3860_v28 = vcombine.low %v1592_v50, %v1596_v51  ;;  %v3862_v0 = vcombine.low %v2115_v52, %v2119_v53  ;;  %v3864_v29 = vcombine.low %v2147_v57, %v2151_v58  ;;  %v3866_v1 = vcombine.low %v2396_v22, %v2400_v59  ;;  %v3893_v41 = vld [vmem:[#allocation8 + $0x86] ss:$8 sm:$0x3]  ;;  %v3903_v25 = vld [vmem:[#allocation8 + $0x95] ss:$8 sm:$0x3] }
 0x3fc   : > { %v3868_v30 = vcombine.low %v2428_v60, %v2432_v23  ;;  %v3870_v31 = vcombine.low %v2677_v61, %v2681_v63  ;;  %v3905_v45 = vld [vmem:[#allocation8 + $0xa4] ss:$8 sm:$0x3]  ;;  %v3921_v57 = vld [vmem:[#allocation8 + $0xb3] ss:$8 sm:$0x3]  ;;  %v5732_v5 = vrot.slane %v3858_v26, %v3798_v10 }
 0x3fd   : > { %v3923_v58 = vld [vmem:[#allocation8 + $0x62] ss:$8 sm:$0x3]  ;;  %v3935_v63 = vld [vmem:[#allocation8 + $0x71] ss:$8 sm:$0x3]  ;;  %v5805_v55 = vrot.slane %v3921_v57, %v3813_v18 }
 0x3fe   : > { %v3947_v23 = vld [vmem:[#allocation8 + $0x87] ss:$8 sm:$0x3]  ;;  %v3949_v53 = vld [vmem:[#allocation8 + $0x96] ss:$8 sm:$0x3] }
 0x3ff   : > { %v3959_v59 = vld [vmem:[#allocation8 + $0xa5] ss:$8 sm:$0x3]  ;;  %v3961_v22 = vld [vmem:[#allocation8 + $0xb4] ss:$8 sm:$0x3] }
 0x400   : > { %v3804_v38 = vld [vmem:[#allocation3] sm:$0xf]  ;;  %v3991_v48 = vld [vmem:[#allocation8 + $0x81] ss:$8 sm:$0x3] }
 0x401   : > { %v3800_v4 = vld [vmem:[#allocation4] sm:$0xf]  ;;  %v794_v9 = vrot.slane %v3804_v38, %v3798_v10  ;;  %v3993_v60 = vld [vmem:[#allocation8 + $0x90] ss:$8 sm:$0x3] }
 0x402   : > { %v849_v12 = vrot.slane %v3800_v4, %v3798_v10  ;;  %v4001_v52 = vld [vmem:[#allocation8 + $0x97] ss:$8 sm:$0x3]  ;;  %v4003_v44 = vld [vmem:[#allocation8 + $0xa6] ss:$8 sm:$0x3] }
 0x403   : > { %v795_v15 = vcombine.high %v794_v9, %v794_v9  ;;  %v4015_v24 = vld [vmem:[#allocation8 + $0x92] ss:$8 sm:$0x3]  ;;  %v4043_v51 = vld [vmem:[#allocation8 + $0x7] ss:$8 sm:$0x3] }
 0x404   : > { %853 = vrot.lane.b32.xlu1 %v849_v12, %s3400_s25  ;;  %v850_v8 = vcombine.high %v849_v12, %v849_v12 }
 0x406   : > { %855 = vrot.lane.b32.xlu0 %v850_v8, %s3400_s25 }
 0x408   : > { %859 = vrot.lane.b32.xlu1 %v849_v12, %s3401_s14 }
 0x40a   : > { %861 = vrot.lane.b32.xlu0 %v850_v8, %s3401_s14 }
 0x40c   : > { %865 = vrot.lane.b32.xlu1 %v849_v12, %s3402_s5 }
 0x40e   : > { %867 = vrot.lane.b32.xlu0 %v850_v8, %s3402_s5 }
 0x410   : > { %871 = vrot.lane.b32.xlu1 %v849_v12, %s3403_s21 }
 0x412   : > { %873 = vrot.lane.b32.xlu0 %v850_v8, %s3403_s21 }
 0x414   : > { %798 = vrot.lane.b32.xlu1 %v794_v9, %s3400_s25 }
 0x416   : > { %800 = vrot.lane.b32.xlu0 %v795_v15, %s3400_s25  ;;  %s2942_s25 = scalar_lea.sflag [#allocation7], %s3575_s11 }
 0x418   : > { %807 = vrot.lane.b32.xlu1 %v794_v9, %s3401_s14 }
 0x41a   : > { %809 = vrot.lane.b32.xlu0 %v795_v15, %s3401_s14 }
 0x41c   : > { %814 = vrot.lane.b32.xlu1 %v794_v9, %s3402_s5 }
 0x41e   : > { %816 = vrot.lane.b32.xlu0 %v795_v15, %s3402_s5  ;;  %s3411_s5 = smov [#allocation10]  }
 0x420   : > { %877 = vrot.lane.b32.xlu1 %v849_v12, %s3395_s8 }
 0x422   : > { %879 = vrot.lane.b32.xlu0 %v850_v8, %s3395_s8 }
 0x424   : > { %821 = vrot.lane.b32.xlu1 %v794_v9, %s3403_s21 }
 0x426   : > { %823 = vrot.lane.b32.xlu0 %v795_v15, %s3403_s21  ;;  %s3320_s21 = sshll.u32 %s3411_s5, 4  ;;  %s3321_s21 = int_to_ptr.vmem [resolvable:$false] %s3320_s21 }
 0x428   : > { %828 = vrot.lane.b32.xlu1 %v794_v9, %s3395_s8 }
 0x42a   : > { %830 = vrot.lane.b32.xlu0 %v795_v15, %s3395_s8  ;;  %s5500_s8 = scalar_lea.hbm %s5566_s4, %s3104_s7 }
 0x42c   : > { %835 = vrot.lane.b32.xlu1 %v794_v9, %s3404_s23  ;;  %v3850_v9 = vcombine.low %v998_v34, %v1002_v17  ;;  %v3879_v17 = vld [vmem:[#allocation8 + $0x61] ss:$8 sm:$0x3] }
 0x42e   : > { %837 = vrot.lane.b32.xlu0 %v795_v15, %s3404_s23  ;;  %v3852_v15 = vcombine.low %v1030_v37, %v1034_v39  ;;  %v1010_v37 = vrot.slane %v3850_v9, %v3798_v10 }
 0x430   : > { %883 = vrot.lane.b32.xlu1 %v849_v12, %s3404_s23  ;;  %v2713_v12 = vrot.slane %v2672_v54, %v3816_v19  ;;  %v4045_v54 = vld [vmem:[#allocation8 + $0x16] ss:$8 sm:$0x3] }
 0x432   : > { %885 = vrot.lane.b32.xlu0 %v850_v8, %s3404_s23  ;;  %v3848_v8 = vcombine.low %v1873_v32, %v1877_v33  ;;  %v3873_v32 = vand.u32 127, %v621_v2  ;;  %v1853_v33 = vrot.slane %v3844_v3, %v3798_v10  ;;  %v3877_v34 = vcombine.low %v2709_v7, %v2713_v12  ;;  %v3937_v7 = vld [vmem:[#allocation8 + $0x80] ss:$8 sm:$0x3]  ;;  %s3322_s23 = scalar_lea.vmem %s3321_s21, 4096 }
 0x433   : > { %v3971_v12 = vld [vmem:[#allocation8 + $0x63] ss:$8 sm:$0x3]  ;;  %v1012_v3 = vmul.f32 %v1010_v37, %v3804_v38  ;;  %v4033_v2 = vld [vmem:[#allocation8] ss:$8 sm:$0x3] }
 0x434   : > { %5725 = vst [vmem:[#allocation26_spill] sm:$0xff] %v3873_v32  ;;  %v1885_v36 = vrot.slane %v3848_v8, %v3798_v10  ;;  %v1855_v50 = vmul.f32 %v1853_v33, %v3804_v38  ;;  %v5726_v33 = vrot.slane %v3852_v15, %v3798_v10  ;;  %v5727_v8 = vrot.slane %v3854_v20, %v3798_v10  ;;  %v4083_v20 = vld [vmem:[#allocation8 + $0x43] ss:$8 sm:$0x3] }
 0x435   : > { %v4096_v6 = vrot.slane %v1012_v3, %v3798_v10  ;;  %v5735_v3 = vrot.slane %v3860_v28, %v3798_v10  ;;  %vm804_vm9 = vcmp.lt.s32.totalorder %v3873_v32, 3  ;;  %vm811_vm10 = vcmp.lt.s32.totalorder %v3873_v32, 2 }
 0x436   : > { %v1887_v61 = vmul.f32 %v1885_v36, %v3800_v4  ;;  %v4055_v36 = vld [vmem:[#allocation8 + $0x25] ss:$8 sm:$0x3]  ;;  %v1044_v42 = vmul.f32 %v5726_v33, %v3800_v4  ;;  %v1293_v9 = vmul.f32 %v5727_v8, %v3804_v38  ;;  %v4085_v8 = vld [vmem:[#allocation8 + $0x52] ss:$8 sm:$0x3]  ;;  %v4088_v46 = vrot.slane %v1855_v50, %v3798_v10 }
 0x437   : > { %5730 = vst [vmem:[#allocation29_spill] sm:$0xff] %v4096_v6  ;;  %v5731_v33 = vrot.slane %v3856_v21, %v3798_v10  ;;  %v1574_v50 = vmul.f32 %v5732_v5, %v3804_v38  ;;  %v1606_v21 = vmul.f32 %v5735_v3, %v3800_v4  ;;  %v5736_v5 = vrot.slane %v3862_v0, %v3798_v10  ;;  %v4226_v6 = vld [vmem:[#allocation8 + $0x20] ss:$8 sm:$0x3] }
 0x438   : > { %5728 = vst [vmem:[#allocation27_spill] sm:$0xff] %v4088_v46  ;;  %v4091_v37 = vrot.slane %v1887_v61, %v3798_v10  ;;  %v4109_v16 = vrot.slane %v1044_v42, %v3798_v10  ;;  %v4112_v39 = vrot.slane %v1293_v9, %v3798_v10  ;;  %v4126_v61 = vld [vmem:[#allocation8 + $0x1] ss:$8 sm:$0x3]  ;;  %v5737_v42 = vrot.slane %v3864_v29, %v3798_v10 }
 0x439   : > { %v1325_v15 = vmul.f32 %v5731_v33, %v3800_v4  ;;  %v4128_v9 = vld [vmem:[#allocation8 + $0x10] ss:$8 sm:$0x3]  ;;  %v2129_v26 = vmul.f32 %v5736_v5, %v3804_v38  ;;  %v4152_v3 = vrot.slane %v1574_v50, %v3798_v10  ;;  %v5740_v0 = vrot.slane %v3866_v1, %v3798_v10  ;;  %5750 = vst [vmem:[#allocation40_spill] sm:$0xff] %v4226_v6 }
 0x43a   : > { %5729 = vst [vmem:[#allocation28_spill] sm:$0xff] %v4091_v37  ;;  %5733 = vst [vmem:[#allocation30_spill] sm:$0xff] %v4109_v16  ;;  %v2161_v33 = vmul.f32 %v5737_v42, %v3800_v4  ;;  %v4160_v42 = vld [vmem:[#allocation8 + $0x35] ss:$8 sm:$0x3]  ;;  %v4167_v13 = vrot.slane %v1606_v21, %v3798_v10  ;;  %v5748_v29 = vrot.slane %v3870_v31, %v3798_v10  ;;  %vm818_vm11 = vcmp.lt.s32.totalorder %v3873_v32, 1 }
 0x43b   : > { %5734 = vst [vmem:[#allocation31_spill] sm:$0xff] %v4112_v39  ;;  %v4149_v28 = vrot.slane %v1325_v15, %v3798_v10  ;;  %5739 = vst [vmem:[#allocation33_spill] sm:$0xff] %v4152_v3  ;;  %v2410_v5 = vmul.f32 %v5740_v0, %v3804_v38  ;;  %v4186_v50 = vrot.slane %v2129_v26, %v3798_v10  ;;  %v4202_v26 = vld [vmem:[#allocation8 + $0x2] ss:$8 sm:$0x3]  ;;  %vm825_vm12 = vcmp.lt.s32.totalorder %v3873_v32, 127 }
 0x43c   : > { %5741 = vst [vmem:[#allocation34_spill] sm:$0xff] %v4167_v13  ;;  %v4189_v1 = vrot.slane %v2161_v33, %v3798_v10  ;;  %5745 = vst [vmem:[#allocation38_spill] sm:$0xff] %v4202_v26  ;;  %v5747_v33 = vrot.slane %v3868_v30, %v3798_v10  ;;  %v2691_v15 = vmul.f32 %v5748_v29, %v3804_v38  ;;  %v4228_v38 = vld [vmem:[#allocation8 + $0x27] ss:$8 sm:$0x3]  ;;  %vm832_vm13 = vcmp.lt.s32.totalorder %v3873_v32, 126 }
 0x43d   : > { %5738 = vst [vmem:[#allocation32_spill] sm:$0xff] %v4149_v28  ;;  %5742 = vst [vmem:[#allocation35_spill] sm:$0xff] %v4186_v50  ;;  %v4198_v56 = vrot.slane %v2410_v5, %v3798_v10  ;;  %v5749_v5 = vrot.slane %v3877_v34, %v3798_v10  ;;  %v4244_v16 = vld [vmem:[#allocation8 + $0x36] ss:$8 sm:$0x3]  ;;  %vm839_vm14 = vcmp.lt.s32.totalorder %v3873_v32, 125 }
 0x43e   : > { %5743 = vst [vmem:[#allocation36_spill] sm:$0xff] %v4189_v1  ;;  %v2442_v0 = vmul.f32 %v5747_v33, %v3800_v4  ;;  %5751 = vst [vmem:[#allocation41_spill] sm:$0xff] %v4228_v38  ;;  %v4246_v31 = vld [vmem:[#allocation8 + $0x45] ss:$8 sm:$0x3]  ;;  %v4260_v33 = vrot.slane %v2691_v15, %v3798_v10 }
 0x43f   : > { %5744 = vst [vmem:[#allocation37_spill] sm:$0xff] %v4198_v56  ;;  %v2723_v39 = vmul.f32 %v5749_v5, %v3800_v4  ;;  %5752 = vst [vmem:[#allocation42_spill] sm:$0xff] %v4244_v16  ;;  %v4252_v29 = vld [vmem:[#allocation8 + $0x54] ss:$8 sm:$0x3] }
 0x440   : > { %5753 = vst [vmem:[#allocation43_spill] sm:$0xff] %v4246_v31  ;;  %5754 = vst [vmem:[#allocation44_spill] sm:$0xff] %v4252_v29  ;;  %v4254_v21 = vld [vmem:[#allocation8 + $0x65] ss:$8 sm:$0x3]  ;;  %v4257_v5 = vrot.slane %v2442_v0, %v3798_v10 }
 0x441   : > { %5756 = vst [vmem:[#allocation46_spill] sm:$0xff] %v4260_v33  ;;  %v4263_v30 = vrot.slane %v2723_v39, %v3798_v10  ;;  %v4273_v0 = vld [vmem:[#allocation8 + $0x74] ss:$8 sm:$0x3] }
 0x442   : > { %5755 = vst [vmem:[#allocation45_spill] sm:$0xff] %v4257_v5  ;;  %v4275_v50 = vld [vmem:[#allocation8 + $0x83] ss:$8 sm:$0x3] }
 0x443   : > { %5757 = vst [vmem:[#allocation47_spill] sm:$0xff] %v4263_v30  ;;  %v4285_v34 = vld [vmem:[#allocation8 + $0x4] ss:$8 sm:$0x3] }
 0x444   : > { %5758 = vst [vmem:[#allocation48_spill] sm:$0xff] %v4285_v34  ;;  %v4287_v1 = vld [vmem:[#allocation8 + $0x13] ss:$8 sm:$0x3] }
 0x445   : > { %5759 = vst [vmem:[#allocation49_spill] sm:$0xff] %v4287_v1  ;;  %v4293_v10 = vld [vmem:[#allocation8 + $0x22] ss:$8 sm:$0x3] }
 0x446   : > { %5760 = vst [vmem:[#allocation50_spill] sm:$0xff] %v4293_v10  ;;  %v4295_v3 = vld [vmem:[#allocation8 + $0x31] ss:$8 sm:$0x3] }
 0x447   : > { %5761 = vst [vmem:[#allocation51_spill] sm:$0xff] %v4295_v3  ;;  %v4301_v39 = vld [vmem:[#allocation8 + $0x40] ss:$8 sm:$0x3] }
 0x448   : > { %5762 = vst [vmem:[#allocation52_spill] sm:$0xff] %v4301_v39  ;;  %v4303_v28 = vld [vmem:[#allocation8 + $0x47] ss:$8 sm:$0x3] }
 0x449   : > { %5763 = vst [vmem:[#allocation53_spill] sm:$0xff] %v4303_v28  ;;  %v4315_v4 = vld [vmem:[#allocation8 + $0x56] ss:$8 sm:$0x3] }
 0x44a   : > { %5764 = vst [vmem:[#allocation54_spill] sm:$0xff] %v4315_v4  ;;  %v4317_v29 = vld [vmem:[#allocation8 + $0x66] ss:$8 sm:$0x3] }
 0x44b   : > { %5765 = vst [vmem:[#allocation55_spill] sm:$0xff] %v4317_v29  ;;  %v4333_v33 = vld [vmem:[#allocation8 + $0x32] ss:$8 sm:$0x3] }
 0x44c   : > { %5766 = vst [vmem:[#allocation56_spill] sm:$0xff] %v4333_v33  ;;  %v4335_v31 = vld [vmem:[#allocation8 + $0xa1] ss:$8 sm:$0x3] }
 0x44d   : > { %v4345_v15 = vld [vmem:[#allocation8 + $0x75] ss:$8 sm:$0x3]  ;;  %v4347_v5 = vld [vmem:[#allocation8 + $0xb0] ss:$8 sm:$0x3] }
 0x44e   : > { %5767 = vst [vmem:[#allocation57_spill] sm:$0xff] %v4345_v15  ;;  %v4357_v37 = vld [vmem:[#allocation8 + $0x5] ss:$8 sm:$0x3] }
 0x44f   : > { %5768 = vst [vmem:[#allocation58_spill] sm:$0xff] %v4357_v37  ;;  %v4359_v10 = vld [vmem:[#allocation8 + $0x84] ss:$8 sm:$0x3] }
 0x450   : > { %5769 = vst [vmem:[#allocation59_spill] sm:$0xff] %v4359_v10  ;;  %v4369_v56 = vld [vmem:[#allocation8 + $0x14] ss:$8 sm:$0x3] }
 0x451   : > { %5770 = vst [vmem:[#allocation60_spill] sm:$0xff] %v4369_v56  ;;  %v4371_v28 = vld [vmem:[#allocation8 + $0xb7] ss:$8 sm:$0x3] }
 0x452   : > { %v4373_v13 = vld [vmem:[#allocation8 + $0x6] ss:$8 sm:$0x3]  ;;  %v4381_v4 = vld [vmem:[#allocation8 + $0xa2] ss:$8 sm:$0x3] }
 0x453   : > { %5771 = vst [vmem:[#allocation61_spill] sm:$0xff] %v4373_v13  ;;  %5772 = vst [vmem:[#allocation62_spill] sm:$0xff] %v4381_v4  ;;  %v4385_v30 = vld [vmem:[#allocation8 + $0x67] ss:$8 sm:$0x3] }
 0x454   : > { %5773 = vst [vmem:[#allocation63_spill] sm:$0xff] %v4385_v30  ;;  %v4389_v34 = vld [vmem:[#allocation8 + $0x23] ss:$8 sm:$0x3] }
 0x455   : > { %5774 = vst [vmem:[#allocation64_spill] sm:$0xff] %v4389_v34  ;;  %v4402_v33 = vld [vmem:[#allocation8 + $0x15] ss:$8 sm:$0x3] }
 0x456   : > { %5775 = vst [vmem:[#allocation65_spill] sm:$0xff] %v4402_v33  ;;  %v4404_v15 = vld [vmem:[#allocation8 + $0x76] ss:$8 sm:$0x3] }
 0x457   : > { %5776 = vst [vmem:[#allocation66_spill] sm:$0xff] %v4404_v15  ;;  %v4416_v29 = vld [vmem:[#allocation8 + $0x24] ss:$8 sm:$0x3] }
 0x458   : > { %5777 = vst [vmem:[#allocation67_spill] sm:$0xff] %v4416_v29  ;;  %v4418_v37 = vld [vmem:[#allocation8 + $0x41] ss:$8 sm:$0x3]  ;;  %v5794_v29 = vrot.slane %v3879_v17, %v3816_v19 }
 0x459   : > { %5778 = vst [vmem:[#allocation68_spill] sm:$0xff] %v4418_v37  ;;  %v4428_v16 = vld [vmem:[#allocation8 + $0x85] ss:$8 sm:$0x3] }
 0x45a   : > { %5779 = vst [vmem:[#allocation69_spill] sm:$0xff] %v4428_v16  ;;  %v4432_v10 = vld [vmem:[#allocation8 + $0xb1] ss:$8 sm:$0x3] }
 0x45b   : > { %5780 = vst [vmem:[#allocation70_spill] sm:$0xff] %v4432_v10  ;;  %v4442_v3 = vld [vmem:[#allocation8 + $0x50] ss:$8 sm:$0x3] }
 0x45c   : > { %5781 = vst [vmem:[#allocation71_spill] sm:$0xff] %v4442_v3  ;;  %v4444_v13 = vld [vmem:[#allocation8 + $0xc0] ss:$8 sm:$0x3] }
 0x45d   : > { %5782 = vst [vmem:[#allocation72_spill] sm:$0xff] %v4444_v13  ;;  %v4455_v34 = vld [vmem:[#allocation8 + $0x42] ss:$8 sm:$0x3]  ;;  %v5795_v13 = vrot.slane %v3881_v35, %v3813_v18 }
 0x45e   : > { %5783 = vst [vmem:[#allocation73_spill] sm:$0xff] %v4455_v34  ;;  %v4457_v46 = vld [vmem:[#allocation8 + $0xa3] ss:$8 sm:$0x3]  ;;  %v6004_v32 = vld [vmem:[#allocation66_spill] sm:$0xff] }
 0x45f   : > { %5784 = vst [vmem:[#allocation74_spill] sm:$0xff] %v4457_v46  ;;  %v4467_v38 = vld [vmem:[#allocation8 + $0x93] ss:$8 sm:$0x3] }
 0x460   : > { %5785 = vst [vmem:[#allocation75_spill] sm:$0xff] %v4467_v38  ;;  %v4475_v15 = vld [vmem:[#allocation8 + $0x51] ss:$8 sm:$0x3] }
 0x461   : > { %5786 = vst [vmem:[#allocation76_spill] sm:$0xff] %v4475_v15  ;;  %v4477_v30 = vld [vmem:[#allocation8 + $0x57] ss:$8 sm:$0x3] }
 0x462   : > { %5787 = vst [vmem:[#allocation77_spill] sm:$0xff] %v4477_v30  ;;  %v4487_v33 = vld [vmem:[#allocation8 + $0xb2] ss:$8 sm:$0x3] }
 0x463   : > { %5788 = vst [vmem:[#allocation78_spill] sm:$0xff] %v4487_v33  ;;  %v4489_v16 = vld [vmem:[#allocation8 + $0x60] ss:$8 sm:$0x3] }
 0x464   : > { %5789 = vst [vmem:[#allocation79_spill] sm:$0xff] %v4489_v16  ;;  %v4498_v10 = vld [vmem:[#allocation8 + $0xc1] ss:$8 sm:$0x3] }
 0x465   : > { %5790 = vst [vmem:[#allocation80_spill] sm:$0xff] %v4498_v10  ;;  %v4512_v3 = vld [vmem:[#allocation8 + $0x33] ss:$8 sm:$0x3] }
 0x466   : > { %5791 = vst [vmem:[#allocation81_spill] sm:$0xff] %v4512_v3  ;;  %v4514_v34 = vld [vmem:[#allocation8 + $0x94] ss:$8 sm:$0x3] }
 0x467   : > { %5792 = vst [vmem:[#allocation82_spill] sm:$0xff] %v4514_v34 }
 0x476   : > { %v854_v37 = vpop.permute.xlu1 %853 }
 0x478   : > { %v856_v39 = vpop.permute.xlu0 %855 }
 0x479   : > { %v857_v56 = vsel %vm804_vm9, %v854_v37, %v856_v39  ;;  %v858_v38 = vsel %vm804_vm9, %v856_v39, %v854_v37  ;;  %v5793_v39 = vrot.slane %v3879_v17, %v3813_v18  ;;  %v5796_v37 = vrot.slane %v3881_v35, %v3816_v19 }
 0x47a   : > { %v860_v46 = vpop.permute.xlu1 %859  ;;  %v4549_v16 = vmul.f32 %v5794_v29, %v857_v56  ;;  %v4554_v1 = vmul.f32 %v5795_v13, %v858_v38  ;;  %v5798_v17 = vrot.slane %v3891_v40, %v3816_v19  ;;  %v5799_v13 = vrot.slane %v3893_v41, %v3813_v18 }
 0x47b   : > { %v4544_v30 = vmul.f32 %v5793_v39, %v858_v38  ;;  %v4561_v3 = vmul.f32 %v5796_v37, %v857_v56  ;;  %v5797_v39 = vrot.slane %v3891_v40, %v3813_v18  ;;  %v5800_v35 = vrot.slane %v3893_v41, %v3816_v19 }
 0x47c   : > { %v4571_v29 = vmul.f32 %v5798_v17, %v857_v56  ;;  %v4576_v33 = vmul.f32 %v5799_v13, %v858_v38  ;;  %v862_v4 = vpop.permute.xlu0 %861  ;;  %v5802_v13 = vrot.slane %v3903_v25, %v3816_v19  ;;  %v5803_v41 = vrot.slane %v3905_v45, %v3813_v18 }
 0x47d   : > { %v4566_v10 = vmul.f32 %v5797_v39, %v858_v38  ;;  %v4581_v37 = vmul.f32 %v5800_v35, %v857_v56  ;;  %v5801_v39 = vrot.slane %v3903_v25, %v3813_v18  ;;  %v863_v40 = vsel %vm811_vm10, %v860_v46, %v862_v4 }
 0x47e   : > { %v864_v17 = vsel %vm811_vm10, %v862_v4, %v860_v46  ;;  %v4595_v15 = vmul.f32 %v5802_v13, %v857_v56  ;;  %v4600_v35 = vmul.f32 %v5803_v41, %v858_v38  ;;  %v4610_v26 = vmul.f32 %v5805_v55, %v858_v38  ;;  %v866_v46 = vpop.permute.xlu1 %865 }
 0x47f   : > { %v4586_v34 = vmul.f32 %v5801_v39, %v858_v38  ;;  %v5804_v39 = vrot.slane %v3905_v45, %v3816_v19  ;;  %v5806_v25 = vrot.slane %v3921_v57, %v3816_v19  ;;  %v5807_v13 = vrot.slane %v3923_v58, %v3813_v18 }
 0x480   : > { %v5808_v45 = vrot.slane %v3923_v58, %v3816_v19  ;;  %v5810_v55 = vrot.slane %v3935_v63, %v3813_v18  ;;  %v5812_v57 = vrot.slane %v3935_v63, %v3816_v19  ;;  %v5816_v58 = vrot.slane %v3937_v7, %v3816_v19 }
 0x481   : > { %v4605_v6 = vmul.f32 %v5804_v39, %v857_v56  ;;  %v4615_v4 = vmul.f32 %v5806_v25, %v857_v56  ;;  %v4620_v41 = vmul.f32 %v5807_v13, %v864_v17  ;;  %v5814_v25 = vrot.slane %v3937_v7, %v3813_v18 }
 0x482   : > { %v4625_v39 = vmul.f32 %v5808_v45, %v863_v40  ;;  %v4630_v38 = vmul.f32 %v5810_v55, %v864_v17  ;;  %v4635_v56 = vmul.f32 %v5812_v57, %v863_v40  ;;  %v4645_v45 = vmul.f32 %v5816_v58, %v863_v40 }
 0x483   : > { %v4640_v13 = vmul.f32 %v5814_v25, %v864_v17  ;;  %v5819_v63 = vrot.slane %v3947_v23, %v3816_v19  ;;  %v5821_v25 = vrot.slane %v3949_v53, %v3813_v18 }
 0x484   : > { %5809 = vst [vmem:[#allocation83_spill] sm:$0xff] %v4625_v39  ;;  %5811 = vst [vmem:[#allocation84_spill] sm:$0xff] %v4630_v38  ;;  %v5818_v39 = vrot.slane %v3947_v23, %v3813_v18  ;;  %v868_v38 = vpop.permute.xlu0 %867  ;;  %v5824_v23 = vrot.slane %v3959_v59, %v3813_v18 }
 0x485   : > { %5813 = vst [vmem:[#allocation85_spill] sm:$0xff] %v4635_v56  ;;  %5815 = vst [vmem:[#allocation86_spill] sm:$0xff] %v4640_v13  ;;  %v4655_v57 = vmul.f32 %v5819_v63, %v863_v40  ;;  %v4660_v13 = vmul.f32 %v5821_v25, %v864_v17  ;;  %v869_v7 = vsel %vm818_vm11, %v866_v46, %v868_v38 }
 0x486   : > { %5817 = vst [vmem:[#allocation87_spill] sm:$0xff] %v4645_v45  ;;  %v4650_v55 = vmul.f32 %v5818_v39, %v864_v17  ;;  %v870_v58 = vsel %vm818_vm11, %v868_v38, %v866_v46  ;;  %v5823_v39 = vrot.slane %v3949_v53, %v3816_v19  ;;  %v4674_v63 = vmul.f32 %v5824_v23, %v864_v17  ;;  %v872_v46 = vpop.permute.xlu1 %871 }
 0x487   : > { %5820 = vst [vmem:[#allocation88_spill] sm:$0xff] %v4655_v57  ;;  %5822 = vst [vmem:[#allocation89_spill] sm:$0xff] %v4660_v13  ;;  %v5825_v25 = vrot.slane %v3959_v59, %v3816_v19  ;;  %v5826_v56 = vrot.slane %v3961_v22, %v3813_v18  ;;  %v5827_v53 = vrot.slane %v3961_v22, %v3816_v19 }
 0x488   : > { %v4669_v45 = vmul.f32 %v5823_v39, %v863_v40  ;;  %v5828_v39 = vrot.slane %v3971_v12, %v3813_v18  ;;  %v5829_v59 = vrot.slane %v3971_v12, %v3816_v19  ;;  %v5833_v22 = vrot.slane %v3981_v49, %v3816_v19 }
 0x489   : > { %v4679_v13 = vmul.f32 %v5825_v25, %v863_v40  ;;  %v4684_v57 = vmul.f32 %v5826_v56, %v864_v17  ;;  %v4689_v38 = vmul.f32 %v5827_v53, %v863_v40  ;;  %v5831_v17 = vrot.slane %v3981_v49, %v3813_v18 }
 0x48a   : > { %v4694_v23 = vmul.f32 %v5828_v39, %v870_v58  ;;  %v4699_v25 = vmul.f32 %v5829_v59, %v869_v7  ;;  %v4709_v40 = vmul.f32 %v5833_v22, %v869_v7  ;;  %v5835_v53 = vrot.slane %v3991_v48, %v3813_v18 }
 0x48b   : > { %v4704_v56 = vmul.f32 %v5831_v17, %v870_v58  ;;  %v5837_v12 = vrot.slane %v3991_v48, %v3816_v19  ;;  %v5840_v49 = vrot.slane %v3993_v60, %v3816_v19 }
 0x48c   : > { %5830 = vst [vmem:[#allocation90_spill] sm:$0xff] %v4699_v25  ;;  %5834 = vst [vmem:[#allocation92_spill] sm:$0xff] %v4709_v40  ;;  %v4714_v39 = vmul.f32 %v5835_v53, %v870_v58  ;;  %v5839_v25 = vrot.slane %v3993_v60, %v3813_v18  ;;  %v5842_v53 = vrot.slane %v4001_v52, %v3813_v18 }
 0x48d   : > { %5832 = vst [vmem:[#allocation91_spill] sm:$0xff] %v4704_v56  ;;  %v4719_v59 = vmul.f32 %v5837_v12, %v869_v7  ;;  %v874_v56 = vpop.permute.xlu0 %873  ;;  %v4729_v22 = vmul.f32 %v5840_v49, %v869_v7  ;;  %v5845_v60 = vrot.slane %v4003_v44, %v3813_v18  ;;  %v5848_v40 = vrot.slane %v4013_v43, %v3813_v18 }
 0x48e   : > { %5836 = vst [vmem:[#allocation93_spill] sm:$0xff] %v4714_v39  ;;  %v4724_v17 = vmul.f32 %v5839_v25, %v870_v58  ;;  %v4734_v39 = vmul.f32 %v5842_v53, %v870_v58  ;;  %v4738_v48 = vsel %vm825_vm12, %v872_v46, %v874_v56  ;;  %v876_v12 = vsel %vm825_vm12, %v874_v56, %v872_v46  ;;  %v799_v46 = vpop.permute.xlu1 %798 }
 0x48f   : > { %5838 = vst [vmem:[#allocation94_spill] sm:$0xff] %v4719_v59  ;;  %5841 = vst [vmem:[#allocation95_spill] sm:$0xff] %v4729_v22  ;;  %v5844_v25 = vrot.slane %v4001_v52, %v3816_v19  ;;  %v4750_v49 = vmul.f32 %v5845_v60, %v870_v58  ;;  %v5846_v53 = vrot.slane %v4003_v44, %v3816_v19 }
 0x490   : > { %5843 = vst [vmem:[#allocation96_spill] sm:$0xff] %v4734_v39  ;;  %v4760_v22 = vmul.f32 %v5848_v40, %v870_v58  ;;  %v5850_v52 = vrot.slane %v4013_v43, %v3816_v19  ;;  %v5854_v44 = vrot.slane %v4015_v24, %v3816_v19  ;;  %v5856_v58 = vrot.slane %v4254_v21, %v3816_v19 }
 0x491   : > { %v4745_v59 = vmul.f32 %v5844_v25, %v869_v7  ;;  %v4755_v39 = vmul.f32 %v5846_v53, %v869_v7  ;;  %v5852_v25 = vrot.slane %v4015_v24, %v3813_v18  ;;  %v5858_v43 = vrot.slane %v4254_v21, %v3813_v18 }
 0x492   : > { %5849 = vst [vmem:[#allocation98_spill] sm:$0xff] %v4760_v22  ;;  %v4765_v56 = vmul.f32 %v5850_v52, %v869_v7  ;;  %v4776_v53 = vmul.f32 %v5854_v44, %v876_v12  ;;  %v4781_v40 = vmul.f32 %v5856_v58, %v876_v12  ;;  %v801_v22 = vpop.permute.xlu0 %800  ;;  %v5860_v52 = vrot.slane %v4273_v0, %v3816_v19 }
 0x493   : > { %5847 = vst [vmem:[#allocation97_spill] sm:$0xff] %v4755_v39  ;;  %v4771_v60 = vmul.f32 %v5852_v25, %v4738_v48  ;;  %v4787_v7 = vmul.f32 %v5858_v43, %v4738_v48  ;;  %v5862_v24 = vrot.slane %v4273_v0, %v3813_v18  ;;  %v5864_v58 = vrot.slane %v4275_v50, %v3816_v19 }
 0x494   : > { %5851 = vst [vmem:[#allocation99_spill] sm:$0xff] %v4765_v56  ;;  %5855 = vst [vmem:[#allocation101_spill] sm:$0xff] %v4776_v53  ;;  %v4792_v25 = vmul.f32 %v5860_v52, %v876_v12  ;;  %v805_v21 = vsel %vm804_vm9, %v799_v46, %v801_v22  ;;  %v806_v43 = vsel %vm804_vm9, %v801_v22, %v799_v46  ;;  %v808_v22 = vpop.permute.xlu1 %807 }
 0x495   : > { %5853 = vst [vmem:[#allocation100_spill] sm:$0xff] %v4771_v60  ;;  %5857 = vst [vmem:[#allocation102_spill] sm:$0xff] %v4781_v40  ;;  %v4798_v44 = vmul.f32 %v5862_v24, %v4738_v48  ;;  %v4803_v53 = vmul.f32 %v5864_v58, %v876_v12  ;;  %v5866_v52 = vrot.slane %v4275_v50, %v3813_v18 }
 0x496   : > { %5859 = vst [vmem:[#allocation103_spill] sm:$0xff] %v4787_v7  ;;  %5861 = vst [vmem:[#allocation104_spill] sm:$0xff] %v4792_v25  ;;  %v5868_v0 = vrot.slane %v4335_v31, %v3816_v19  ;;  %v5870_v58 = vrot.slane %v4033_v2, %v3813_v18  ;;  %v5872_v50 = vrot.slane %v4335_v31, %v3813_v18  ;;  %v810_v40 = vpop.permute.xlu0 %809 }
 0x497   : > { %5863 = vst [vmem:[#allocation105_spill] sm:$0xff] %v4798_v44  ;;  %5865 = vst [vmem:[#allocation106_spill] sm:$0xff] %v4803_v53  ;;  %v4813_v60 = vmul.f32 %v5866_v52, %v4738_v48  ;;  %v5871_v44 = vrot.slane %v4033_v2, %v3816_v19  ;;  %v5874_v52 = vrot.slane %v4347_v5, %v3816_v19 }
 0x498   : > { %v4818_v24 = vmul.f32 %v5868_v0, %v876_v12  ;;  %v903_v53 = vmul.f32 %v5870_v58, %v806_v43  ;;  %v4830_v46 = vmul.f32 %v5872_v50, %v4738_v48  ;;  %v5877_v2 = vrot.slane %v4043_v51, %v3816_v19 }
 0x499   : > { %5867 = vst [vmem:[#allocation107_spill] sm:$0xff] %v4813_v60  ;;  %v904_v25 = vmul.f32 %v5871_v44, %v805_v21  ;;  %v4835_v0 = vmul.f32 %v5874_v52, %v876_v12  ;;  %v5878_v60 = vrot.slane %v4055_v36, %v3813_v18  ;;  %v5879_v31 = vrot.slane %v4055_v36, %v3816_v19 }
 0x49a   : > { %5869 = vst [vmem:[#allocation108_spill] sm:$0xff] %v4818_v24  ;;  %5873 = vst [vmem:[#allocation109_spill] sm:$0xff] %v4830_v46  ;;  %v5876_v24 = vrot.slane %v4043_v51, %v3813_v18  ;;  %v1185_v44 = vmul.f32 %v5877_v2, %v805_v21  ;;  %v5880_v52 = vrot.slane %v4045_v54, %v3813_v18 }
 0x49b   : > { %5875 = vst [vmem:[#allocation110_spill] sm:$0xff] %v4835_v0  ;;  %v1746_v7 = vmul.f32 %v5878_v60, %v806_v43  ;;  %v1747_v50 = vmul.f32 %v5879_v31, %v805_v21  ;;  %v5881_v46 = vrot.slane %v4045_v54, %v3816_v19  ;;  %v5882_v51 = vrot.slane %v4347_v5, %v3813_v18 }
 0x49c   : > { %v1184_v58 = vmul.f32 %v5876_v24, %v806_v43  ;;  %v1465_v0 = vmul.f32 %v5880_v52, %v806_v43  ;;  %v5883_v60 = vrot.slane %v4371_v28, %v3816_v19  ;;  %v920_v31 = vadd.f32 %v4544_v30, %v903_v53 }
 0x49d   : > { %v1466_v24 = vmul.f32 %v5881_v46, %v805_v21  ;;  %v4859_v2 = vmul.f32 %v5882_v51, %v4738_v48  ;;  %v921_v52 = vadd.f32 %v4549_v16, %v904_v25  ;;  %v1763_v56 = vadd.f32 %v4576_v33, %v1746_v7 }
 0x49e   : > { %v4864_v36 = vmul.f32 %v5883_v60, %v876_v12  ;;  %v1764_v54 = vadd.f32 %v4581_v37, %v1747_v50  ;;  %v5884_v46 = vrot.slane %v4061_v47, %v3813_v18  ;;  %v5885_v5 = vrot.slane %v4061_v47, %v3816_v19 }
 0x49f   : > { %v5886_v12 = vrot.slane %v4083_v20, %v3813_v18  ;;  %v5887_v30 = vrot.slane %v4083_v20, %v3816_v19  ;;  %v1201_v33 = vadd.f32 %v4554_v1, %v1184_v58  ;;  %v1202_v37 = vadd.f32 %v4561_v3, %v1185_v44  ;;  %v815_v58 = vpop.permute.xlu1 %814  ;;  %v817_v3 = vpop.permute.xlu0 %816 }
 0x4a0   : > { %v2020_v39 = vmul.f32 %v5884_v46, %v806_v43  ;;  %v2021_v51 = vmul.f32 %v5885_v5, %v805_v21  ;;  %v812_v53 = vsel %vm811_vm10, %v808_v22, %v810_v40  ;;  %v813_v7 = vsel %vm811_vm10, %v810_v40, %v808_v22 }
 0x4a1   : > { %v2301_v60 = vmul.f32 %v5886_v12, %v806_v43  ;;  %v2302_v16 = vmul.f32 %v5887_v30, %v805_v21  ;;  %v1482_v47 = vadd.f32 %v4566_v10, %v1465_v0  ;;  %v1483_v25 = vadd.f32 %v4571_v29, %v1466_v24 }
 0x4a2   : > { %v5888_v50 = vrot.slane %v4085_v8, %v3813_v18  ;;  %v5889_v20 = vrot.slane %v4085_v8, %v3816_v19  ;;  %v2037_v44 = vadd.f32 %v4586_v34, %v2020_v39  ;;  %v2038_v5 = vadd.f32 %v4595_v15, %v2021_v51 }
 0x4a3   : > { %v5890_v40 = vrot.slane %v4126_v61, %v3813_v18  ;;  %v5891_v29 = vrot.slane %v4126_v61, %v3816_v19  ;;  %v2319_v0 = vadd.f32 %v4605_v6, %v2302_v16  ;;  %v5892_v8 = vrot.slane %v4128_v9, %v3813_v18 }
 0x4a4   : > { %v2582_v46 = vmul.f32 %v5888_v50, %v806_v43  ;;  %v2583_v1 = vmul.f32 %v5889_v20, %v805_v21  ;;  %v2318_v43 = vadd.f32 %v4600_v35, %v2301_v60  ;;  %v5893_v34 = vrot.slane %v4128_v9, %v3816_v19  ;;  %v880_v20 = vpop.permute.xlu0 %879 }
 0x4a5   : > { %v937_v10 = vmul.f32 %v5890_v40, %v813_v7  ;;  %v938_v22 = vmul.f32 %v5891_v29, %v812_v53  ;;  %v1218_v21 = vmul.f32 %v5892_v8, %v813_v7  ;;  %v5894_v39 = vrot.slane %v4130_v27, %v3813_v18 }
 0x4a6   : > { %v1219_v15 = vmul.f32 %v5893_v34, %v812_v53  ;;  %v5895_v61 = vrot.slane %v4130_v27, %v3816_v19  ;;  %v5896_v35 = vrot.slane %v4144_v14, %v3813_v18  ;;  %v5897_v12 = vrot.slane %v4144_v14, %v3816_v19 }
 0x4a7   : > { %v1499_v24 = vmul.f32 %v5894_v39, %v813_v7  ;;  %v2599_v30 = vadd.f32 %v4610_v26, %v2582_v46  ;;  %v939_v9 = vadd.f32 %v937_v10, %v920_v31  ;;  %v940_v16 = vadd.f32 %v938_v22, %v921_v52 }
 0x4a8   : > { %v1500_v51 = vmul.f32 %v5895_v61, %v812_v53  ;;  %v1780_v6 = vmul.f32 %v5896_v35, %v813_v7  ;;  %v1781_v60 = vmul.f32 %v5897_v12, %v812_v53  ;;  %v1220_v50 = vadd.f32 %v1218_v21, %v1201_v33 }
 0x4a9   : > { %v5898_v27 = vrot.slane %v4160_v42, %v3813_v18  ;;  %v5899_v34 = vrot.slane %v4160_v42, %v3816_v19  ;;  %v5900_v14 = vrot.slane %v4177_v62, %v3813_v18  ;;  %v5901_v31 = vrot.slane %v4177_v62, %v3816_v19  ;;  %v878_v42 = vpop.permute.xlu1 %877 }
 0x4aa   : > { %v1782_v40 = vadd.f32 %v1780_v6, %v1763_v56  ;;  %v1783_v29 = vadd.f32 %v1781_v60, %v1764_v54  ;;  %v5902_v56 = vrot.slane %v4183_v11, %v3813_v18  ;;  %v5903_v33 = vrot.slane %v4183_v11, %v3816_v19 }
 0x4ab   : > { %v2054_v8 = vmul.f32 %v5898_v27, %v813_v7  ;;  %v2055_v39 = vmul.f32 %v5899_v34, %v812_v53  ;;  %v2335_v26 = vmul.f32 %v5900_v14, %v813_v7  ;;  %v2336_v52 = vmul.f32 %v5901_v31, %v812_v53 }
 0x4ac   : > { %v2616_v54 = vmul.f32 %v5902_v56, %v813_v7  ;;  %v2617_v46 = vmul.f32 %v5903_v33, %v812_v53  ;;  %v1221_v10 = vadd.f32 %v1219_v15, %v1202_v37  ;;  %v1501_v22 = vadd.f32 %v1499_v24, %v1482_v47  ;;  %v5906_v53 = vld [vmem:[#allocation83_spill] sm:$0xff]  ;;  %v5907_v47 = vld [vmem:[#allocation84_spill] sm:$0xff]  ;;  %v5910_v24 = vld [vmem:[#allocation86_spill] sm:$0xff] }
 0x4ad   : > { %v1502_v21 = vadd.f32 %v1500_v51, %v1483_v25  ;;  %v2056_v61 = vadd.f32 %v2054_v8, %v2037_v44  ;;  %v2600_v35 = vadd.f32 %v4615_v4, %v2583_v1  ;;  %v2057_v6 = vadd.f32 %v2055_v39, %v2038_v5  ;;  %v5908_v4 = vld [vmem:[#allocation88_spill] sm:$0xff]  ;;  %v824_v5 = vpop.permute.xlu0 %823 }
 0x4ae   : > { %v2337_v12 = vadd.f32 %v2335_v26, %v2318_v43  ;;  %v5904_v62 = vrot.slane %v4371_v28, %v3813_v18  ;;  %v2338_v7 = vadd.f32 %v2336_v52, %v2319_v0  ;;  %v2618_v27 = vadd.f32 %v2616_v54, %v2599_v30  ;;  %v5909_v43 = vld [vmem:[#allocation85_spill] sm:$0xff]  ;;  %v5916_v26 = vld [vmem:[#allocation39_spill] sm:$0xff]  ;;  %v5919_v56 = vld [vmem:[#allocation40_spill] sm:$0xff] }
 0x4af   : > { %v954_v11 = vadd.f32 %v4620_v41, %v939_v9  ;;  %v955_v34 = vadd.f32 %v5906_v53, %v940_v16  ;;  %v2619_v37 = vadd.f32 %v2617_v46, %v2600_v35  ;;  %v1235_v25 = vadd.f32 %v5907_v47, %v1220_v50  ;;  %v5912_v0 = vld [vmem:[#allocation89_spill] sm:$0xff]  ;;  %v822_v50 = vpop.permute.xlu1 %821 }
 0x4b0   : > { %v4949_v60 = vmul.f32 %v5904_v62, %v4738_v48  ;;  %v1797_v44 = vadd.f32 %v4650_v55, %v1782_v40  ;;  %v1798_v1 = vadd.f32 %v5908_v4, %v1783_v29  ;;  %v1236_v15 = vadd.f32 %v5909_v43, %v1221_v10  ;;  %v5911_v48 = vld [vmem:[#allocation87_spill] sm:$0xff]  ;;  %v5913_v40 = vld [vmem:[#allocation38_spill] sm:$0xff]  ;;  %v5922_v46 = vld [vmem:[#allocation41_spill] sm:$0xff] }
 0x4b1   : > { %v1516_v28 = vadd.f32 %v5910_v24, %v1501_v22  ;;  %v1517_v51 = vadd.f32 %v5911_v48, %v1502_v21  ;;  %v2071_v30 = vadd.f32 %v5912_v0, %v2056_v61  ;;  %v2072_v41 = vadd.f32 %v4669_v45, %v2057_v6  ;;  %v831_v24 = vpop.permute.xlu0 %830 }
 0x4b2   : > { %5905 = vst [vmem:[#allocation111_spill] sm:$0xff] %v4949_v60  ;;  %v2352_v9 = vadd.f32 %v4674_v63, %v2337_v12  ;;  %v819_v16 = vsel %vm818_vm11, %v815_v58, %v817_v3  ;;  %v820_v55 = vsel %vm818_vm11, %v817_v3, %v815_v58  ;;  %v5914_v29 = vrot.slane %v5913_v40, %v3813_v18 }
 0x4b3   : > { %v5915_v39 = vrot.slane %v5913_v40, %v3816_v19  ;;  %v5917_v45 = vrot.slane %v5916_v26, %v3813_v18  ;;  %v5918_v63 = vrot.slane %v5916_v26, %v3816_v19  ;;  %v5920_v58 = vrot.slane %v5919_v56, %v3813_v18  ;;  %v5935_v26 = vld [vmem:[#allocation27_spill] sm:$0xff] }
 0x4b4   : > { %v971_v8 = vmul.f32 %v5914_v29, %v820_v55  ;;  %v5921_v54 = vrot.slane %v5919_v56, %v3816_v19  ;;  %v5923_v10 = vrot.slane %v5922_v46, %v3813_v18  ;;  %v5924_v21 = vrot.slane %v5922_v46, %v3816_v19  ;;  %v5937_v46 = vld [vmem:[#allocation28_spill] sm:$0xff] }
 0x4b5   : > { %v972_v14 = vmul.f32 %v5915_v39, %v819_v16  ;;  %v1252_v31 = vmul.f32 %v5917_v45, %v820_v55  ;;  %v1253_v52 = vmul.f32 %v5918_v63, %v819_v16  ;;  %v1533_v3 = vmul.f32 %v5920_v58, %v820_v55 }
 0x4b6   : > { %v1534_v33 = vmul.f32 %v5921_v54, %v819_v16  ;;  %v1814_v22 = vmul.f32 %v5923_v10, %v820_v55  ;;  %v1815_v61 = vmul.f32 %v5924_v21, %v819_v16  ;;  %v2353_v35 = vadd.f32 %v4679_v13, %v2338_v7  ;;  %v838_v21 = vpop.permute.xlu0 %837 }
 0x4b7   : > { %v2633_v6 = vadd.f32 %v4684_v57, %v2618_v27  ;;  %v2634_v12 = vadd.f32 %v4689_v38, %v2619_v37  ;;  %v973_v62 = vadd.f32 %v971_v8, %v954_v11  ;;  %v4995_v4 = vsel %vm832_vm13, %v878_v42, %v880_v20  ;;  %v5925_v27 = vld [vmem:[#allocation95_spill] sm:$0xff]  ;;  %v829_v37 = vpop.permute.xlu1 %828 }
 0x4b8   : > { %v1816_v53 = vadd.f32 %v1814_v22, %v1797_v44  ;;  %v1817_v47 = vadd.f32 %v1815_v61, %v1798_v1  ;;  %v4999_v43 = vsel %vm832_vm13, %v880_v20, %v878_v42  ;;  %v974_v48 = vadd.f32 %v972_v14, %v955_v34  ;;  %v5926_v44 = vld [vmem:[#allocation42_spill] sm:$0xff]  ;;  %v5929_v34 = vld [vmem:[#allocation43_spill] sm:$0xff] }
 0x4b9   : > { %v1254_v0 = vadd.f32 %v1252_v31, %v1235_v25  ;;  %v1255_v40 = vadd.f32 %v1253_v52, %v1236_v15  ;;  %v1535_v13 = vadd.f32 %v1533_v3, %v1516_v28  ;;  %v5002_v57 = vadd.f32 %v4694_v23, %v973_v62  ;;  %v5940_v62 = vld [vmem:[#allocation91_spill] sm:$0xff] }
 0x4ba   : > { %v1536_v38 = vadd.f32 %v1534_v33, %v1517_v51  ;;  %v1831_v7 = vadd.f32 %v4724_v17, %v1816_v53  ;;  %v1832_v11 = vadd.f32 %v5925_v27, %v1817_v47  ;;  %v5927_v1 = vrot.slane %v5926_v44, %v3813_v18  ;;  %v5932_v17 = vld [vmem:[#allocation44_spill] sm:$0xff]  ;;  %v5942_v27 = vld [vmem:[#allocation93_spill] sm:$0xff] }
 0x4bb   : > { %v5928_v20 = vrot.slane %v5926_v44, %v3816_v19  ;;  %v5930_v25 = vrot.slane %v5929_v34, %v3813_v18  ;;  %v5931_v23 = vrot.slane %v5929_v34, %v3816_v19  ;;  %v5933_v51 = vrot.slane %v5932_v17, %v3813_v18  ;;  %v5941_v47 = vld [vmem:[#allocation92_spill] sm:$0xff]  ;;  %v836_v44 = vpop.permute.xlu1 %835 }
 0x4bc   : > { %v2088_v29 = vmul.f32 %v5927_v1, %v820_v55  ;;  %v5934_v39 = vrot.slane %v5932_v17, %v3816_v19  ;;  %v1867_v45 = vadd.f32 %v5935_v26, %v1831_v7  ;;  %v5936_v31 = vcombine.high %v5935_v26, %v5935_v26  ;;  %v5954_v17 = vld [vmem:[#allocation49_spill] sm:$0xff]  ;;  %v5957_v26 = vld [vmem:[#allocation50_spill] sm:$0xff] }
 0x4bd   : > { %v2089_v42 = vmul.f32 %v5928_v20, %v819_v16  ;;  %v2369_v15 = vmul.f32 %v5930_v25, %v820_v55  ;;  %v2370_v28 = vmul.f32 %v5931_v23, %v819_v16  ;;  %v2650_v8 = vmul.f32 %v5933_v51, %v820_v55 }
 0x4be   : > { %v2651_v14 = vmul.f32 %v5934_v39, %v819_v16  ;;  %v1868_v63 = vadd.f32 %v5936_v31, %v1832_v11  ;;  %v2090_v52 = vadd.f32 %v2088_v29, %v2071_v30  ;;  %v1899_v10 = vadd.f32 %v5937_v46, %v1867_v45  ;;  %v5939_v16 = vld [vmem:[#allocation90_spill] sm:$0xff]  ;;  %v5947_v29 = vld [vmem:[#allocation99_spill] sm:$0xff] }
 0x4bf   : > { %v2091_v56 = vadd.f32 %v2089_v42, %v2072_v41  ;;  %v2371_v58 = vadd.f32 %v2369_v15, %v2352_v9  ;;  %v2372_v3 = vadd.f32 %v2370_v28, %v2353_v35  ;;  %v2652_v54 = vadd.f32 %v2650_v8, %v2633_v6  ;;  %v5943_v41 = vld [vmem:[#allocation94_spill] sm:$0xff]  ;;  %v5944_v35 = vld [vmem:[#allocation96_spill] sm:$0xff] }
 0x4c0   : > { %v2653_v33 = vadd.f32 %v2651_v14, %v2634_v12  ;;  %v5938_v55 = vcombine.high %v5937_v46, %v5937_v46  ;;  %v989_v61 = vadd.f32 %v5939_v16, %v974_v48  ;;  %v1269_v53 = vadd.f32 %v5940_v62, %v1254_v0  ;;  %v5948_v42 = vld [vmem:[#allocation48_spill] sm:$0xff]  ;;  %v886_v46 = vpop.permute.xlu0 %885  ;;  %v5965_v62 = vld [vmem:[#allocation53_spill] sm:$0xff] }
 0x4c1   : > { %v1270_v7 = vadd.f32 %v5941_v47, %v1255_v40  ;;  %v5037_v30 = vadd.f32 %v5942_v27, %v1535_v13  ;;  %v1551_v9 = vadd.f32 %v5943_v41, %v1536_v38  ;;  %v5041_v6 = vadd.f32 %v5944_v35, %v2090_v52  ;;  %v5945_v40 = vld [vmem:[#allocation97_spill] sm:$0xff]  ;;  %v5946_v38 = vld [vmem:[#allocation98_spill] sm:$0xff] }
 0x4c2   : > { %v1900_v22 = vadd.f32 %v5938_v55, %v1868_v63  ;;  %v826_v12 = vsel %vm825_vm12, %v822_v50, %v824_v5  ;;  %v827_v11 = vsel %vm825_vm12, %v824_v5, %v822_v50  ;;  %v5048_v48 = vadd.f32 %v4745_v59, %v2091_v56  ;;  %v5950_v50 = vld [vmem:[#allocation51_spill] sm:$0xff] }
 0x4c3   : > { %v5051_v0 = vadd.f32 %v4750_v49, %v2371_v58  ;;  %v5054_v13 = vadd.f32 %v5945_v40, %v2372_v3  ;;  %v5057_v1 = vadd.f32 %v5946_v38, %v2652_v54  ;;  %v5060_v20 = vadd.f32 %v5947_v29, %v2653_v33  ;;  %v5962_v3 = vld [vmem:[#allocation52_spill] sm:$0xff]  ;;  %v5968_v40 = vld [vmem:[#allocation54_spill] sm:$0xff] }
 0x4c4   : > { %v5949_v34 = vrot.slane %v5948_v42, %v3813_v18  ;;  %v5951_v59 = vrot.slane %v5950_v50, %v3813_v18  ;;  %v5952_v49 = vrot.slane %v5950_v50, %v3816_v19  ;;  %v5953_v23 = vrot.slane %v5948_v42, %v3816_v19 }
 0x4c5   : > { %v5955_v51 = vrot.slane %v5954_v17, %v3813_v18  ;;  %v5956_v39 = vrot.slane %v5954_v17, %v3816_v19  ;;  %v5958_v45 = vrot.slane %v5957_v26, %v3813_v18  ;;  %v5959_v63 = vrot.slane %v5957_v26, %v3816_v19 }
 0x4c6   : > { %v1073_v5 = vmul.f32 %v5949_v34, %v826_v12  ;;  %v1916_v25 = vmul.f32 %v5951_v59, %v826_v12  ;;  %v1917_v15 = vmul.f32 %v5952_v49, %v827_v11  ;;  %v1074_v28 = vmul.f32 %v5953_v23, %v827_v11 }
 0x4c7   : > { %v1354_v8 = vmul.f32 %v5955_v51, %v826_v12  ;;  %v1355_v14 = vmul.f32 %v5956_v39, %v827_v11  ;;  %v5083_v31 = vmul.f32 %v5958_v45, %v826_v12  ;;  %v1636_v52 = vmul.f32 %v5959_v63, %v827_v11  ;;  %v5980_v63 = vld [vmem:[#allocation30_spill] sm:$0xff] }
 0x4c8   : > { %v5088_v56 = vadd.f32 %v1916_v25, %v1899_v10  ;;  %v5090_v58 = vadd.f32 %v1917_v15, %v1900_v22  ;;  %v5963_v54 = vrot.slane %v5962_v3, %v3813_v18  ;;  %v5964_v55 = vrot.slane %v5962_v3, %v3816_v19 }
 0x4c9   : > { %v5966_v47 = vrot.slane %v5965_v62, %v3813_v18  ;;  %v5109_v10 = vsel %vm832_vm13, %v829_v37, %v831_v24  ;;  %v5113_v22 = vsel %vm832_vm13, %v831_v24, %v829_v37  ;;  %v5967_v41 = vrot.slane %v5965_v62, %v3816_v19  ;;  %v884_v24 = vpop.permute.xlu1 %883  ;;  %v5971_v37 = vld [vmem:[#allocation56_spill] sm:$0xff] }
 0x4ca   : > { %5960 = vst [vmem:[#allocation83_spill] sm:$0xff] %v5088_v56  ;;  %5961 = vst [vmem:[#allocation84_spill] sm:$0xff] %v5090_v58  ;;  %v5095_v33 = vmul.f32 %v5963_v54, %v826_v12  ;;  %v5100_v16 = vmul.f32 %v5964_v55, %v827_v11  ;;  %v5969_v38 = vrot.slane %v5968_v40, %v3813_v18  ;;  %v5982_v54 = vld [vmem:[#allocation55_spill] sm:$0xff] }
 0x4cb   : > { %v5105_v27 = vmul.f32 %v5966_v47, %v826_v12  ;;  %v5118_v35 = vmul.f32 %v5967_v41, %v827_v11  ;;  %v5970_v42 = vrot.slane %v5968_v40, %v3816_v19  ;;  %v5132_v50 = vsel %vm839_vm14, %v838_v21, %v836_v44  ;;  %v5986_v40 = vld [vmem:[#allocation31_spill] sm:$0xff] }
 0x4cc   : > { %v5123_v29 = vmul.f32 %v5969_v38, %v826_v12  ;;  %v5972_v59 = vrot.slane %v5971_v37, %v3813_v18  ;;  %v5142_v12 = vsel %vm839_vm14, %v836_v44, %v838_v21  ;;  %v5146_v49 = vsel %vm839_vm14, %v886_v46, %v884_v24  ;;  %v5978_v21 = vld [vmem:[#allocation58_spill] sm:$0xff] }
 0x4cd   : > { %v5128_v34 = vmul.f32 %v5970_v42, %v827_v11  ;;  %v5974_v11 = vld [vmem:[#allocation29_spill] sm:$0xff]  ;;  %v5976_v17 = vrot.slane %v5971_v37, %v3816_v19  ;;  %v5159_v39 = vsel %vm839_vm14, %v884_v24, %v886_v46  ;;  %v5979_v44 = vrot.slane %v5978_v21, %v3816_v19 }
 0x4ce   : > { %v5138_v25 = vmul.f32 %v5972_v59, %v5109_v10  ;;  %v5975_v15 = vcombine.high %v5974_v11, %v5974_v11  ;;  %v1024_v45 = vadd.f32 %v5974_v11, %v5002_v57  ;;  %v5983_v55 = vrot.slane %v5982_v54, %v3816_v19  ;;  %v5984_v46 = vld [vmem:[#allocation61_spill] sm:$0xff]  ;;  %v5988_v57 = vld [vmem:[#allocation63_spill] sm:$0xff] }
 0x4cf   : > { %v5155_v51 = vmul.f32 %v5976_v17, %v5113_v22  ;;  %v1108_v26 = vmul.f32 %v5979_v44, %v5113_v22  ;;  %v5985_v47 = vrot.slane %v5984_v46, %v3816_v19  ;;  %v5987_v38 = vcombine.high %v5986_v40, %v5986_v40 }
 0x4d0   : > { %5973 = vst [vmem:[#allocation88_spill] sm:$0xff] %v5138_v25  ;;  %v1025_v23 = vadd.f32 %v5975_v15, %v989_v61  ;;  %v5981_v61 = vcombine.high %v5980_v63, %v5980_v63  ;;  %v1123_v62 = vmul.f32 %v5983_v55, %v4999_v43  ;;  %v5989_v24 = vrot.slane %v5988_v57, %v3816_v19  ;;  %v5993_v55 = vld [vmem:[#allocation32_spill] sm:$0xff] }
 0x4d1   : > { %5977 = vst [vmem:[#allocation85_spill] sm:$0xff] %v5155_v51  ;;  %v1142_v41 = vmul.f32 %v5985_v47, %v5132_v50  ;;  %v1306_v42 = vadd.f32 %v5987_v38, %v1270_v7  ;;  %v1056_v59 = vadd.f32 %v5980_v63, %v1024_v45  ;;  %v5990_v11 = vrot.slane %v5978_v21, %v3813_v18 }
 0x4d2   : > { %v1057_v3 = vadd.f32 %v5981_v61, %v1025_v23  ;;  %v1157_v37 = vmul.f32 %v5989_v24, %v5146_v49  ;;  %v5991_v23 = vrot.slane %v5982_v54, %v3813_v18  ;;  %v5992_v7 = vrot.slane %v5984_v46, %v3813_v18  ;;  %v5996_v54 = vld [vmem:[#allocation60_spill] sm:$0xff]  ;;  %v5998_v46 = vld [vmem:[#allocation57_spill] sm:$0xff] }
 0x4d3   : > { %v1107_v15 = vmul.f32 %v5990_v11, %v5109_v10  ;;  %v5994_v47 = vcombine.high %v5993_v55, %v5993_v55  ;;  %v1305_v63 = vadd.f32 %v5986_v40, %v1269_v53  ;;  %v1075_v38 = vadd.f32 %v1073_v5, %v1056_v59  ;;  %v6001_v53 = vld [vmem:[#allocation65_spill] sm:$0xff]  ;;  %v6003_v59 = vld [vmem:[#allocation103_spill] sm:$0xff] }
 0x4d4   : > { %v1122_v17 = vmul.f32 %v5991_v23, %v4995_v4  ;;  %v1076_v44 = vadd.f32 %v1074_v28, %v1057_v3  ;;  %v1141_v61 = vmul.f32 %v5992_v7, %v5142_v12  ;;  %v5995_v21 = vrot.slane %v5988_v57, %v3813_v18  ;;  %v6000_v7 = vld [vmem:[#allocation102_spill] sm:$0xff] }
 0x4d5   : > { %v1338_v45 = vadd.f32 %v5994_v47, %v1306_v42  ;;  %v5997_v28 = vrot.slane %v5996_v54, %v3816_v19  ;;  %v5999_v11 = vrot.slane %v5998_v46, %v3816_v19  ;;  %v6002_v5 = vrot.slane %v6001_v53, %v3816_v19 }
 0x4d6   : > { %v1156_v24 = vmul.f32 %v5995_v21, %v5159_v39  ;;  %v1091_v42 = vadd.f32 %v6000_v7, %v1076_v44  ;;  %v1337_v57 = vadd.f32 %v5993_v55, %v1305_v63  ;;  %v1090_v21 = vadd.f32 %v6003_v59, %v1075_v38 }
 0x4d7   : > { %v1389_v3 = vmul.f32 %v5997_v28, %v5113_v22  ;;  %v1404_v23 = vmul.f32 %v5999_v11, %v4999_v43  ;;  %v1357_v47 = vadd.f32 %v1355_v14, %v1338_v45  ;;  %v1423_v40 = vmul.f32 %v6002_v5, %v5132_v50  ;;  %v6007_v14 = vld [vmem:[#allocation33_spill] sm:$0xff]  ;;  %v6009_v5 = vld [vmem:[#allocation104_spill] sm:$0xff] }
 0x4d8   : > { %v6005_v28 = vrot.slane %v6004_v32, %v3816_v19  ;;  %v6006_v11 = vrot.slane %v5996_v54, %v3813_v18  ;;  %v6008_v45 = vcombine.high %v6007_v14, %v6007_v14  ;;  %v1110_v25 = vadd.f32 %v1108_v26, %v1091_v42  ;;  %v6014_v42 = vld [vmem:[#allocation105_spill] sm:$0xff] }
 0x4d9   : > { %v1372_v60 = vadd.f32 %v6009_v5, %v1357_v47  ;;  %v1356_v55 = vadd.f32 %v1354_v8, %v1337_v57  ;;  %v6010_v63 = vrot.slane %v5998_v46, %v3813_v18  ;;  %v1109_v59 = vadd.f32 %v1107_v15, %v1090_v21 }
 0x4da   : > { %v1438_v51 = vmul.f32 %v6005_v28, %v5146_v49  ;;  %v1388_v44 = vmul.f32 %v6006_v11, %v5109_v10  ;;  %v1587_v7 = vadd.f32 %v6008_v45, %v1551_v9  ;;  %v6011_v28 = vrot.slane %v6001_v53, %v3813_v18  ;;  %v6012_v11 = vld [vmem:[#allocation34_spill] sm:$0xff]  ;;  %v6016_v53 = vld [vmem:[#allocation64_spill] sm:$0xff] }
 0x4db   : > { %v1403_v38 = vmul.f32 %v6010_v63, %v4995_v4  ;;  %v6013_v58 = vcombine.high %v6012_v11, %v6012_v11  ;;  %v1586_v9 = vadd.f32 %v6007_v14, %v5037_v30  ;;  %v1125_v26 = vadd.f32 %v1123_v62, %v1110_v25 }
 0x4dc   : > { %v1422_v54 = vmul.f32 %v6011_v28, %v5142_v12  ;;  %v1391_v8 = vadd.f32 %v1389_v3, %v1372_v60  ;;  %v1371_v47 = vadd.f32 %v6014_v42, %v1356_v55  ;;  %v6015_v15 = vrot.slane %v6004_v32, %v3813_v18  ;;  %v6018_v60 = vld [vmem:[#allocation59_spill] sm:$0xff]  ;;  %v6020_v32 = vld [vmem:[#allocation106_spill] sm:$0xff] }
 0x4dd   : > { %v1619_v56 = vadd.f32 %v6013_v58, %v1587_v7  ;;  %v1124_v57 = vadd.f32 %v1122_v17, %v1109_v59  ;;  %v6017_v45 = vrot.slane %v6016_v53, %v3816_v19  ;;  %v1618_v58 = vadd.f32 %v6012_v11, %v1586_v9  ;;  %v6024_v28 = vld [vmem:[#allocation35_spill] sm:$0xff] }
 0x4de   : > { %v1437_v46 = vmul.f32 %v6015_v15, %v5159_v39  ;;  %v1144_v7 = vadd.f32 %v1142_v41, %v1125_v26  ;;  %v1406_v30 = vadd.f32 %v1404_v23, %v1391_v8  ;;  %v1390_v25 = vadd.f32 %v1388_v44, %v1371_v47  ;;  %v6022_v41 = vld [vmem:[#allocation67_spill] sm:$0xff] }
 0x4df   : > { %v1638_v21 = vadd.f32 %v1636_v52, %v1619_v56  ;;  %v1670_v5 = vmul.f32 %v6017_v45, %v5113_v22  ;;  %v6019_v62 = vrot.slane %v6018_v60, %v3816_v19  ;;  %v1143_v14 = vadd.f32 %v1141_v61, %v1124_v57  ;;  %v6028_v47 = vld [vmem:[#allocation107_spill] sm:$0xff] }
 0x4e0   : > { %v1637_v52 = vadd.f32 %v5083_v31, %v1618_v58  ;;  %v6021_v56 = vrot.slane %v6016_v53, %v3813_v18  ;;  %v1159_v63 = vadd.f32 %v1157_v37, %v1144_v7  ;;  %v1405_v59 = vadd.f32 %v1403_v38, %v1390_v25  ;;  %v6026_v31 = vld [vmem:[#allocation69_spill] sm:$0xff] }
 0x4e1   : > { %v1685_v3 = vmul.f32 %v6019_v62, %v4999_v43  ;;  %v1653_v55 = vadd.f32 %v6020_v32, %v1638_v21  ;;  %v6023_v23 = vrot.slane %v6022_v41, %v3816_v19  ;;  %v6025_v61 = vcombine.high %v6024_v28, %v6024_v28  ;;  %v6031_v21 = vld [vmem:[#allocation36_spill] sm:$0xff] }
 0x4e2   : > { %v1669_v17 = vmul.f32 %v6021_v56, %v5109_v10  ;;  %v1158_v9 = vadd.f32 %v1156_v24, %v1143_v14  ;;  %v6027_v8 = vrot.slane %v6026_v31, %v3816_v19  ;;  %v1652_v37 = vadd.f32 %v6028_v47, %v1637_v52  ;;  %1162 = vrot.lane.b32.xlu0 %v1159_v63, %s3405_s12  ;;  %v6034_v62 = vld [vmem:[#allocation68_spill] sm:$0xff]  ;;  %v6038_v63 = vld [vmem:[#allocation73_spill] sm:$0xff] }
 0x4e3   : > { %v1704_v44 = vmul.f32 %v6023_v23, %v5132_v50  ;;  %v2142_v11 = vadd.f32 %v6025_v61, %v5048_v48  ;;  %v1672_v26 = vadd.f32 %v1670_v5, %v1653_v55  ;;  %v1425_v38 = vadd.f32 %v1423_v40, %v1406_v30 }
 0x4e4   : > { %v1719_v42 = vmul.f32 %v6027_v8, %v5146_v49  ;;  %v6029_v15 = vrot.slane %v6018_v60, %v3813_v18  ;;  %v6030_v48 = vrot.slane %v6022_v41, %v3813_v18  ;;  %v6032_v53 = vcombine.high %v6031_v21, %v6031_v21  ;;  %1160 = vrot.lane.b32.xlu1 %v1158_v9, %s3405_s12  ;;  %v6040_v41 = vld [vmem:[#allocation108_spill] sm:$0xff]  ;;  %v6043_v9 = vld [vmem:[#allocation74_spill] sm:$0xff] }
 0x4e5   : > { %v1424_v5 = vadd.f32 %v1422_v54, %v1405_v59  ;;  %v1687_v58 = vadd.f32 %v1685_v3, %v1672_v26  ;;  %v1671_v7 = vadd.f32 %v1669_v17, %v1652_v37  ;;  %v6033_v40 = vrot.slane %v6026_v31, %v3813_v18  ;;  %v6036_v3 = vld [vmem:[#allocation62_spill] sm:$0xff] }
 0x4e6   : > { %v1684_v57 = vmul.f32 %v6029_v15, %v4995_v4  ;;  %v1703_v24 = vmul.f32 %v6030_v48, %v5142_v12  ;;  %v2174_v45 = vadd.f32 %v6032_v53, %v2142_v11  ;;  %v1440_v25 = vadd.f32 %v1438_v51, %v1425_v38 }
 0x4e7   : > { %v1718_v30 = vmul.f32 %v6033_v40, %v5159_v39  ;;  %v6035_v14 = vrot.slane %v6034_v62, %v3816_v19  ;;  %v2141_v55 = vadd.f32 %v6024_v28, %v5041_v6  ;;  %v1439_v52 = vadd.f32 %v1437_v46, %v1424_v5  ;;  %v6041_v6 = vld [vmem:[#allocation37_spill] sm:$0xff] }
 0x4e8   : > { %v2193_v60 = vadd.f32 %v5100_v16, %v2174_v45  ;;  %v1686_v54 = vadd.f32 %v1684_v57, %v1671_v7  ;;  %v6037_v56 = vrot.slane %v6036_v3, %v3816_v19  ;;  %v6039_v51 = vrot.slane %v6038_v63, %v3816_v19  ;;  %1443 = vrot.lane.b32.xlu0 %v1440_v25, %s3406_s13  ;;  %v6047_v57 = vld [vmem:[#allocation45_spill] sm:$0xff]  ;;  %v6052_v25 = vld [vmem:[#allocation71_spill] sm:$0xff] }
 0x4e9   : > { %v2225_v32 = vmul.f32 %v6035_v14, %v5113_v22  ;;  %v1706_v59 = vadd.f32 %v1704_v44, %v1687_v58  ;;  %v2173_v61 = vadd.f32 %v6031_v21, %v2141_v55  ;;  %v6042_v46 = vcombine.high %v6041_v6, %v6041_v6  ;;  %1441 = vrot.lane.b32.xlu1 %v1439_v52, %s3406_s13  ;;  %v6051_v7 = vld [vmem:[#allocation109_spill] sm:$0xff]  ;;  %v6054_v14 = vld [vmem:[#allocation70_spill] sm:$0xff]  ;;  %v6056_v55 = vld [vmem:[#allocation76_spill] sm:$0xff] }
 0x4ea   : > { %v2240_v17 = vmul.f32 %v6037_v56, %v4999_v43  ;;  %v2259_v16 = vmul.f32 %v6039_v51, %v5132_v50  ;;  %v2208_v23 = vadd.f32 %v6040_v41, %v2193_v60  ;;  %v1705_v11 = vadd.f32 %v1703_v24, %v1686_v54 }
 0x4eb   : > { %v2423_v28 = vadd.f32 %v6042_v46, %v5054_v13  ;;  %v6044_v26 = vrot.slane %v6043_v9, %v3816_v19  ;;  %v6045_v44 = vrot.slane %v6034_v62, %v3813_v18  ;;  %v6046_v47 = vrot.slane %v6036_v3, %v3813_v18 }
 0x4ec   : > { %v1721_v38 = vadd.f32 %v1719_v42, %v1706_v59  ;;  %v2227_v15 = vadd.f32 %v2225_v32, %v2208_v23  ;;  %v2192_v13 = vadd.f32 %v5095_v33, %v2173_v61  ;;  %v6048_v48 = vcombine.high %v6047_v57, %v6047_v57  ;;  %v6060_v59 = vld [vmem:[#allocation110_spill] sm:$0xff] }
 0x4ed   : > { %v2274_v31 = vmul.f32 %v6044_v26, %v5146_v49  ;;  %v2224_v8 = vmul.f32 %v6045_v44, %v5109_v10  ;;  %v2239_v37 = vmul.f32 %v6046_v47, %v4995_v4  ;;  %v1720_v21 = vadd.f32 %v1718_v30, %v1705_v11  ;;  %v6061_v23 = vld [vmem:[#allocation78_spill] sm:$0xff] }
 0x4ee   : > { %v2455_v24 = vadd.f32 %v6048_v48, %v2423_v28  ;;  %v6049_v53 = vrot.slane %v6038_v63, %v3813_v18  ;;  %v6050_v5 = vrot.slane %v6043_v9, %v3813_v18  ;;  %v2422_v42 = vadd.f32 %v6041_v6, %v5051_v0  ;;  %1724 = vrot.lane.b32.xlu0 %v1721_v38, %s3407_s9  ;;  %v6065_v9 = vld [vmem:[#allocation47_spill] sm:$0xff]  ;;  %v6068_v48 = vld [vmem:[#allocation77_spill] sm:$0xff] }
 0x4ef   : > { %v2242_v33 = vadd.f32 %v2240_v17, %v2227_v15  ;;  %v2207_v40 = vadd.f32 %v6051_v7, %v2192_v13  ;;  %v6053_v60 = vrot.slane %v6052_v25, %v3816_v19  ;;  %1722 = vrot.lane.b32.xlu1 %v1720_v21, %s3407_s9  ;;  %v6055_v32 = vrot.slane %v6054_v14, %v3816_v19 }
 0x4f0   : > { %v2258_v45 = vmul.f32 %v6049_v53, %v5142_v12  ;;  %v2273_v58 = vmul.f32 %v6050_v5, %v5159_v39  ;;  %v2474_v30 = vadd.f32 %v5118_v35, %v2455_v24  ;;  %v6057_v52 = vrot.slane %v6056_v55, %v3816_v19  ;;  %v6058_v35 = vld [vmem:[#allocation46_spill] sm:$0xff] }
 0x4f1   : > { %v2506_v62 = vmul.f32 %v6053_v60, %v5113_v22  ;;  %v2521_v0 = vmul.f32 %v6055_v32, %v4999_v43  ;;  %v2454_v3 = vadd.f32 %v6047_v57, %v2422_v42  ;;  %v6059_v56 = vcombine.high %v6058_v35, %v6058_v35 }
 0x4f2   : > { %v2540_v54 = vmul.f32 %v6057_v52, %v5132_v50  ;;  %v2261_v63 = vadd.f32 %v2259_v16, %v2242_v33  ;;  %v2226_v51 = vadd.f32 %v2224_v8, %v2207_v40  ;;  %v2489_v41 = vadd.f32 %v6060_v59, %v2474_v30  ;;  %v6073_v40 = vld [vmem:[#allocation79_spill] sm:$0xff]  ;;  %v6082_v59 = vld [vmem:[#allocation101_spill] sm:$0xff] }
 0x4f3   : > { %v2704_v17 = vadd.f32 %v6059_v56, %v5060_v20  ;;  %v6062_v61 = vrot.slane %v6061_v23, %v3816_v19  ;;  %v2473_v46 = vadd.f32 %v5105_v27, %v2454_v3  ;;  %v6063_v28 = vrot.slane %v6052_v25, %v3813_v18  ;;  %v6079_v56 = vld [vmem:[#allocation83_spill] sm:$0xff] }
 0x4f4   : > { %v6064_v20 = vrot.slane %v6054_v14, %v3813_v18  ;;  %v6066_v26 = vcombine.high %v6065_v9, %v6065_v9  ;;  %v2276_v8 = vadd.f32 %v2274_v31, %v2261_v63  ;;  %v2241_v47 = vadd.f32 %v2239_v37, %v2226_v51  ;;  %v6081_v51 = vld [vmem:[#allocation84_spill] sm:$0xff] }
 0x4f5   : > { %v2555_v6 = vmul.f32 %v6062_v61, %v5146_v49  ;;  %v2505_v11 = vmul.f32 %v6063_v28, %v5109_v10  ;;  %v2508_v38 = vadd.f32 %v2506_v62, %v2489_v41  ;;  %v6067_v27 = vrot.slane %v6056_v55, %v3813_v18  ;;  %v6075_v62 = vld [vmem:[#allocation80_spill] sm:$0xff]  ;;  %v6085_v28 = vld [vmem:[#allocation111_spill] sm:$0xff] }
 0x4f6   : > { %v2520_v16 = vmul.f32 %v6064_v20, %v4995_v4  ;;  %v2736_v44 = vadd.f32 %v6066_v26, %v2704_v17  ;;  %v2488_v13 = vadd.f32 %v4859_v2, %v2473_v46  ;;  %v6069_v24 = vrot.slane %v6068_v48, %v3816_v19  ;;  %2279 = vrot.lane.b32.xlu0 %v2276_v8, %s3408_s28  ;;  %v6071_v2 = vld [vmem:[#allocation72_spill] sm:$0xff]  ;;  %v6088_v26 = vld [vmem:[#allocation85_spill] sm:$0xff] }
 0x4f7   : > { %v2539_v15 = vmul.f32 %v6067_v27, %v5142_v12  ;;  %v2703_v53 = vadd.f32 %v6058_v35, %v5057_v1  ;;  %v2260_v31 = vadd.f32 %v2258_v45, %v2241_v47  ;;  %v2523_v37 = vadd.f32 %v2521_v0, %v2508_v38  ;;  %v6080_v17 = vld [vmem:[#allocation100_spill] sm:$0xff]  ;;  %v6089_v8 = vld [vmem:[#allocation81_spill] sm:$0xff] }
 0x4f8   : > { %v2755_v57 = vadd.f32 %v5128_v34, %v2736_v44  ;;  %v2787_v21 = vmul.f32 %v6069_v24, %v5113_v22  ;;  %v6070_v5 = vrot.slane %v6061_v23, %v3813_v18  ;;  %v6072_v34 = vrot.slane %v6071_v2, %v3816_v19  ;;  %v6083_v23 = vld [vmem:[#allocation75_spill] sm:$0xff] }
 0x4f9   : > { %v2507_v7 = vadd.f32 %v2505_v11, %v2488_v13  ;;  %v6074_v1 = vrot.slane %v6073_v40, %v3816_v19  ;;  %v2735_v45 = vadd.f32 %v6065_v9, %v2703_v53  ;;  %v2275_v25 = vadd.f32 %v2273_v58, %v2260_v31  ;;  %v6093_v53 = vld [vmem:[#allocation82_spill] sm:$0xff] }
 0x4fa   : > { %v2554_v42 = vmul.f32 %v6070_v5, %v5159_v39  ;;  %v2802_v33 = vmul.f32 %v6072_v34, %v4999_v43  ;;  %v2770_v22 = vadd.f32 %v4864_v36, %v2755_v57  ;;  %v2542_v60 = vadd.f32 %v2540_v54, %v2523_v37 }
 0x4fb   : > { %v2821_v30 = vmul.f32 %v6074_v1, %v5132_v50  ;;  %v6076_v14 = vrot.slane %v6075_v62, %v3816_v19  ;;  %v6077_v0 = vrot.slane %v6068_v48, %v3813_v18  ;;  %v2522_v36 = vadd.f32 %v2520_v16, %v2507_v7  ;;  %2277 = vrot.lane.b32.xlu1 %v2275_v25, %s3408_s28  ;;  %v6087_v16 = vld [vmem:[#allocation88_spill] sm:$0xff] }
 0x4fc   : > { %v2789_v52 = vadd.f32 %v2787_v21, %v2770_v22  ;;  %v2754_v3 = vadd.f32 %v5123_v29, %v2735_v45  ;;  %v6078_v35 = vrot.slane %v6071_v2, %v3813_v18  ;;  %v2557_v54 = vadd.f32 %v2555_v6, %v2542_v60 }
 0x4fd   : > { %v2836_v32 = vmul.f32 %v6076_v14, %v5146_v49  ;;  %v2786_v55 = vmul.f32 %v6077_v0, %v5109_v10  ;;  %v1933_v63 = vadd.f32 %v6080_v17, %v6079_v56  ;;  %v1934_v41 = vadd.f32 %v6082_v59, %v6081_v51 }
 0x4fe   : > { %v2801_v58 = vmul.f32 %v6078_v35, %v4995_v4  ;;  %v6084_v10 = vrot.slane %v6083_v23, %v3813_v18  ;;  %v2541_v46 = vadd.f32 %v2539_v15, %v2522_v36  ;;  %v2804_v29 = vadd.f32 %v2802_v33, %v2789_v52  ;;  %2560 = vrot.lane.b32.xlu0 %v2557_v54, %s3409_s10 }
 0x4ff   : > { %v2769_v11 = vadd.f32 %v6085_v28, %v2754_v3  ;;  %v6086_v20 = vrot.slane %v6083_v23, %v3816_v19  ;;  %v1952_v9 = vadd.f32 %v6087_v16, %v1933_v63  ;;  %v1953_v44 = vadd.f32 %v6088_v26, %v1934_v41 }
 0x500   : > { %v1965_v61 = vmul.f32 %v6084_v10, %v4995_v4  ;;  %v6090_v47 = vrot.slane %v6089_v8, %v3813_v18  ;;  %v6091_v38 = vrot.slane %v6089_v8, %v3816_v19  ;;  %v2556_v15 = vadd.f32 %v2554_v42, %v2541_v46 }
 0x501   : > { %v1966_v6 = vmul.f32 %v6086_v20, %v4999_v43  ;;  %v2823_v13 = vadd.f32 %v2821_v30, %v2804_v29  ;;  %v2788_v57 = vadd.f32 %v2786_v55, %v2769_v11  ;;  %v6092_v43 = vrot.slane %v6073_v40, %v3813_v18 }
 0x502   : > { %v1984_v4 = vmul.f32 %v6090_v47, %v5142_v12  ;;  %v1985_v27 = vmul.f32 %v6091_v38, %v5132_v50  ;;  %v1967_v24 = vadd.f32 %v1965_v61, %v1952_v9  ;;  %v6094_v31 = vrot.slane %v6093_v53, %v3813_v18  ;;  %2558 = vrot.lane.b32.xlu1 %v2556_v15, %s3409_s10 }
 0x503   : > { %v2820_v48 = vmul.f32 %v6092_v43, %v5142_v12  ;;  %v1968_v21 = vadd.f32 %v1966_v6, %v1953_v44  ;;  %v6095_v5 = vrot.slane %v6093_v53, %v3816_v19  ;;  %v2838_v42 = vadd.f32 %v2836_v32, %v2823_v13  ;;  %v6097_v32 = vld [vmem:[#allocation26_spill] sm:$0xff]  ;;  %v3251_v53 = vld [vmem:[%s3581_s29 + $0x18] sm:$0xff] }
 0x504   : > { %v1999_v37 = vmul.f32 %v6094_v31, %v5159_v39  ;;  %v2803_v2 = vadd.f32 %v2801_v58, %v2788_v57  ;;  %v6096_v34 = vrot.slane %v6075_v62, %v3813_v18  ;;  %v1986_v33 = vadd.f32 %v1984_v4, %v1967_v24  ;;  %v6098_v24 = vld [vmem:[#allocation14_spill] sm:$0xff] }
 0x505   : > { %v2000_v50 = vmul.f32 %v6095_v5, %v5146_v49  ;;  %v1987_v7 = vadd.f32 %v1985_v27, %v1968_v21  ;;  %2841 = vrot.lane.b32.xlu0 %v2838_v42, %s3410_s6  ;;  %vm1445_vm15 = vcmp.lt.s32.totalorder %v6097_v32, 32  ;;  %vm1164_vm0 = vcmp.lt.s32.totalorder %v6097_v32, 48  ;;  %v6099_v5 = vld [vmem:[#allocation15_spill] sm:$0xff]  ;;  %v3253_v42 = vld [vmem:[%s3581_s29 + $0x8] sm:$0xff] }
 0x506   : > { %v2835_v12 = vmul.f32 %v6096_v34, %v5159_v39  ;;  %v2822_v22 = vadd.f32 %v2820_v48, %v2803_v2  ;;  %v2001_v40 = vadd.f32 %v1999_v37, %v1986_v33  ;;  %vm1726_vm1 = vcmp.lt.s32.totalorder %v6097_v32, 16  ;;  %v3250_v48 = vld [vmem:[%s3581_s29 + $0x10] sm:$0xff]  ;;  %v3252_v37 = vld [vmem:[%s3581_s29] sm:$0xff] }
 0x507   : > { %v2002_v1 = vadd.f32 %v2000_v50, %v1987_v7  ;;  %vm2281_vm2 = vcmp.lt.s32.totalorder %v6097_v32, 112  ;;  %vm2562_vm3 = vcmp.lt.s32.totalorder %v6097_v32, 96  ;;  %vm2843_vm4 = vcmp.lt.s32.totalorder %v6097_v32, 80  ;;  %v6100_v33 = vld [vmem:[#allocation16_spill] sm:$0xff] }
 0x508   : > { %v2837_v30 = vadd.f32 %v2835_v12, %v2822_v22  ;;  %v2870_v21 = vmul.f32 %v3250_v48, %v6098_v24  ;;  %v2871_v31 = vmul.f32 %v3251_v53, %v6098_v24  ;;  %v2868_v50 = vmul.f32 %v3252_v37, %v6099_v5  ;;  %v3254_v12 = vld [vmem:[%s3581_s29 + $0x30] sm:$0xff]  ;;  %v3255_v22 = vld [vmem:[%s3581_s29 + $0x20] sm:$0xff] }
 0x509   : > { %v2869_v2 = vmul.f32 %v3253_v42, %v6099_v5  ;;  %v2874_v7 = vmul.f32 %v3254_v12, %v6100_v33 }
 0x50a   : > { %2839 = vrot.lane.b32.xlu1 %v2837_v30, %s3410_s6 }
 0x554   : > { %v1163_v45 = vpop.permute.xlu0 %1162 }
 0x556   : > { %v1161_v25 = vpop.permute.xlu1 %1160 }
 0x557   : > { %v1165_v36 = vsel %vm1164_vm0, %v1161_v25, %v1163_v45  ;;  %v1166_v52 = vsel %vm1164_vm0, %v1163_v45, %v1161_v25  ;;  %v3256_v25 = vld [vmem:[%s3581_s29 + $0x38] sm:$0xff] }
 0x55a   : > { %v1444_v49 = vpop.permute.xlu0 %1443 }
 0x55b   : > { %v1442_v60 = vpop.permute.xlu1 %1441 }
 0x55c   : > { %v1446_v39 = vsel %vm1445_vm15, %v1442_v60, %v1444_v49  ;;  %v1447_v62 = vsel %vm1445_vm15, %v1444_v49, %v1442_v60  ;;  %v2875_v49 = vmul.f32 %v3256_v25, %v6100_v33  ;;  %v3257_v60 = vld [vmem:[%s3581_s29 + $0x28] sm:$0xff]  ;;  %s2956_s29 = sshll.u32 %s5486_s26, 4  ;;  %s5510_s29 = int_to_ptr.vmem [resolvable:$true] %s2956_s29 }
 0x55d   : > { %v1448_v58 = vadd.f32 %v1447_v62, %v1166_v52  ;;  %v1449_v54 = vadd.f32 %v1446_v39, %v1165_v36  ;;  %s3316_s14 = scalar_lea.vmem %s5510_s29, 2048  ;;  %p3323_p11 = scmp.lt.s32.totalorder %s5510_s29, %s3321_s21 }
 0x55e   : > { %p3317_p4 = scmp.ne.s32.totalorder %s5510_s29, %s3316_s14  ;;  %p3324_p13 = scmp.lt.s32.totalorder %s3322_s23, %s3316_s14 }
 0x560   : > { %v1725_v14 = vpop.permute.xlu0 %1724  ;;  %p3318_p6 = pnand %p3317_p4, %p3524_p12  ;;  %p3325_p3 = por %p3324_p13, %p3323_p11 }
 0x561   : > { %v1723_v0 = vpop.permute.xlu1 %1722 }
 0x562   : > { %v1727_v3 = vsel %vm1726_vm1, %v1723_v0, %v1725_v14  ;;  %v1728_v35 = vsel %vm1726_vm1, %v1725_v14, %v1723_v0  ;;  %p3319_p8 = pneg %p3318_p6 }
 0x563   : > { %v1729_v17 = vadd.f32 %v1728_v35, %v1448_v58  ;;  %v1730_v63 = vadd.f32 %v1727_v3, %v1449_v54  ;;  %v6102_v35 = vld [vmem:[#allocation18_spill] sm:$0xff]  ;;  %v6103_v54 = vld [vmem:[#allocation19_spill] sm:$0xff] }
 0x564   : > { %p3326_p7 = pnand %p3325_p3, %p3319_p8 }
 0x565   : > { %v2003_v59 = vadd.f32 %v2001_v40, %v1729_v17  ;;  %v2004_v41 = vadd.f32 %v2002_v1, %v1730_v63  ;;  %v6101_v40 = vld [vmem:[#allocation17_spill] sm:$0xff]  ;;  %v6104_v17 = vld [vmem:[#allocation20_spill] sm:$0xff] }
 0x566   : > { %v2872_v1 = vmul.f32 %v3255_v22, %v6101_v40  ;;  %v2873_v14 = vmul.f32 %v3257_v60, %v6101_v40 }
 0x568   : > { %v2280_v55 = vpop.permute.xlu0 %2279 }
 0x56d   : > { %v2278_v56 = vpop.permute.xlu1 %2277 }
 0x56e   : > { %v2282_v10 = vsel %vm2281_vm2, %v2278_v56, %v2280_v55  ;;  %v2283_v61 = vsel %vm2281_vm2, %v2280_v55, %v2278_v56 }
 0x56f   : > { %v2284_v28 = vadd.f32 %v2282_v10, %v2003_v59  ;;  %v2285_v11 = vadd.f32 %v2283_v61, %v2004_v41  ;;  %v6106_v41 = vld [vmem:[#allocation22_spill] sm:$0xff]  ;;  %v6107_v10 = vld [vmem:[#allocation23_spill] sm:$0xff] }
 0x570   : > { %v2561_v51 = vpop.permute.xlu0 %2560 }
 0x574   : > { %v2559_v23 = vpop.permute.xlu1 %2558 }
 0x575   : > { %v2563_v46 = vsel %vm2562_vm3, %v2559_v23, %v2561_v51  ;;  %v2564_v29 = vsel %vm2562_vm3, %v2561_v51, %v2559_v23  ;;  %v6105_v51 = vld [vmem:[#allocation21_spill] sm:$0xff] }
 0x576   : > { %v2565_v6 = vadd.f32 %v2563_v46, %v2284_v28  ;;  %v2566_v16 = vadd.f32 %v2564_v29, %v2285_v11  ;;  %v6108_v46 = vld [vmem:[#allocation24_spill] sm:$0xff]  ;;  %v6109_v28 = vld [vmem:[#allocation25_spill] sm:$0xff] }
 0x577   : > { %v2842_v20 = vpop.permute.xlu0 %2841 }
 0x57c   : > { %v2840_v9 = vpop.permute.xlu1 %2839 }
 0x57d   : > { %v2844_v26 = vsel %vm2843_vm4, %v2840_v9, %v2842_v20  ;;  %v2845_v44 = vsel %vm2843_vm4, %v2842_v20, %v2840_v9 }
 0x57e   : > { %v2846_v8 = vadd.f32 %v2844_v26, %v2565_v6  ;;  %v2847_v47 = vadd.f32 %v2845_v44, %v2566_v16 }
 0x580   : > { %v3077_v4 = vmul.f32 -1.442695, %v2846_v8  ;;  %v3078_v38 = vmul.f32 -1.442695, %v2847_v47 }
 0x582   : > { %3242 = vpow2.f32 %v3077_v4 }
 0x583   : > { %3244 = vpow2.f32 %v3078_v38 }
 0x58c   : > { %v3243_v27 = vpop.eup %3242 }
 0x58d   : > { %v3245_v15 = vpop.eup %3244  ;;  %v2854_v13 = vadd.f32 1.0, %v3243_v27 }
 0x58e   : > { %v2855_v57 = vadd.f32 1.0, %v3245_v15 }
 0x58f   : > { %3246 = vrcp.f32 %v2854_v13 }
 0x590   : > { %3248 = vrcp.f32 %v2855_v57 }
 0x599   : > { %v3247_v43 = vpop.eup %3246 }
 0x59a   : > { %v3249_v34 = vpop.eup %3248  ;;  %v2879_v30 = vrot.slane %v3247_v43, %v3813_v18  ;;  %v2919_v45 = vrot.slane %v3247_v43, %v3816_v19 }
 0x59b   : > { %v2883_v32 = vrot.slane %v3249_v34, %v3813_v18  ;;  %v2923_v0 = vrot.slane %v3249_v34, %v3816_v19 }
 0x59c   : > { %v2884_v39 = vmul.f32 %v2879_v30, %v2868_v50  ;;  %v2886_v62 = vmul.f32 %v2879_v30, %v2870_v21  ;;  %v2888_v55 = vmul.f32 %v2879_v30, %v2872_v1  ;;  %v2890_v36 = vmul.f32 %v2879_v30, %v2874_v7 }
 0x59d   : > { %v2885_v18 = vmul.f32 %v2883_v32, %v2869_v2  ;;  %v2887_v19 = vmul.f32 %v2883_v32, %v2871_v31  ;;  %v2889_v52 = vmul.f32 %v2883_v32, %v2873_v14  ;;  %v2891_v3 = vmul.f32 %v2883_v32, %v2875_v49 }
 0x59e   : > { %2892 = vst [vmem:[%s5486_s26] sm:$0xff] %v2884_v39  ;;  %2894 = vst [vmem:[%s5486_s26 + $0x10] sm:$0xff] %v2886_v62  ;;  %v2924_v58 = vmul.f32 %v2919_v45, %v6102_v35  ;;  %v2925_v56 = vmul.f32 %v2923_v0, %v6103_v54  ;;  %v2926_v63 = vmul.f32 %v2919_v45, %v6104_v17 }
 0x59f   : > { %2896 = vst [vmem:[%s5486_s26 + $0x20] sm:$0xff] %v2888_v55  ;;  %2898 = vst [vmem:[%s5486_s26 + $0x30] sm:$0xff] %v2890_v36  ;;  %v2927_v59 = vmul.f32 %v2923_v0, %v6105_v51  ;;  %v2928_v23 = vmul.f32 %v2919_v45, %v6106_v41  ;;  %v2929_v61 = vmul.f32 %v2923_v0, %v6107_v10 }
 0x5a0   : > { %2893 = vst [vmem:[%s5486_s26 + $0x8] sm:$0xff] %v2885_v18  ;;  %2895 = vst [vmem:[%s5486_s26 + $0x18] sm:$0xff] %v2887_v19  ;;  %v2930_v29 = vmul.f32 %v2919_v45, %v6108_v46  ;;  %v2931_v11 = vmul.f32 %v2923_v0, %v6109_v28 }
 0x5a1   : > { %2897 = vst [vmem:[%s5486_s26 + $0x28] sm:$0xff] %v2889_v52  ;;  %2899 = vst [vmem:[%s5486_s26 + $0x38] sm:$0xff] %v2891_v3 }
 0x5a2   : > { %3087 = vst [vmem:[%s5486_s26 + $0x40] sm:$0xff] %v2924_v58  ;;  %3088 = vst [vmem:[%s5486_s26 + $0x48] sm:$0xff] %v2925_v56 }
 0x5a3   : > { %3089 = vst [vmem:[%s5486_s26 + $0x50] sm:$0xff] %v2926_v63  ;;  %3090 = vst [vmem:[%s5486_s26 + $0x58] sm:$0xff] %v2927_v59 }
 0x5a4   : > { %3091 = vst [vmem:[%s5486_s26 + $0x60] sm:$0xff] %v2928_v23  ;;  %3092 = vst [vmem:[%s5486_s26 + $0x68] sm:$0xff] %v2929_v61 }
 0x5a5   : > { %3093 = vst [vmem:[%s5486_s26 + $0x70] sm:$0xff] %v2930_v29  ;;  %3094 = vst [vmem:[%s5486_s26 + $0x78] sm:$0xff] %v2931_v11 }
 0x5a6   : > { %3329 = shalt.err (!%p3326_p7)
}
 0x5a7   : > { %s3330_s12 = scalar_lea.hbm %s5500_s8, 2048  ;;  %s3334_s10 = scalar_lea.hbm %s5566_s4, 8192 }
 0x5a8   : > { %p3331_p9 = scmp.ne.s32.totalorder %s5500_s8, %s3330_s12  ;;  %p3335_p5 = scmp.lt.u32.totalorder %s5500_s8, %s5566_s4 }
 0x5a9   : > { %p3336_p10 = scmp.lt.u32.totalorder %s3334_s10, %s3330_s12  ;;  %p3338_p4 = scmp.lt.u32.totalorder %s3330_s12, %s5500_s8 }
 0x5aa   : > { %p3332_p1 = pnand %p3331_p9, %p3524_p12 }
 0x5ab   : > { %p3337_p2 = por %p3336_p10, %p3335_p5 }
 0x5ac   : > { %p3333_p0 = pneg %p3332_p1 }
 0x5ad   : > { %p3339_p6 = por %p3338_p4, %p3337_p2 }
 0x5af   : > { %p3340_p8 = pnand %p3339_p6, %p3333_p0 }
 0x5b1   : > { %3343 = shalt.err (!%p3340_p8)
}
 0x5b2   : > { %s3412_s26 = smov 256  }
 0x5b3   : > { %3146 = dma.vmem_to_hbm [thread:$0]  (%p3524_p12), %s5510_s29, 2048, %s5500_s8, %s2942_s25, %s3412_s26, %s3412_s26, %s3407_s9  }
 0x5b4 PF: > { %p3163_p11 = scmp.ge.s32.totalorder %s3386_s18, 2  ;;  %s2971_s19 = sand.u32 1, %s3374_s15  }
 0x5b5   : > { %p6110_p13 = scmp.ne.s32.totalorder %s5701_s22, 0  ;;  %s2972_s20 = scalar_lea.sflag [#allocation7], %s2971_s19 }
 0x5b7   : > { %p3157_p3 = pnand %p3163_p11, %p6110_p13 }
 0x5b9   : > { %3369 = dma.done.wait (!%p3157_p3), %s2972_s20, 2048  }
 0x5ba   : > { %3371 = vsyncadd (!%p3157_p3), %s2972_s20, 4294965248  ;;  %p18_p7 = scmp.ge.s32.totalorder %s3491_s27, 6   ;;  %s6111_s15 = smov %s3378_s16 }
 0x5bb   : > { %s6112_s16 = smov %s3382_s17  ;;  %s6113_s17 = smov %s3520_s24 }
 0x5bc   : > { %s6114_s18 = smov %s3491_s27  ;;  %20 = sbr.rel (!%p18_p7) target bundleno = 6 (0x6), region = 186 }
 0x5c3   :  { %2977 = vsyncpa [#allocation6], 1 }
 0x5c4   :  { %2979 = vsyncpa [#allocation6 + $0x1], 1 }
 0x5c5   :  { %2980 = vsyncpa [#allocation9], 1 }
 0x5c6   :  { %2981 = vsyncpa [#allocation7], 1 }
 0x5c7   :  { %2983 = vsyncpa [#allocation7 + $0x1], 1 }

</bundles_post_ra>
